<compile_context>
chip_gen: v6e
topology: v6e:2x2x1
jax: 0.10.0
libtpu: 0.0.40
codegen_flags: <defaults>
</compile_context>

<pallas_src>
import functools

import jax
import jax.numpy as jnp
from jax.experimental import pallas as pl
from jax.experimental.pallas import tpu as pltpu


# ------------------------------- kernel ------------------------------------ #

def _lenet_kernel(x_ref, g1_ref, b1_ref, p1e_ref, p1o_ref,
                  g2_ref, b2_ref, p2e_ref, p2o_ref,
                  fc1w_ref, fc1b_ref, fc2w_ref, fc2b_ref,
                  gam_ref, bet_ref, fc3w_ref, fc3b_ref,
                  o_ref, *, eps):
    """Fully fused LeNet5BatchNorm7 forward.

    x_ref:   (B, 32, 32)        input images, W on lanes
    g1_ref:  (5, 32, 168)       conv1 row-banded matrices (per kernel row di)
    b1_ref:  (1, 168)           conv1 bias tiled over width (lane = w*6+c)
    p1e/p1o: (168, 84)          pool1 even/odd column selection matrices
    g2_ref:  (5, 84, 160)       conv2 row-banded matrices
    b2_ref:  (1, 160)           conv2 bias tiled over width (lane = j*16+c)
    p2e/p2o: (160, 80)          pool2 even/odd column selection matrices
    fc*_ref: dense layer weights/biases; gam/bet: BatchNorm affine params
    o_ref:   (B, Cpad)          logits padded to a multiple of 128 lanes
    """
    f32 = jnp.float32
    B = x_ref.shape[0]
    x = x_ref[...]                                              # (B,32,32)

    # ---- conv1 (5x5, 1->6) as 5 accumulating banded matmuls + bias + tanh --
    acc1 = jnp.dot(x[:, 0:28, :].reshape(B * 28, 32), g1_ref[0],
                   preferred_element_type=f32)
    for di in range(1, 5):
        lhs = x[:, di:di + 28, :].reshape(B * 28, 32)
        acc1 = acc1 + jnp.dot(lhs, g1_ref[di], preferred_element_type=f32)
    h1 = jnp.tanh(acc1 + b1_ref[...])                           # (B*28,168)

    # ---- pool1 2x2: columns via even/odd selection matmuls, rows via max ---
    wmax = jnp.maximum(
        jnp.dot(h1, p1e_ref[...], preferred_element_type=f32),
        jnp.dot(h1, p1o_ref[...], preferred_element_type=f32))  # (B*28,84)
    pool1 = jnp.max(wmax.reshape(B, 14, 2, 84), axis=2)         # (B,14,84)

    # ---- conv2 (5x5, 6->16) as 5 accumulating banded matmuls + bias + tanh -
    acc2 = jnp.dot(pool1[:, 0:10, :].reshape(B * 10, 84), g2_ref[0],
                   preferred_element_type=f32)
    for di in range(1, 5):
        lhs = pool1[:, di:di + 10, :].reshape(B * 10, 84)
        acc2 = acc2 + jnp.dot(lhs, g2_ref[di], preferred_element_type=f32)
    h2 = jnp.tanh(acc2 + b2_ref[...])                           # (B*10,160)

    # ---- pool2 2x2 + flatten to (B, 400), order (row, col, channel) --------
    wmax2 = jnp.maximum(
        jnp.dot(h2, p2e_ref[...], preferred_element_type=f32),
        jnp.dot(h2, p2o_ref[...], preferred_element_type=f32))  # (B*10,80)
    feat = jnp.max(wmax2.reshape(B, 5, 2, 80), axis=2)          # (B,5,80)
    feat = feat.reshape(B, 400)                                 # (B,400)

    # ---- classifier: fc1+tanh, fc2, BatchNorm1d(train)+tanh, fc3 -----------
    z1 = jnp.tanh(jnp.dot(feat, fc1w_ref[...],
                          preferred_element_type=f32) + fc1b_ref[...])   # (B,120)
    z2 = jnp.dot(z1, fc2w_ref[...],
                 preferred_element_type=f32) + fc2b_ref[...]             # (B,84)
    mu = jnp.mean(z2, axis=0, keepdims=True)
    var = jnp.mean((z2 - mu) ** 2, axis=0, keepdims=True)        # biased variance
    z2n = (z2 - mu) * jax.lax.rsqrt(var + eps)
    z3 = jnp.tanh(z2n * gam_ref[...] + bet_ref[...])             # (B,84)

    out = jnp.dot(z3, fc3w_ref[...],
                  preferred_element_type=f32) + fc3b_ref[...]    # (B,Cpad)
    o_ref[...] = out.astype(o_ref.dtype)


# ------------------------------- wrapper ------------------------------------ #

def lenet5_pallas(kp, x_nchw, num_classes, eps=1e-5):
    N = x_nchw.shape[0]
    assert x_nchw.shape[1:] == (1, 32, 32), x_nchw.shape
    x = x_nchw.reshape(N, 32, 32)                 # drop the Cin=1 lane (free)
    cpad = kp["fc3_w"].shape[1]

    operands = [x,
                kp["g1"], kp["b1t"], kp["p1e"], kp["p1o"],
                kp["g2"], kp["b2t"], kp["p2e"], kp["p2o"],
                kp["fc1_w"], kp["fc1_b"], kp["fc2_w"], kp["fc2_b"],
                kp["bn_g"], kp["bn_b"], kp["fc3_w"], kp["fc3_b"]]

    def full_spec(a):
        nd = a.ndim
        return pl.BlockSpec(a.shape, lambda i, _nd=nd: (0,) * _nd)

    flops = 2 * N * (5 * 28 * 32 * 168 + 2 * 28 * 168 * 84
                     + 5 * 10 * 84 * 160 + 2 * 10 * 160 * 80
                     + 400 * 120 + 120 * 84 + 84 * cpad)
    transc = N * (28 * 168 + 10 * 160 + 120 + 84)
    bytes_acc = 4 * (sum(int(a.size) for a in operands) + N * cpad)

    out = pl.pallas_call(
        functools.partial(_lenet_kernel, eps=eps),
        out_shape=jax.ShapeDtypeStruct((N, cpad), jnp.float32),
        grid=(1,),
        in_specs=[full_spec(a) for a in operands],
        out_specs=pl.BlockSpec((N, cpad), lambda i: (0, 0)),
        compiler_params=pltpu.CompilerParams(
            dimension_semantics=("arbitrary",),
            vmem_limit_bytes=32 * 1024 * 1024),
        cost_estimate=pl.CostEstimate(
            flops=flops, transcendentals=transc, bytes_accessed=bytes_acc),
    )(*operands)
    return out[:, :num_classes]


def lenet5_batchnorm7_forward(kp, x_nchw, num_classes):
    return lenet5_pallas(kp, x_nchw, num_classes)


# ------------------------------ parameters ---------------------------------- #

def init_params(key, num_classes):
    """Deterministic synthetic init mirroring PyTorch layouts / default init."""
    ks = jax.random.split(key, 10)

    def u(k, shape, fan_in):
        bound = 1.0 / jnp.sqrt(jnp.float32(fan_in))
        return jax.random.uniform(k, shape, jnp.float32, -bound, bound)

    return {
        "conv1_w": u(ks[0], (6, 1, 5, 5), 1 * 25),     # (Cout, Cin, kh, kw)
        "conv1_b": u(ks[1], (6,), 1 * 25),
        "conv2_w": u(ks[2], (16, 6, 5, 5), 6 * 25),
        "conv2_b": u(ks[3], (16,), 6 * 25),
        "fc1_w": u(ks[4], (400, 120), 400),            # (in,out); in-index torch order c*25+h*5+w
        "fc1_b": u(ks[5], (120,), 400),
        "fc2_w": u(ks[6], (120, 84), 120),
        "fc2_b": u(ks[7], (84,), 120),
        "bn_gamma": jnp.ones((84,), jnp.float32),
        "bn_beta": jnp.zeros((84,), jnp.float32),
        "fc3_w": u(ks[8], (84, num_classes), 84),
        "fc3_b": u(ks[9], (num_classes,), 84),
    }


def prepare_params(params, num_classes):
    """One-time (load/trace-time) re-layout so the kernel does no activation
    transposes: banded conv matrices, tiled biases, pooling selection matrices,
    fc1 row permutation and fc3 lane padding."""
    f32 = jnp.float32
    kp = {}

    # conv1 -> per-kernel-row banded matrices G1[di]: (32, 168),
    #   G1[di][k, w*6+c] = W1[c, 0, di, k-w]  if 0 <= k-w <= 4 else 0.
    w1 = jnp.transpose(params["conv1_w"][:, 0], (1, 2, 0))       # (5,5,6) [di,dj,c]
    k = jnp.arange(32)[:, None]
    w = jnp.arange(28)[None, :]
    dj = k - w
    valid = (dj >= 0) & (dj <= 4)
    g1 = w1[:, jnp.clip(dj, 0, 4), :]                            # (5,32,28,6)
    g1 = jnp.where(valid[None, :, :, None], g1, 0.0)
    kp["g1"] = g1.reshape(5, 32, 168).astype(f32)
    kp["b1t"] = jnp.tile(params["conv1_b"], 28).reshape(1, 168).astype(f32)

    # pool1 even/odd column selection (168 -> 84), lanes = (w, c), c fastest.
    p = jnp.arange(168)[:, None]
    q = jnp.arange(84)[None, :]
    same_c = (p % 6) == (q % 6)
    kp["p1e"] = (same_c & ((p // 6) == 2 * (q // 6))).astype(f32)
    kp["p1o"] = (same_c & ((p // 6) == 2 * (q // 6) + 1)).astype(f32)

    # conv2 -> banded matrices G2[di]: (84, 160),
    #   G2[di][w*6+ci, j*16+co] = W2[co, ci, di, w-j]  if 0 <= w-j <= 4 else 0.
    w2 = jnp.transpose(params["conv2_w"], (2, 3, 1, 0))          # (5,5,6,16) [di,dj,ci,co]
    w14 = jnp.arange(14)[:, None]
    j10 = jnp.arange(10)[None, :]
    dj2 = w14 - j10
    valid2 = (dj2 >= 0) & (dj2 <= 4)
    g2 = w2[:, jnp.clip(dj2, 0, 4), :, :]                        # (5,14,10,6,16)
    g2 = jnp.where(valid2[None, :, :, None, None], g2, 0.0)
    g2 = jnp.transpose(g2, (0, 1, 3, 2, 4))                      # (5,14,6,10,16) [di,w,ci,j,co]
    kp["g2"] = g2.reshape(5, 84, 160).astype(f32)
    kp["b2t"] = jnp.tile(params["conv2_b"], 10).reshape(1, 160).astype(f32)

    # pool2 even/odd column selection (160 -> 80), lanes = (j, co), co fastest.
    p = jnp.arange(160)[:, None]
    q = jnp.arange(80)[None, :]
    same_c = (p % 16) == (q % 16)
    kp["p2e"] = (same_c & ((p // 16) == 2 * (q // 16))).astype(f32)
    kp["p2o"] = (same_c & ((p // 16) == 2 * (q // 16) + 1)).astype(f32)

    # fc1: permute input rows from torch (c, h, w) flatten order to the
    # kernel's (row, col, channel) flatten order.
    f = jnp.arange(400)
    co = f % 16
    s = (f // 16) % 5
    r = f // 80
    torch_idx = co * 25 + r * 5 + s
    kp["fc1_w"] = params["fc1_w"][torch_idx, :].astype(f32)      # (400,120)
    kp["fc1_b"] = params["fc1_b"].reshape(1, 120).astype(f32)
    kp["fc2_w"] = params["fc2_w"].astype(f32)
    kp["fc2_b"] = params["fc2_b"].reshape(1, 84).astype(f32)
    kp["bn_g"] = params["bn_gamma"].reshape(1, 84).astype(f32)
    kp["bn_b"] = params["bn_beta"].reshape(1, 84).astype(f32)

    # fc3: zero-pad the output dim to a multiple of 128 lanes (unmasked vst).
    cpad = ((num_classes + 127) // 128) * 128
    kp["fc3_w"] = jnp.pad(params["fc3_w"],
                          ((0, 0), (0, cpad - num_classes))).astype(f32)
    kp["fc3_b"] = jnp.pad(params["fc3_b"],
                          (0, cpad - num_classes)).reshape(1, cpad).astype(f32)
    return kp


# ------------------------ pure-JAX reference (checking) --------------------- #

def reference_forward(params, x_nchw):
    hp = jax.lax.Precision.HIGHEST
    N = x_nchw.shape[0]
    y = jax.lax.conv_general_dilated(
        x_nchw, params["conv1_w"], (1, 1), "VALID",
        dimension_numbers=("NCHW", "OIHW", "NCHW"), precision=hp)
    y = jnp.tanh(y + params["conv1_b"][None, :, None, None])     # (N,6,28,28)
    y = y.reshape(N, 6, 14, 2, 14, 2).max(axis=(3, 5))           # (N,6,14,14)
    y = jax.lax.conv_general_dilated(
        y, params["conv2_w"], (1, 1), "VALID",
        dimension_numbers=("NCHW", "OIHW", "NCHW"), precision=hp)
    y = jnp.tanh(y + params["conv2_b"][None, :, None, None])     # (N,16,10,10)
    y = y.reshape(N, 16, 5, 2, 5, 2).max(axis=(3, 5))            # (N,16,5,5)
    y = y.reshape(N, 400)                                        # torch.flatten(x, 1)
    y = jnp.tanh(jnp.dot(y, params["fc1_w"], precision=hp) + params["fc1_b"])
    y = jnp.dot(y, params["fc2_w"], precision=hp) + params["fc2_b"]
    mean = y.mean(axis=0, keepdims=True)
    var = ((y - mean) ** 2).mean(axis=0, keepdims=True)
    y = jnp.tanh((y - mean) * jax.lax.rsqrt(var + 1e-5) * params["bn_gamma"]
                 + params["bn_beta"])
    return jnp.dot(y, params["fc3_w"], precision=hp) + params["fc3_b"]


# --------------------------------- main -------------------------------------- #

if __name__ == "__main__":
    num_classes = 10
    key = jax.random.PRNGKey(0)
    pkey, xkey = jax.random.split(key)
    params = init_params(pkey, num_classes)
    kparams = prepare_params(params, num_classes)    # load-time weight re-layout

    # Classic LeNet-5 input: 1x32x32 so features flatten to 16*5*5 = 400.
    x = jax.random.normal(xkey, (2, 1, 32, 32), jnp.float32)

    fwd = jax.jit(functools.partial(lenet5_batchnorm7_forward, kparams,
                                    num_classes=num_classes))
    logits = fwd(x)
    jax.block_until_ready(logits)
    assert logits.shape == (2, num_classes)
    assert logits.dtype == jnp.float32

    ref = jax.jit(functools.partial(reference_forward, params))(x)
    jax.block_until_ready(ref)
    err = float(jnp.max(jnp.abs(logits - ref)))
    assert err < 2e-3, f"mismatch vs pure-JAX reference: max|diff| = {err}"

    print("KERNEL_OK")
</pallas_src>

<mosaic_0001>
module attributes {stable_mosaic.version = 11 : i64} {
  func.func @_lenet_kernel(%arg0: i32, %arg1: memref<2x32x32xf32, #tpu.memory_space<vmem>>, %arg2: memref<5x32x168xf32, #tpu.memory_space<vmem>>, %arg3: memref<1x168xf32, #tpu.memory_space<vmem>>, %arg4: memref<168x84xf32, #tpu.memory_space<vmem>>, %arg5: memref<168x84xf32, #tpu.memory_space<vmem>>, %arg6: memref<5x84x160xf32, #tpu.memory_space<vmem>>, %arg7: memref<1x160xf32, #tpu.memory_space<vmem>>, %arg8: memref<160x80xf32, #tpu.memory_space<vmem>>, %arg9: memref<160x80xf32, #tpu.memory_space<vmem>>, %arg10: memref<400x120xf32, #tpu.memory_space<vmem>>, %arg11: memref<1x120xf32, #tpu.memory_space<vmem>>, %arg12: memref<120x84xf32, #tpu.memory_space<vmem>>, %arg13: memref<1x84xf32, #tpu.memory_space<vmem>>, %arg14: memref<1x84xf32, #tpu.memory_space<vmem>>, %arg15: memref<1x84xf32, #tpu.memory_space<vmem>>, %arg16: memref<84x128xf32, #tpu.memory_space<vmem>>, %arg17: memref<1x128xf32, #tpu.memory_space<vmem>>, %arg18: memref<2x128xf32, #tpu.memory_space<vmem>>) attributes {dimension_semantics = [#tpu.dimension_semantics<arbitrary>], iteration_bounds = array<i64: 1>, scalar_prefetch = 0 : i64, scratch_operands = 0 : i64, tpu.core_type = #tpu.core_type<tc>, window_params = [{pipeline_mode = #tpu.pipeline_mode<synchronous>, transform_indices = @transform_0, window_bounds = array<i64: 2, 32, 32>}, {pipeline_mode = #tpu.pipeline_mode<synchronous>, transform_indices = @transform_1, window_bounds = array<i64: 5, 32, 168>}, {pipeline_mode = #tpu.pipeline_mode<synchronous>, transform_indices = @transform_2, window_bounds = array<i64: 1, 168>}, {pipeline_mode = #tpu.pipeline_mode<synchronous>, transform_indices = @transform_3, window_bounds = array<i64: 168, 84>}, {pipeline_mode = #tpu.pipeline_mode<synchronous>, transform_indices = @transform_4, window_bounds = array<i64: 168, 84>}, {pipeline_mode = #tpu.pipeline_mode<synchronous>, transform_indices = @transform_5, window_bounds = array<i64: 5, 84, 160>}, {pipeline_mode = #tpu.pipeline_mode<synchronous>, transform_indices = @transform_6, window_bounds = array<i64: 1, 160>}, {pipeline_mode = #tpu.pipeline_mode<synchronous>, transform_indices = @transform_7, window_bounds = array<i64: 160, 80>}, {pipeline_mode = #tpu.pipeline_mode<synchronous>, transform_indices = @transform_8, window_bounds = array<i64: 160, 80>}, {pipeline_mode = #tpu.pipeline_mode<synchronous>, transform_indices = @transform_9, window_bounds = array<i64: 400, 120>}, {pipeline_mode = #tpu.pipeline_mode<synchronous>, transform_indices = @transform_10, window_bounds = array<i64: 1, 120>}, {pipeline_mode = #tpu.pipeline_mode<synchronous>, transform_indices = @transform_11, window_bounds = array<i64: 120, 84>}, {pipeline_mode = #tpu.pipeline_mode<synchronous>, transform_indices = @transform_12, window_bounds = array<i64: 1, 84>}, {pipeline_mode = #tpu.pipeline_mode<synchronous>, transform_indices = @transform_13, window_bounds = array<i64: 1, 84>}, {pipeline_mode = #tpu.pipeline_mode<synchronous>, transform_indices = @transform_14, window_bounds = array<i64: 1, 84>}, {pipeline_mode = #tpu.pipeline_mode<synchronous>, transform_indices = @transform_15, window_bounds = array<i64: 84, 128>}, {pipeline_mode = #tpu.pipeline_mode<synchronous>, transform_indices = @transform_16, window_bounds = array<i64: 1, 128>}, {pipeline_mode = #tpu.pipeline_mode<synchronous>, transform_indices = @transform_17, window_bounds = array<i64: 2, 128>}]} {
    %c0 = arith.constant 0 : index
    %c0_0 = arith.constant 0 : index
    %c0_1 = arith.constant 0 : index
    %0 = vector.load %arg1[%c0, %c0_0, %c0_1] : memref<2x32x32xf32, #tpu.memory_space<vmem>>, vector<2x32x32xf32>
    %1 = vector.extract_strided_slice %0 {offsets = [0, 0, 0], sizes = [2, 28, 32], strides = [1, 1, 1]} : vector<2x32x32xf32> to vector<2x28x32xf32>
    %2 = vector.shape_cast %1 : vector<2x28x32xf32> to vector<56x32xf32>
    %c0_2 = arith.constant 0 : index
    %c0_3 = arith.constant 0 : index
    %c0_4 = arith.constant 0 : index
    %3 = vector.load %arg2[%c0_2, %c0_3, %c0_4] : memref<5x32x168xf32, #tpu.memory_space<vmem>>, vector<1x32x168xf32>
    %4 = vector.shape_cast %3 : vector<1x32x168xf32> to vector<32x168xf32>
    %cst = arith.constant dense<0.000000e+00> : vector<56x168xf32>
    %5 = tpu.matmul %2, %4, %cst {dimension_numbers = #tpu.dot_dimension_numbers<[1], [0], [0], [1], [0, 0, 1, 1], [], []>} : vector<56x32xf32>, vector<32x168xf32>, vector<56x168xf32> -> vector<56x168xf32>
    %6 = vector.extract_strided_slice %0 {offsets = [0, 1, 0], sizes = [2, 28, 32], strides = [1, 1, 1]} : vector<2x32x32xf32> to vector<2x28x32xf32>
    %7 = vector.shape_cast %6 : vector<2x28x32xf32> to vector<56x32xf32>
    %c1 = arith.constant 1 : index
    %c0_5 = arith.constant 0 : index
    %c0_6 = arith.constant 0 : index
    %8 = vector.load %arg2[%c1, %c0_5, %c0_6] : memref<5x32x168xf32, #tpu.memory_space<vmem>>, vector<1x32x168xf32>
    %9 = vector.shape_cast %8 : vector<1x32x168xf32> to vector<32x168xf32>
    %cst_7 = arith.constant dense<0.000000e+00> : vector<56x168xf32>
    %10 = tpu.matmul %7, %9, %cst_7 {dimension_numbers = #tpu.dot_dimension_numbers<[1], [0], [0], [1], [0, 0, 1, 1], [], []>} : vector<56x32xf32>, vector<32x168xf32>, vector<56x168xf32> -> vector<56x168xf32>
    %11 = arith.addf %5, %10 : vector<56x168xf32>
    %12 = vector.extract_strided_slice %0 {offsets = [0, 2, 0], sizes = [2, 28, 32], strides = [1, 1, 1]} : vector<2x32x32xf32> to vector<2x28x32xf32>
    %13 = vector.shape_cast %12 : vector<2x28x32xf32> to vector<56x32xf32>
    %c2 = arith.constant 2 : index
    %c0_8 = arith.constant 0 : index
    %c0_9 = arith.constant 0 : index
    %14 = vector.load %arg2[%c2, %c0_8, %c0_9] : memref<5x32x168xf32, #tpu.memory_space<vmem>>, vector<1x32x168xf32>
    %15 = vector.shape_cast %14 : vector<1x32x168xf32> to vector<32x168xf32>
    %cst_10 = arith.constant dense<0.000000e+00> : vector<56x168xf32>
    %16 = tpu.matmul %13, %15, %cst_10 {dimension_numbers = #tpu.dot_dimension_numbers<[1], [0], [0], [1], [0, 0, 1, 1], [], []>} : vector<56x32xf32>, vector<32x168xf32>, vector<56x168xf32> -> vector<56x168xf32>
    %17 = arith.addf %11, %16 : vector<56x168xf32>
    %18 = vector.extract_strided_slice %0 {offsets = [0, 3, 0], sizes = [2, 28, 32], strides = [1, 1, 1]} : vector<2x32x32xf32> to vector<2x28x32xf32>
    %19 = vector.shape_cast %18 : vector<2x28x32xf32> to vector<56x32xf32>
    %c3 = arith.constant 3 : index
    %c0_11 = arith.constant 0 : index
    %c0_12 = arith.constant 0 : index
    %20 = vector.load %arg2[%c3, %c0_11, %c0_12] : memref<5x32x168xf32, #tpu.memory_space<vmem>>, vector<1x32x168xf32>
    %21 = vector.shape_cast %20 : vector<1x32x168xf32> to vector<32x168xf32>
    %cst_13 = arith.constant dense<0.000000e+00> : vector<56x168xf32>
    %22 = tpu.matmul %19, %21, %cst_13 {dimension_numbers = #tpu.dot_dimension_numbers<[1], [0], [0], [1], [0, 0, 1, 1], [], []>} : vector<56x32xf32>, vector<32x168xf32>, vector<56x168xf32> -> vector<56x168xf32>
    %23 = arith.addf %17, %22 : vector<56x168xf32>
    %24 = vector.extract_strided_slice %0 {offsets = [0, 4, 0], sizes = [2, 28, 32], strides = [1, 1, 1]} : vector<2x32x32xf32> to vector<2x28x32xf32>
    %25 = vector.shape_cast %24 : vector<2x28x32xf32> to vector<56x32xf32>
    %c4 = arith.constant 4 : index
    %c0_14 = arith.constant 0 : index
    %c0_15 = arith.constant 0 : index
    %26 = vector.load %arg2[%c4, %c0_14, %c0_15] : memref<5x32x168xf32, #tpu.memory_space<vmem>>, vector<1x32x168xf32>
    %27 = vector.shape_cast %26 : vector<1x32x168xf32> to vector<32x168xf32>
    %cst_16 = arith.constant dense<0.000000e+00> : vector<56x168xf32>
    %28 = tpu.matmul %25, %27, %cst_16 {dimension_numbers = #tpu.dot_dimension_numbers<[1], [0], [0], [1], [0, 0, 1, 1], [], []>} : vector<56x32xf32>, vector<32x168xf32>, vector<56x168xf32> -> vector<56x168xf32>
    %29 = arith.addf %23, %28 : vector<56x168xf32>
    %c0_17 = arith.constant 0 : index
    %c0_18 = arith.constant 0 : index
    %30 = vector.load %arg3[%c0_17, %c0_18] : memref<1x168xf32, #tpu.memory_space<vmem>>, vector<1x168xf32>
    %31 = vector.broadcast %30 : vector<1x168xf32> to vector<56x168xf32>
    %32 = arith.addf %29, %31 : vector<56x168xf32>
    %33 = math.tanh %32 : vector<56x168xf32>
    %c0_19 = arith.constant 0 : index
    %c0_20 = arith.constant 0 : index
    %34 = vector.load %arg4[%c0_19, %c0_20] : memref<168x84xf32, #tpu.memory_space<vmem>>, vector<168x84xf32>
    %cst_21 = arith.constant dense<0.000000e+00> : vector<56x84xf32>
    %35 = tpu.matmul %33, %34, %cst_21 {dimension_numbers = #tpu.dot_dimension_numbers<[1], [0], [0], [1], [0, 0, 1, 1], [], []>} : vector<56x168xf32>, vector<168x84xf32>, vector<56x84xf32> -> vector<56x84xf32>
    %c0_22 = arith.constant 0 : index
    %c0_23 = arith.constant 0 : index
    %36 = vector.load %arg5[%c0_22, %c0_23] : memref<168x84xf32, #tpu.memory_space<vmem>>, vector<168x84xf32>
    %cst_24 = arith.constant dense<0.000000e+00> : vector<56x84xf32>
    %37 = tpu.matmul %33, %36, %cst_24 {dimension_numbers = #tpu.dot_dimension_numbers<[1], [0], [0], [1], [0, 0, 1, 1], [], []>} : vector<56x168xf32>, vector<168x84xf32>, vector<56x84xf32> -> vector<56x84xf32>
    %38 = arith.maximumf %35, %37 : vector<56x84xf32>
    %39 = vector.shape_cast %38 : vector<56x84xf32> to vector<2x14x2x84xf32>
    %cst_25 = arith.constant dense<0xFF800000> : vector<2x14x84xf32>
    %40 = vector.multi_reduction <maximumf>, %39, %cst_25 [2] : vector<2x14x2x84xf32> to vector<2x14x84xf32>
    %41 = vector.extract_strided_slice %40 {offsets = [0, 0, 0], sizes = [2, 10, 84], strides = [1, 1, 1]} : vector<2x14x84xf32> to vector<2x10x84xf32>
    %42 = vector.shape_cast %41 : vector<2x10x84xf32> to vector<20x84xf32>
    %c0_26 = arith.constant 0 : index
    %c0_27 = arith.constant 0 : index
    %c0_28 = arith.constant 0 : index
    %43 = vector.load %arg6[%c0_26, %c0_27, %c0_28] : memref<5x84x160xf32, #tpu.memory_space<vmem>>, vector<1x84x160xf32>
    %44 = vector.shape_cast %43 : vector<1x84x160xf32> to vector<84x160xf32>
    %cst_29 = arith.constant dense<0.000000e+00> : vector<20x160xf32>
    %45 = tpu.matmul %42, %44, %cst_29 {dimension_numbers = #tpu.dot_dimension_numbers<[1], [0], [0], [1], [0, 0, 1, 1], [], []>} : vector<20x84xf32>, vector<84x160xf32>, vector<20x160xf32> -> vector<20x160xf32>
    %46 = vector.extract_strided_slice %40 {offsets = [0, 1, 0], sizes = [2, 10, 84], strides = [1, 1, 1]} : vector<2x14x84xf32> to vector<2x10x84xf32>
    %47 = vector.shape_cast %46 : vector<2x10x84xf32> to vector<20x84xf32>
    %c1_30 = arith.constant 1 : index
    %c0_31 = arith.constant 0 : index
    %c0_32 = arith.constant 0 : index
    %48 = vector.load %arg6[%c1_30, %c0_31, %c0_32] : memref<5x84x160xf32, #tpu.memory_space<vmem>>, vector<1x84x160xf32>
    %49 = vector.shape_cast %48 : vector<1x84x160xf32> to vector<84x160xf32>
    %cst_33 = arith.constant dense<0.000000e+00> : vector<20x160xf32>
    %50 = tpu.matmul %47, %49, %cst_33 {dimension_numbers = #tpu.dot_dimension_numbers<[1], [0], [0], [1], [0, 0, 1, 1], [], []>} : vector<20x84xf32>, vector<84x160xf32>, vector<20x160xf32> -> vector<20x160xf32>
    %51 = arith.addf %45, %50 : vector<20x160xf32>
    %52 = vector.extract_strided_slice %40 {offsets = [0, 2, 0], sizes = [2, 10, 84], strides = [1, 1, 1]} : vector<2x14x84xf32> to vector<2x10x84xf32>
    %53 = vector.shape_cast %52 : vector<2x10x84xf32> to vector<20x84xf32>
    %c2_34 = arith.constant 2 : index
    %c0_35 = arith.constant 0 : index
    %c0_36 = arith.constant 0 : index
    %54 = vector.load %arg6[%c2_34, %c0_35, %c0_36] : memref<5x84x160xf32, #tpu.memory_space<vmem>>, vector<1x84x160xf32>
    %55 = vector.shape_cast %54 : vector<1x84x160xf32> to vector<84x160xf32>
    %cst_37 = arith.constant dense<0.000000e+00> : vector<20x160xf32>
    %56 = tpu.matmul %53, %55, %cst_37 {dimension_numbers = #tpu.dot_dimension_numbers<[1], [0], [0], [1], [0, 0, 1, 1], [], []>} : vector<20x84xf32>, vector<84x160xf32>, vector<20x160xf32> -> vector<20x160xf32>
    %57 = arith.addf %51, %56 : vector<20x160xf32>
    %58 = vector.extract_strided_slice %40 {offsets = [0, 3, 0], sizes = [2, 10, 84], strides = [1, 1, 1]} : vector<2x14x84xf32> to vector<2x10x84xf32>
    %59 = vector.shape_cast %58 : vector<2x10x84xf32> to vector<20x84xf32>
    %c3_38 = arith.constant 3 : index
    %c0_39 = arith.constant 0 : index
    %c0_40 = arith.constant 0 : index
    %60 = vector.load %arg6[%c3_38, %c0_39, %c0_40] : memref<5x84x160xf32, #tpu.memory_space<vmem>>, vector<1x84x160xf32>
    %61 = vector.shape_cast %60 : vector<1x84x160xf32> to vector<84x160xf32>
    %cst_41 = arith.constant dense<0.000000e+00> : vector<20x160xf32>
    %62 = tpu.matmul %59, %61, %cst_41 {dimension_numbers = #tpu.dot_dimension_numbers<[1], [0], [0], [1], [0, 0, 1, 1], [], []>} : vector<20x84xf32>, vector<84x160xf32>, vector<20x160xf32> -> vector<20x160xf32>
    %63 = arith.addf %57, %62 : vector<20x160xf32>
    %64 = vector.extract_strided_slice %40 {offsets = [0, 4, 0], sizes = [2, 10, 84], strides = [1, 1, 1]} : vector<2x14x84xf32> to vector<2x10x84xf32>
    %65 = vector.shape_cast %64 : vector<2x10x84xf32> to vector<20x84xf32>
    %c4_42 = arith.constant 4 : index
    %c0_43 = arith.constant 0 : index
    %c0_44 = arith.constant 0 : index
    %66 = vector.load %arg6[%c4_42, %c0_43, %c0_44] : memref<5x84x160xf32, #tpu.memory_space<vmem>>, vector<1x84x160xf32>
    %67 = vector.shape_cast %66 : vector<1x84x160xf32> to vector<84x160xf32>
    %cst_45 = arith.constant dense<0.000000e+00> : vector<20x160xf32>
    %68 = tpu.matmul %65, %67, %cst_45 {dimension_numbers = #tpu.dot_dimension_numbers<[1], [0], [0], [1], [0, 0, 1, 1], [], []>} : vector<20x84xf32>, vector<84x160xf32>, vector<20x160xf32> -> vector<20x160xf32>
    %69 = arith.addf %63, %68 : vector<20x160xf32>
    %c0_46 = arith.constant 0 : index
    %c0_47 = arith.constant 0 : index
    %70 = vector.load %arg7[%c0_46, %c0_47] : memref<1x160xf32, #tpu.memory_space<vmem>>, vector<1x160xf32>
    %71 = vector.broadcast %70 : vector<1x160xf32> to vector<20x160xf32>
    %72 = arith.addf %69, %71 : vector<20x160xf32>
    %73 = math.tanh %72 : vector<20x160xf32>
    %c0_48 = arith.constant 0 : index
    %c0_49 = arith.constant 0 : index
    %74 = vector.load %arg8[%c0_48, %c0_49] : memref<160x80xf32, #tpu.memory_space<vmem>>, vector<160x80xf32>
    %cst_50 = arith.constant dense<0.000000e+00> : vector<20x80xf32>
    %75 = tpu.matmul %73, %74, %cst_50 {dimension_numbers = #tpu.dot_dimension_numbers<[1], [0], [0], [1], [0, 0, 1, 1], [], []>} : vector<20x160xf32>, vector<160x80xf32>, vector<20x80xf32> -> vector<20x80xf32>
    %c0_51 = arith.constant 0 : index
    %c0_52 = arith.constant 0 : index
    %76 = vector.load %arg9[%c0_51, %c0_52] : memref<160x80xf32, #tpu.memory_space<vmem>>, vector<160x80xf32>
    %cst_53 = arith.constant dense<0.000000e+00> : vector<20x80xf32>
    %77 = tpu.matmul %73, %76, %cst_53 {dimension_numbers = #tpu.dot_dimension_numbers<[1], [0], [0], [1], [0, 0, 1, 1], [], []>} : vector<20x160xf32>, vector<160x80xf32>, vector<20x80xf32> -> vector<20x80xf32>
    %78 = arith.maximumf %75, %77 : vector<20x80xf32>
    %79 = vector.shape_cast %78 : vector<20x80xf32> to vector<2x5x2x80xf32>
    %cst_54 = arith.constant dense<0xFF800000> : vector<2x5x80xf32>
    %80 = vector.multi_reduction <maximumf>, %79, %cst_54 [2] : vector<2x5x2x80xf32> to vector<2x5x80xf32>
    %81 = vector.shape_cast %80 : vector<2x5x80xf32> to vector<2x400xf32>
    %c0_55 = arith.constant 0 : index
    %c0_56 = arith.constant 0 : index
    %82 = vector.load %arg10[%c0_55, %c0_56] : memref<400x120xf32, #tpu.memory_space<vmem>>, vector<400x120xf32>
    %cst_57 = arith.constant dense<0.000000e+00> : vector<2x120xf32>
    %83 = tpu.matmul %81, %82, %cst_57 {dimension_numbers = #tpu.dot_dimension_numbers<[1], [0], [0], [1], [0, 0, 1, 1], [], []>} : vector<2x400xf32>, vector<400x120xf32>, vector<2x120xf32> -> vector<2x120xf32>
    %c0_58 = arith.constant 0 : index
    %c0_59 = arith.constant 0 : index
    %84 = vector.load %arg11[%c0_58, %c0_59] : memref<1x120xf32, #tpu.memory_space<vmem>>, vector<1x120xf32>
    %85 = vector.broadcast %84 : vector<1x120xf32> to vector<2x120xf32>
    %86 = arith.addf %83, %85 : vector<2x120xf32>
    %87 = math.tanh %86 : vector<2x120xf32>
    %c0_60 = arith.constant 0 : index
    %c0_61 = arith.constant 0 : index
    %88 = vector.load %arg12[%c0_60, %c0_61] : memref<120x84xf32, #tpu.memory_space<vmem>>, vector<120x84xf32>
    %cst_62 = arith.constant dense<0.000000e+00> : vector<2x84xf32>
    %89 = tpu.matmul %87, %88, %cst_62 {dimension_numbers = #tpu.dot_dimension_numbers<[1], [0], [0], [1], [0, 0, 1, 1], [], []>} : vector<2x120xf32>, vector<120x84xf32>, vector<2x84xf32> -> vector<2x84xf32>
    %c0_63 = arith.constant 0 : index
    %c0_64 = arith.constant 0 : index
    %90 = vector.load %arg13[%c0_63, %c0_64] : memref<1x84xf32, #tpu.memory_space<vmem>>, vector<1x84xf32>
    %91 = vector.broadcast %90 : vector<1x84xf32> to vector<2x84xf32>
    %92 = arith.addf %89, %91 : vector<2x84xf32>
    %cst_65 = arith.constant dense<0.000000e+00> : vector<84xf32>
    %93 = vector.multi_reduction <add>, %92, %cst_65 [0] : vector<2x84xf32> to vector<84xf32>
    %94 = vector.shape_cast %93 : vector<84xf32> to vector<1x84xf32>
    %cst_66 = arith.constant 2.000000e+00 : f32
    %95 = vector.broadcast %cst_66 : f32 to vector<1x84xf32>
    %96 = arith.divf %94, %95 : vector<1x84xf32>
    %97 = vector.broadcast %96 : vector<1x84xf32> to vector<2x84xf32>
    %98 = arith.subf %92, %97 : vector<2x84xf32>
    %99 = arith.mulf %98, %98 : vector<2x84xf32>
    %cst_67 = arith.constant dense<0.000000e+00> : vector<84xf32>
    %100 = vector.multi_reduction <add>, %99, %cst_67 [0] : vector<2x84xf32> to vector<84xf32>
    %101 = vector.shape_cast %100 : vector<84xf32> to vector<1x84xf32>
    %cst_68 = arith.constant 2.000000e+00 : f32
    %102 = vector.broadcast %cst_68 : f32 to vector<1x84xf32>
    %103 = arith.divf %101, %102 : vector<1x84xf32>
    %104 = vector.broadcast %96 : vector<1x84xf32> to vector<2x84xf32>
    %105 = arith.subf %92, %104 : vector<2x84xf32>
    %cst_69 = arith.constant 9.99999974E-6 : f32
    %106 = vector.broadcast %cst_69 : f32 to vector<1x84xf32>
    %107 = arith.addf %103, %106 : vector<1x84xf32>
    %108 = math.rsqrt %107 : vector<1x84xf32>
    %109 = vector.broadcast %108 : vector<1x84xf32> to vector<2x84xf32>
    %110 = arith.mulf %105, %109 : vector<2x84xf32>
    %c0_70 = arith.constant 0 : index
    %c0_71 = arith.constant 0 : index
    %111 = vector.load %arg14[%c0_70, %c0_71] : memref<1x84xf32, #tpu.memory_space<vmem>>, vector<1x84xf32>
    %112 = vector.broadcast %111 : vector<1x84xf32> to vector<2x84xf32>
    %113 = arith.mulf %110, %112 : vector<2x84xf32>
    %c0_72 = arith.constant 0 : index
    %c0_73 = arith.constant 0 : index
    %114 = vector.load %arg15[%c0_72, %c0_73] : memref<1x84xf32, #tpu.memory_space<vmem>>, vector<1x84xf32>
    %115 = vector.broadcast %114 : vector<1x84xf32> to vector<2x84xf32>
    %116 = arith.addf %113, %115 : vector<2x84xf32>
    %117 = math.tanh %116 : vector<2x84xf32>
    %c0_74 = arith.constant 0 : index
    %c0_75 = arith.constant 0 : index
    %118 = vector.load %arg16[%c0_74, %c0_75] : memref<84x128xf32, #tpu.memory_space<vmem>>, vector<84x128xf32>
    %cst_76 = arith.constant dense<0.000000e+00> : vector<2x128xf32>
    %119 = tpu.matmul %117, %118, %cst_76 {dimension_numbers = #tpu.dot_dimension_numbers<[1], [0], [0], [1], [0, 0, 1, 1], [], []>} : vector<2x84xf32>, vector<84x128xf32>, vector<2x128xf32> -> vector<2x128xf32>
    %c0_77 = arith.constant 0 : index
    %c0_78 = arith.constant 0 : index
    %120 = vector.load %arg17[%c0_77, %c0_78] : memref<1x128xf32, #tpu.memory_space<vmem>>, vector<1x128xf32>
    %121 = vector.broadcast %120 : vector<1x128xf32> to vector<2x128xf32>
    %122 = arith.addf %119, %121 : vector<2x128xf32>
    %c0_79 = arith.constant 0 : index
    %c0_80 = arith.constant 0 : index
    %123 = vector.load %arg18[%c0_79, %c0_80] : memref<2x128xf32, #tpu.memory_space<vmem>>, vector<2x128xf32>
    tpu.vector_store %arg18[%c0_79, %c0_80], %122 {strides = array<i32>} : memref<2x128xf32, #tpu.memory_space<vmem>>, vector<2x128xf32>,
    return
  }
  func.func @transform_0(%arg0: i32) -> (i32, i32, i32) {
    %c0_i32 = arith.constant 0 : i32
    %c0_i32_0 = arith.constant 0 : i32
    %c0_i32_1 = arith.constant 0 : i32
    %c0_i32_2 = arith.constant 0 : i32
    return %c0_i32, %c0_i32_0, %c0_i32_1 : i32, i32, i32
  }
  func.func @transform_1(%arg0: i32) -> (i32, i32, i32) {
    %c0_i32 = arith.constant 0 : i32
    %c0_i32_0 = arith.constant 0 : i32
    %c0_i32_1 = arith.constant 0 : i32
    %c0_i32_2 = arith.constant 0 : i32
    return %c0_i32, %c0_i32_0, %c0_i32_1 : i32, i32, i32
  }
  func.func @transform_2(%arg0: i32) -> (i32, i32) {
    %c0_i32 = arith.constant 0 : i32
    %c0_i32_0 = arith.constant 0 : i32
    %c0_i32_1 = arith.constant 0 : i32
    return %c0_i32, %c0_i32_0 : i32, i32
  }
  func.func @transform_3(%arg0: i32) -> (i32, i32) {
    %c0_i32 = arith.constant 0 : i32
    %c0_i32_0 = arith.constant 0 : i32
    %c0_i32_1 = arith.constant 0 : i32
    return %c0_i32, %c0_i32_0 : i32, i32
  }
  func.func @transform_4(%arg0: i32) -> (i32, i32) {
    %c0_i32 = arith.constant 0 : i32
    %c0_i32_0 = arith.constant 0 : i32
    %c0_i32_1 = arith.constant 0 : i32
    return %c0_i32, %c0_i32_0 : i32, i32
  }
  func.func @transform_5(%arg0: i32) -> (i32, i32, i32) {
    %c0_i32 = arith.constant 0 : i32
    %c0_i32_0 = arith.constant 0 : i32
    %c0_i32_1 = arith.constant 0 : i32
    %c0_i32_2 = arith.constant 0 : i32
    return %c0_i32, %c0_i32_0, %c0_i32_1 : i32, i32, i32
  }
  func.func @transform_6(%arg0: i32) -> (i32, i32) {
    %c0_i32 = arith.constant 0 : i32
    %c0_i32_0 = arith.constant 0 : i32
    %c0_i32_1 = arith.constant 0 : i32
    return %c0_i32, %c0_i32_0 : i32, i32
  }
  func.func @transform_7(%arg0: i32) -> (i32, i32) {
    %c0_i32 = arith.constant 0 : i32
    %c0_i32_0 = arith.constant 0 : i32
    %c0_i32_1 = arith.constant 0 : i32
    return %c0_i32, %c0_i32_0 : i32, i32
  }
  func.func @transform_8(%arg0: i32) -> (i32, i32) {
    %c0_i32 = arith.constant 0 : i32
    %c0_i32_0 = arith.constant 0 : i32
    %c0_i32_1 = arith.constant 0 : i32
    return %c0_i32, %c0_i32_0 : i32, i32
  }
  func.func @transform_9(%arg0: i32) -> (i32, i32) {
    %c0_i32 = arith.constant 0 : i32
    %c0_i32_0 = arith.constant 0 : i32
    %c0_i32_1 = arith.constant 0 : i32
    return %c0_i32, %c0_i32_0 : i32, i32
  }
  func.func @transform_10(%arg0: i32) -> (i32, i32) {
    %c0_i32 = arith.constant 0 : i32
    %c0_i32_0 = arith.constant 0 : i32
    %c0_i32_1 = arith.constant 0 : i32
    return %c0_i32, %c0_i32_0 : i32, i32
  }
  func.func @transform_11(%arg0: i32) -> (i32, i32) {
    %c0_i32 = arith.constant 0 : i32
    %c0_i32_0 = arith.constant 0 : i32
    %c0_i32_1 = arith.constant 0 : i32
    return %c0_i32, %c0_i32_0 : i32, i32
  }
  func.func @transform_12(%arg0: i32) -> (i32, i32) {
    %c0_i32 = arith.constant 0 : i32
    %c0_i32_0 = arith.constant 0 : i32
    %c0_i32_1 = arith.constant 0 : i32
    return %c0_i32, %c0_i32_0 : i32, i32
  }
  func.func @transform_13(%arg0: i32) -> (i32, i32) {
    %c0_i32 = arith.constant 0 : i32
    %c0_i32_0 = arith.constant 0 : i32
    %c0_i32_1 = arith.constant 0 : i32
    return %c0_i32, %c0_i32_0 : i32, i32
  }
  func.func @transform_14(%arg0: i32) -> (i32, i32) {
    %c0_i32 = arith.constant 0 : i32
    %c0_i32_0 = arith.constant 0 : i32
    %c0_i32_1 = arith.constant 0 : i32
    return %c0_i32, %c0_i32_0 : i32, i32
  }
  func.func @transform_15(%arg0: i32) -> (i32, i32) {
    %c0_i32 = arith.constant 0 : i32
    %c0_i32_0 = arith.constant 0 : i32
    %c0_i32_1 = arith.constant 0 : i32
    return %c0_i32, %c0_i32_0 : i32, i32
  }
  func.func @transform_16(%arg0: i32) -> (i32, i32) {
    %c0_i32 = arith.constant 0 : i32
    %c0_i32_0 = arith.constant 0 : i32
    %c0_i32_1 = arith.constant 0 : i32
    return %c0_i32, %c0_i32_0 : i32, i32
  }
  func.func @transform_17(%arg0: i32) -> (i32, i32) {
    %c0_i32 = arith.constant 0 : i32
    %c0_i32_0 = arith.constant 0 : i32
    %c0_i32_1 = arith.constant 0 : i32
    return %c0_i32, %c0_i32_0 : i32, i32
  }
}

</mosaic_0001>

<bundles_post_ra>
// kernel: lenet5_batchnorm7_forward.1
= control target key start
LH: loop header
LB: loop body
LE: loop exit
PB: predicated region body
PF: predicated region fallthrough
CT: control target
= control target key end

     0   :  { %s5023_s0 = inlined_call_operand.hbm [shape: f32[2,32,32], index: 0, kind: input, shape index: {}]   ;;  %s5024_s1 = inlined_call_operand.hbm [shape: f32[5,32,168], index: 1, kind: input, shape index: {}]   ;;  %s5025_s2 = inlined_call_operand.vmem [shape: f32[1,168], index: 2, kind: input, shape index: {}]   ;;  %s5026_s3 = inlined_call_operand.hbm [shape: f32[168,84], index: 3, kind: input, shape index: {}]   ;;  %s5027_s4 = inlined_call_operand.hbm [shape: f32[168,84], index: 4, kind: input, shape index: {}]   ;;  %s5028_s5 = inlined_call_operand.hbm [shape: f32[5,84,160], index: 5, kind: input, shape index: {}]   ;;  %s5029_s6 = inlined_call_operand.vmem [shape: f32[1,160], index: 6, kind: input, shape index: {}]   ;;  %s5030_s7 = inlined_call_operand.hbm [shape: f32[160,80], index: 7, kind: input, shape index: {}]   ;;  %s5031_s8 = inlined_call_operand.hbm [shape: f32[160,80], index: 8, kind: input, shape index: {}]   ;;  %s5032_s9 = inlined_call_operand.hbm [shape: f32[400,120], index: 9, kind: input, shape index: {}]   ;;  %s5033_s10 = inlined_call_operand.vmem [shape: f32[1,120], index: 10, kind: input, shape index: {}]   ;;  %s5034_s11 = inlined_call_operand.hbm [shape: f32[120,84], index: 11, kind: input, shape index: {}]   ;;  %s5035_s12 = inlined_call_operand.vmem [shape: f32[1,84], index: 12, kind: input, shape index: {}]   ;;  %s5036_s13 = inlined_call_operand.vmem [shape: f32[1,84], index: 13, kind: input, shape index: {}]   ;;  %s5037_s14 = inlined_call_operand.vmem [shape: f32[1,84], index: 14, kind: input, shape index: {}]   ;;  %s5038_s15 = inlined_call_operand.hbm [shape: f32[84,128], index: 15, kind: input, shape index: {}]   ;;  %s5039_s16 = inlined_call_operand.vmem [shape: f32[1,128], index: 16, kind: input, shape index: {}]   ;;  %s5040_s17 = inlined_call_operand.hbm [shape: f32[2,128], index: 17, kind: output, shape index: {}]  }
   0x1   :  { %5042 = sst [smem:[#allocation27_spill]] %s5023_s0 }
   0x2   :  { %5043 = sst [smem:[#allocation28_spill]] %s5024_s1 }
   0x3   :  { %22 = vsyncpa [#allocation3], 0 }
   0x4   :  { %23 = vsyncpa [#allocation6], 0 }
   0x5   :  { %24 = vsyncpa [#allocation9], 0 }
   0x6   :  { %25 = vsyncpa [#allocation12], 0 }
   0x7   :  { %26 = vsyncpa [#allocation15], 0 }
   0x8   :  { %27 = vsyncpa [#allocation18], 0 }
   0x9   :  { %28 = vsyncpa [#allocation4], 0  ;;  %s3904_s24 = smov [#allocation5]  }
   0xa   :  { %s46_s25 = sshll.u32 %s3904_s24, 4  ;;  %s47_s25 = int_to_ptr.vmem [resolvable:$true] %s46_s25 }
   0xb   :  { %s3678_s26 = scalar_lea.vmem %s47_s25, 5120  ;;  %p3683_p1 = scmp.lt.s32.totalorder %s47_s25, %s47_s25 }
   0xc   :  { %p3679_p0 = scmp.ne.s32.totalorder %s47_s25, %s3678_s26  ;;  %p3684_p2 = scmp.lt.s32.totalorder %s3678_s26, %s3678_s26 }
   0xe   :  { %p3685_p3 = por %p3684_p2, %p3683_p1 }
  0x10   :  { %p3686_p4 = pnand %p3685_p3, %p3679_p0 }
  0x12   :  { %3689 = shalt.err (!%p3686_p4)
}
  0x13   :  { %s3905_s27 = smov 256   ;;  %s3906_s28 = smov 16  }
  0x14   :  { %s5044_s30 = sld [smem:[#allocation28_spill]]  ;;  %s3907_s18 = smov [#allocation8]  }
  0x15   :  { %s72_s19 = sshll.u32 %s3907_s18, 4  ;;  %s3908_s1 = smov [#allocation11]   ;;  %s73_s19 = int_to_ptr.vmem [resolvable:$true] %s72_s19 }
  0x16   :  { %s98_s20 = sshll.u32 %s3908_s1, 4  ;;  %s3698_s21 = scalar_lea.vmem %s73_s19, 2688  ;;  %s99_s20 = int_to_ptr.vmem [resolvable:$true] %s98_s20 }
  0x17   :  { %p3699_p5 = scmp.ne.s32.totalorder %s73_s19, %s3698_s21  ;;  %p3703_p6 = scmp.lt.s32.totalorder %s73_s19, %s73_s19 }
  0x18   :  { %p3704_p7 = scmp.lt.s32.totalorder %s3698_s21, %s3698_s21 }
  0x1a   :  { %52 = dma.hbm_to_vmem [thread:$0]  %s5044_s30, 5120, %s47_s25, [#allocation6], %s3905_s27, %s3905_s27, %s3906_s28  }
  0x1b   :  { %p3705_p8 = por %p3704_p7, %p3703_p6 }
  0x1d   :  { %p3706_p9 = pnand %p3705_p8, %p3699_p5 }
  0x1f   :  { %3709 = shalt.err (!%p3706_p9)
}
  0x20   :  { %s3909_s22 = smov 128   ;;  %s3910_s23 = smov 8  }
  0x21   :  { %78 = dma.hbm_to_vmem [thread:$0]  %s5027_s4, 2688, %s73_s19, [#allocation9], %s3909_s22, %s3909_s22, %s3910_s23  }
  0x22   :  { %s3718_s25 = scalar_lea.vmem %s99_s20, 2560  ;;  %p3723_p11 = scmp.lt.s32.totalorder %s99_s20, %s99_s20 }
  0x23   :  { %p3719_p10 = scmp.ne.s32.totalorder %s99_s20, %s3718_s25  ;;  %p3724_p12 = scmp.lt.s32.totalorder %s3718_s25, %s3718_s25 }
  0x25   :  { %p3725_p13 = por %p3724_p12, %p3723_p11 }
  0x27   :  { %p3726_p0 = pnand %p3725_p13, %p3719_p10 }
  0x29   :  { %3729 = shalt.err (!%p3726_p0)
}
  0x2a   :  { %104 = dma.hbm_to_vmem [thread:$0]  %s5030_s7, 2560, %s99_s20, [#allocation12], %s3909_s22, %s3909_s22, %s3910_s23  }
  0x2b   :  { %s3911_s30 = smov [#allocation14]   ;;  %s3912_s1 = smov [#allocation2]  }
  0x2c   :  { %s122_s18 = sshll.u32 %s3911_s30, 4  ;;  %s34_s4 = sshll.u32 %s3912_s1, 4  ;;  %s123_s18 = int_to_ptr.vmem [resolvable:$true] %s122_s18  ;;  %s35_s4 = int_to_ptr.vmem [resolvable:$true] %s34_s4 }
  0x2d   :  { %s3738_s19 = scalar_lea.vmem %s123_s18, 6400  ;;  %p3743_p2 = scmp.lt.s32.totalorder %s123_s18, %s123_s18 }
  0x2e   :  { %p3739_p1 = scmp.ne.s32.totalorder %s123_s18, %s3738_s19  ;;  %p3744_p3 = scmp.lt.s32.totalorder %s3738_s19, %s3738_s19 }
  0x30   :  { %p3745_p4 = por %p3744_p3, %p3743_p2 }
  0x32   :  { %p3746_p5 = pnand %p3745_p4, %p3739_p1 }
  0x34   :  { %3749 = shalt.err (!%p3746_p5)
}
  0x35   :  { %128 = dma.hbm_to_vmem [thread:$0]  %s5032_s9, 6400, %s123_s18, [#allocation15], %s3909_s22, %s3909_s22, %s3910_s23  }
  0x36   :  { %s3758_s7 = scalar_lea.vmem %s35_s4, 1024  ;;  %p3763_p7 = scmp.lt.s32.totalorder %s35_s4, %s35_s4 }
  0x37   :  { %p3759_p6 = scmp.ne.s32.totalorder %s35_s4, %s3758_s7  ;;  %p3764_p8 = scmp.lt.s32.totalorder %s3758_s7, %s3758_s7 }
  0x39   :  { %p3765_p9 = por %p3764_p8, %p3763_p7 }
  0x3b   :  { %p3766_p10 = pnand %p3765_p9, %p3759_p6 }
  0x3d   :  { %3769 = shalt.err (!%p3766_p10)
}
  0x3e   :  { %s5045_s25 = sld [smem:[#allocation27_spill]]  ;;  %s3913_s29 = smov [#allocation7]  }
  0x3f   :  { %s60_s0 = sshll.u32 %s3913_s29, 4  ;;  %s3914_s30 = smov [#allocation10]   ;;  %s61_s0 = int_to_ptr.vmem [resolvable:$true] %s60_s0 }
  0x40   :  { %s84_s9 = sshll.u32 %s3914_s30, 4  ;;  %s3778_s18 = scalar_lea.vmem %s61_s0, 2688  ;;  %s85_s9 = int_to_ptr.vmem [resolvable:$true] %s84_s9 }
  0x41   :  { %p3779_p11 = scmp.ne.s32.totalorder %s61_s0, %s3778_s18  ;;  %p3783_p12 = scmp.lt.s32.totalorder %s61_s0, %s61_s0 }
  0x42   :  { %p3784_p13 = scmp.lt.s32.totalorder %s3778_s18, %s3778_s18 }
  0x44   :  { %40 = dma.hbm_to_vmem [thread:$0]  %s5045_s25, 1024, %s35_s4, [#allocation3], %s3909_s22, %s3909_s22, %s3910_s23  }
  0x45   :  { %p3785_p0 = por %p3784_p13, %p3783_p12 }
  0x47   :  { %p3786_p1 = pnand %p3785_p0, %p3779_p11 }
  0x49   :  { %3789 = shalt.err (!%p3786_p1)
}
  0x4a   :  { %66 = dma.hbm_to_vmem [thread:$0]  %s5026_s3, 2688, %s61_s0, [#allocation6], %s3909_s22, %s3909_s22, %s3910_s23  }
  0x4b   :  { %s3798_s4 = scalar_lea.vmem %s85_s9, 14080  ;;  %p3803_p3 = scmp.lt.s32.totalorder %s85_s9, %s85_s9 }
  0x4c   :  { %p3799_p2 = scmp.ne.s32.totalorder %s85_s9, %s3798_s4  ;;  %p3804_p4 = scmp.lt.s32.totalorder %s3798_s4, %s3798_s4 }
  0x4e   :  { %p3805_p5 = por %p3804_p4, %p3803_p3 }
  0x50   :  { %p3806_p6 = pnand %p3805_p5, %p3799_p2 }
  0x52   :  { %3809 = shalt.err (!%p3806_p6)
}
  0x53   :  { %90 = dma.hbm_to_vmem [thread:$0]  %s5028_s5, 14080, %s85_s9, [#allocation9], %s3905_s27, %s3905_s27, %s3906_s28  }
  0x54   :  { %s3915_s7 = smov [#allocation13]   ;;  %s3916_s26 = smov [#allocation16]  }
  0x55   :  { %s110_s20 = sshll.u32 %s3915_s7, 4  ;;  %s136_s3 = sshll.u32 %s3916_s26, 4  ;;  %s111_s20 = int_to_ptr.vmem [resolvable:$true] %s110_s20  ;;  %s137_s3 = int_to_ptr.vmem [resolvable:$true] %s136_s3 }
  0x56   :  { %s3818_s25 = scalar_lea.vmem %s111_s20, 2560  ;;  %p3823_p8 = scmp.lt.s32.totalorder %s111_s20, %s111_s20 }
  0x57   :  { %p3819_p7 = scmp.ne.s32.totalorder %s111_s20, %s3818_s25  ;;  %p3824_p9 = scmp.lt.s32.totalorder %s3818_s25, %s3818_s25 }
  0x59   :  { %p3825_p10 = por %p3824_p9, %p3823_p8 }
  0x5b   :  { %p3826_p11 = pnand %p3825_p10, %p3819_p7 }
  0x5d   :  { %3829 = shalt.err (!%p3826_p11)
}
  0x5e   :  { %116 = dma.hbm_to_vmem [thread:$0]  %s5031_s8, 2560, %s111_s20, [#allocation12], %s3909_s22, %s3909_s22, %s3910_s23  }
  0x5f   :  { %s3838_s5 = scalar_lea.vmem %s137_s3, 1920  ;;  %p3843_p13 = scmp.lt.s32.totalorder %s137_s3, %s137_s3 }
  0x60   :  { %p3839_p12 = scmp.ne.s32.totalorder %s137_s3, %s3838_s5  ;;  %p3844_p0 = scmp.lt.s32.totalorder %s3838_s5, %s3838_s5 }
  0x62   :  { %p3845_p1 = por %p3844_p0, %p3843_p13 }
  0x64   :  { %p3846_p2 = pnand %p3845_p1, %p3839_p12 }
  0x66   :  { %3849 = shalt.err (!%p3846_p2)
}
  0x67   :  { %142 = dma.hbm_to_vmem [thread:$0]  %s5034_s11, 1920, %s137_s3, [#allocation15], %s3909_s22, %s3909_s22, %s3910_s23  }
  0x68   :  { %s3917_s30 = smov [#allocation17]  }
  0x69   :  { %s154_s9 = sshll.u32 %s3917_s30, 4  ;;  %s155_s9 = int_to_ptr.vmem [resolvable:$true] %s154_s9 }
  0x6a   :  { %s3858_s18 = scalar_lea.vmem %s155_s9, 1408  ;;  %p3863_p4 = scmp.lt.s32.totalorder %s155_s9, %s155_s9 }
  0x6b   :  { %p3859_p3 = scmp.ne.s32.totalorder %s155_s9, %s3858_s18  ;;  %p3864_p5 = scmp.lt.s32.totalorder %s3858_s18, %s3858_s18 }
  0x6d   :  { %p3865_p6 = por %p3864_p5, %p3863_p4 }
  0x6f   :  { %p3866_p7 = pnand %p3865_p6, %p3859_p3 }
  0x71   :  { %3869 = shalt.err (!%p3866_p7)
}
  0x72   :  { %160 = dma.hbm_to_vmem [thread:$0]  %s5038_s15, 1408, %s155_s9, [#allocation18], %s3909_s22, %s3909_s22, %s3910_s23  }
  0x73   :  { %3890 = dma.done.wait [#allocation3], 1024  }
  0x74   :  { %3891 = vsyncadd [#allocation3], 4294966272 }
  0x75   :  { %3892 = dma.done.wait [#allocation6], 7808  }
  0x76   :  { %3893 = vsyncadd [#allocation6], 4294959488 }
  0x77   :  { %3894 = dma.done.wait [#allocation9], 16768  }
  0x78   :  { %3895 = vsyncadd [#allocation9], 4294950528 }
  0x79   :  { %3896 = dma.done.wait [#allocation12], 5120  }
  0x7a   :  { %3897 = vsyncadd [#allocation12], 4294962176 }
  0x7b   :  { %3898 = dma.done.wait [#allocation15], 8320  }
  0x7c   :  { %3899 = vsyncadd [#allocation15], 4294958976 }
  0x7d   :  { %3900 = dma.done.wait [#allocation18], 1408  }
  0x7e   :  { %3901 = vsyncadd [#allocation18], 4294965888  ;;  %v3918_v0 = vmov 0.0   ;;  %v280_v1 = vld [vmem:[#allocation5 + $0x78] sm:$0xff]  ;;  %v279_v2 = vld [vmem:[#allocation5 + $0x70] sm:$0xff]  ;;  %vm225_vm0 = vcmask 1042432  }
  0x7f   :  { %367 = vmatprep.mubr.f32.mxu0 %v3918_v0  ;;  %495 = vmatprep.mubr.f32.mxu1 %v3918_v0  ;;  %v222_v3 = vld [vmem:[#allocation5 + $0x38] sm:$0xff]  ;;  %v278_v4 = vld [vmem:[#allocation5 + $0x68] sm:$0xff]  ;;  %v221_v5 = vld [vmem:[#allocation5 + $0x30] sm:$0xff]  ;;  %vm226_vm1 = vcmask 1046532   ;;  %vm288_vm3 = vcmask 261120   ;;  %vm538_vm4 = vcmask 1041408  }
  0x80   :  { %327 = vmatprep.subr.mxu0 %v280_v1  ;;  %455 = vmatprep.subr.mxu1 %v222_v3  ;;  %v277_v6 = vld [vmem:[#allocation5 + $0x60] sm:$0xff]  ;;  %v220_v7 = vld [vmem:[#allocation5 + $0x28] sm:$0xff]  ;;  %v276_v8 = vld [vmem:[#allocation5 + $0x58] sm:$0xff]  ;;  %vm736_vm5 = vcmask 1040384   ;;  %vm737_vm6 = vcmask 1044484   ;;  %vm539_vm7 = vcmask 1045508  }
  0x81   :  { %328 = vmatpush1.msra.mxu0 %v279_v2  ;;  %456 = vmatpush1.msra.mxu1 %v221_v5  ;;  %v219_v9 = vld [vmem:[#allocation5 + $0x20] sm:$0xff]  ;;  %v275_v10 = vld [vmem:[#allocation5 + $0x50] sm:$0xff]  ;;  %v218_v11 = vld [vmem:[#allocation5 + $0x18] sm:$0xff]  ;;  %vm1842_vm10 = vcmask 1043456   ;;  %vm1146_vm11 = vcmask 326656   ;;  %vm1550_vm12 = vcmask 680960  }
  0x82   :  { %329 = vmatprep.subr.mxu0 %v278_v4  ;;  %457 = vmatprep.subr.mxu1 %v220_v7  ;;  %v274_v12 = vld [vmem:[#allocation5 + $0x48] sm:$0xff]  ;;  %v217_v13 = vld [vmem:[#allocation5 + $0x10] sm:$0xff]  ;;  %v273_v15 = vld [vmem:[#allocation5 + $0x40] sm:$0xff]  ;;  %vm1812_vm13 = vcmask 1041409   ;;  %vm1814_vm14 = vcmask 1042434   ;;  %vm1816_vm15 = vcmask 1043459  }
  0x83   :  { %330 = vmatpush1.msra.mxu0 %v277_v6  ;;  %458 = vmatpush1.msra.mxu1 %v219_v9  ;;  %v216_v14 = vld [vmem:[#allocation5 + $0x8] sm:$0xff]  ;;  %v215_v16 = vld [vmem:[#allocation5] sm:$0xff]  ;;  %v593_v18 = vld [vmem:[#allocation5 + $0xb8] sm:$0xff]  ;;  %s3922_s23 = smov 80   ;;  %s3923_s19 = smov 64  }
  0x84   :  { %331 = vmatprep.subr.mxu0 %v276_v8  ;;  %459 = vmatprep.subr.mxu1 %v218_v11  ;;  %v4079_v17 = vld [vmem:[#allocation2] sm:$0xff]  ;;  %v4081_v19 = vld [vmem:[#allocation2 + $0x8] sm:$0xff]  ;;  %v4088_v22 = vld [vmem:[#allocation2 + $0x10] sm:$0xff]  ;;  %s3924_s4 = smov 32   ;;  %s3926_s0 = smov [#allocation19]  }
  0x85   :  { %332 = vmatpush1.msra.mxu0 %v275_v10  ;;  %460 = vmatpush1.msra.mxu1 %v217_v13  ;;  %v4085_v20 = vcombine.high %v4079_v17, %v4079_v17  ;;  %v3373_v21 = vrot.slane %v4079_v17, 9  ;;  %vm4092_vm2 = vmor %vm225_vm0, %vm226_vm1  ;;  %v233_v24 = vrot.slane %v4081_v19, 5  ;;  %v4099_v25 = vcombine.high %v4081_v19, %v4081_v19  ;;  %v4108_v29 = vld [vmem:[#allocation2 + $0x18] sm:$0xff]  ;;  %v4112_v33 = vld [vmem:[#allocation2 + $0x20] sm:$0xff]  ;;  %s3359_s5 = sshll.u32 %s3926_s0, 4  ;;  %s3360_s5 = int_to_ptr.vmem [resolvable:$true] %s3359_s5 }
  0x86   :  { %333 = vmatprep.subr.mxu0 %v274_v12  ;;  %461 = vmatprep.subr.mxu1 %v216_v14  ;;  %v4103_v26 = vcombine.high %v4088_v22, %v4088_v22  ;;  %v239_v32 = vrot.slane %v4088_v22, 5  ;;  %v791_v38 = vld [vmem:[#allocation5 + $0xf8] sm:$0xff]  ;;  %v790_v39 = vld [vmem:[#allocation5 + $0xf0] sm:$0xff]  ;;  %v245_v42 = vrot.slane %v4108_v29, 5  ;;  %v4124_v43 = vcombine.high %v4108_v29, %v4108_v29  ;;  %v789_v44 = vld [vmem:[#allocation5 + $0xe8] sm:$0xff]  ;;  %p3875_p9 = scmp.lt.s32.totalorder %s3360_s5, %s3360_s5 }
  0x87   :  { %334 = vmatpush1.msra.mxu0 %v273_v15  ;;  %462 = vmatpush1.msra.mxu1 %v215_v16  ;;  %v230_v27 = vrot.slane %v4085_v20, 5  ;;  %v410_v28 = vcombine.low %v4079_v17, %v4085_v20  ;;  %v235_v30 = vrot.slane %v233_v24, 4  ;;  %v236_v31 = vrot.slane %v4099_v25, 5  ;;  %v592_v50 = vld [vmem:[#allocation5 + $0xb0] sm:$0xff]  ;;  %v4136_v52 = vld [vmem:[#allocation2 + $0x28] sm:$0xff]  ;;  %v788_v56 = vld [vmem:[#allocation5 + $0xe0] sm:$0xff] }
  0x88   :  { %639 = vmatprep.subr.mxu0 %v593_v18  ;;  %v411_v36 = vcombine.low %v4081_v19, %v4099_v25  ;;  %v242_v37 = vrot.slane %v4103_v26, 5  ;;  %v241_v41 = vrot.slane %v239_v32, 4  ;;  %837 = vmatprep.subr.mxu1 %v791_v38  ;;  %v4132_v48 = vcombine.high %v4112_v33, %v4112_v33  ;;  %v591_v53 = vld [vmem:[#allocation5 + $0xa8] sm:$0xff]  ;;  %v590_v58 = vld [vmem:[#allocation5 + $0xa0] sm:$0xff]  ;;  %v4147_v62 = vld [vmem:[#allocation2 + $0x30] sm:$0xff] }
  0x89   :  { %v231_v34 = vsel %vm4092_vm2, %v3373_v21, %v230_v27  ;;  %v232_v35 = vrot.slane %v230_v27, 4  ;;  %3382 = vmatmul.mubr.msk.f32.vlgmr.msra.gmra.mxu1 %vm288_vm3, %v410_v28  ;;  %v238_v40 = vrot.slane %v236_v31, 4  ;;  %v237_v46 = vsel %vm4092_vm2, %v235_v30, %v236_v31  ;;  %v589_v4 = vld [vmem:[#allocation5 + $0x98] sm:$0xff]  ;;  %v588_v6 = vld [vmem:[#allocation5 + $0x90] sm:$0xff]  ;;  %v587_v13 = vld [vmem:[#allocation5 + $0x88] sm:$0xff] }
  0x8a   :  { %501 = vmatprep.mubr.f32.mxu1 %v3918_v0  ;;  %v244_v47 = vrot.slane %v242_v37, 4  ;;  %838 = vmatpush1.msra.mxu1 %v790_v39  ;;  %v412_v54 = vcombine.low %v4088_v22, %v4103_v26  ;;  %v247_v55 = vrot.slane %v245_v42, 4  ;;  %v243_v59 = vsel %vm4092_vm2, %v241_v41, %v242_v37  ;;  %v4166_v9 = vld [vmem:[#allocation2 + $0x38] sm:$0xff]  ;;  %v785_v37 = vld [vmem:[#allocation5 + $0xc8] sm:$0xff]  ;;  %vm4207_vm8 = vmor %vm736_vm5, %vm737_vm6 }
  0x8b   :  { %v234_v45 = vsel %vm4092_vm2, %v232_v35, %v233_v24  ;;  %v240_v51 = vsel %vm4092_vm2, %v238_v40, %v239_v32  ;;  %839 = vmatprep.subr.mxu1 %v789_v44  ;;  %v248_v60 = vrot.slane %v4124_v43, 5  ;;  %v3374_v61 = vrot.slane %v4112_v33, 9  ;;  %v787_v10 = vld [vmem:[#allocation5 + $0xd8] sm:$0xff]  ;;  %v586_v24 = vld [vmem:[#allocation5 + $0x80] sm:$0xff]  ;;  %vm4220_vm9 = vmor %vm538_vm4, %vm539_vm7 }
  0x8c   :  { %v281_v49 = vcombine.low %v231_v34, %v234_v45  ;;  %v282_v57 = vcombine.low %v237_v46, %v240_v51  ;;  %v246_v63 = vsel %vm4092_vm2, %v244_v47, %v245_v42  ;;  %v252_v1 = vrot.slane %v4132_v48, 5  ;;  %840 = vmatpush1.msra.mxu1 %v788_v56  ;;  %v786_v34 = vld [vmem:[#allocation5 + $0xd0] sm:$0xff]  ;;  %v942_v35 = vld [vmem:[#allocation5 + $0x138] sm:$0xff]  ;;  %v784_v45 = vld [vmem:[#allocation5 + $0xc0] sm:$0xff] }
  0x8d   :  { %3383 = vmatmul.mubr.msk.f32.gmra.mxu1 %vm288_vm3, %v411_v36  ;;  %v4155_v2 = vcombine.high %v4136_v52, %v4136_v52  ;;  %v255_v3 = vrot.slane %v4136_v52, 5  ;;  %v413_v5 = vcombine.low %v4108_v29, %v4112_v33  ;;  %v4163_v7 = vcombine.high %v4147_v62, %v4147_v62  ;;  %841 = vmatprep.subr.mxu1 %v787_v10 }
  0x8e   :  { %3375 = vmatmul.mubr.msk.f32.vlgmr.msra.gmra.mxu0 %vm288_vm3, %v281_v49  ;;  %507 = vmatprep.mubr.f32.mxu1 %v3918_v0  ;;  %v261_v8 = vrot.slane %v4147_v62, 5  ;;  %v283_v11 = vcombine.low %v243_v59, %v246_v63  ;;  %v249_v12 = vsel %vm4092_vm2, %v247_v55, %v248_v60  ;;  %v253_v14 = vsel %vm4092_vm2, %v3374_v61, %v252_v1 }
  0x8f   :  { %640 = vmatpush1.msra.mxu0 %v592_v50  ;;  %373 = vmatprep.mubr.f32.mxu0 %v3918_v0  ;;  %v254_v15 = vrot.slane %v252_v1, 4  ;;  %v257_v16 = vrot.slane %v255_v3, 4  ;;  %v258_v18 = vrot.slane %v4155_v2, 5  ;;  %v414_v21 = vcombine.low %v4132_v48, %v4136_v52 }
  0x90   :  { %641 = vmatprep.subr.mxu0 %v591_v53  ;;  %v4180_v27 = vcombine.high %v4166_v9, %v4166_v9  ;;  %v263_v30 = vrot.slane %v261_v8, 4  ;;  %v264_v31 = vrot.slane %v4163_v7, 5  ;;  %v267_v32 = vrot.slane %v4166_v9, 5  ;;  %842 = vmatpush1.msra.mxu1 %v786_v34 }
  0x91   :  { %642 = vmatpush1.msra.mxu0 %v590_v58  ;;  %3384 = vmatmul.mubr.msk.f32.gmra.mxu1 %vm288_vm3, %v412_v54  ;;  %v260_v28 = vrot.slane %v258_v18, 4  ;;  %v284_v36 = vcombine.low %v249_v12, %v253_v14  ;;  %v741_v38 = vrot.slane %v4085_v20, 7  ;;  %v256_v39 = vsel %vm4092_vm2, %v254_v15, %v255_v3 }
  0x92   :  { %3376 = vmatmul.mubr.msk.f32.gmra.mxu0 %vm288_vm3, %v282_v57  ;;  %513 = vmatprep.mubr.f32.mxu1 %v3918_v0  ;;  %v259_v40 = vsel %vm4092_vm2, %v257_v16, %v258_v18  ;;  %v543_v41 = vrot.slane %v4085_v20, 6  ;;  %v415_v42 = vcombine.low %v4155_v2, %v4147_v62  ;;  %v270_v44 = vrot.slane %v4180_v27, 5 }
  0x93   :  { %379 = vmatprep.mubr.f32.mxu0 %v3918_v0  ;;  %643 = vmatprep.subr.mxu0 %v589_v4  ;;  %v3398_v46 = vrot.slane %v4079_v17, 11  ;;  %v262_v47 = vsel %vm4092_vm2, %v260_v28, %v261_v8  ;;  %v265_v49 = vsel %vm4092_vm2, %v263_v30, %v264_v31  ;;  %v266_v50 = vrot.slane %v264_v31, 4 }
  0x94   :  { %644 = vmatpush1.msra.mxu0 %v588_v6  ;;  %v269_v51 = vrot.slane %v267_v32, 4  ;;  %843 = vmatprep.subr.mxu1 %v785_v37  ;;  %v285_v53 = vcombine.low %v256_v39, %v259_v40  ;;  %v743_v55 = vrot.slane %v741_v38, 4  ;;  %v744_v56 = vrot.slane %v4081_v19, 7 }
  0x95   :  { %3385 = vmatmul.mubr.msk.f32.gmra.mxu1 %vm288_vm3, %v413_v5  ;;  %645 = vmatprep.subr.mxu0 %v587_v13  ;;  %v747_v57 = vrot.slane %v4099_v25, 7  ;;  %v3389_v58 = vrot.slane %v4079_v17, 10  ;;  %v545_v59 = vrot.slane %v543_v41, 4  ;;  %v546_v60 = vrot.slane %v4081_v19, 6 }
  0x96   :  { %3377 = vmatmul.mubr.msk.f32.gmra.mxu0 %vm288_vm3, %v283_v11  ;;  %519 = vmatprep.mubr.f32.mxu1 %v3918_v0  ;;  %v286_v61 = vcombine.low %v262_v47, %v265_v49  ;;  %v416_v63 = vcombine.low %v4163_v7, %v4166_v9  ;;  %v549_v3 = vrot.slane %v4099_v25, 6  ;;  %v268_v17 = vsel %vm4092_vm2, %v266_v50, %v267_v32 }
  0x97   :  { %385 = vmatprep.mubr.f32.mxu0 %v3918_v0  ;;  %646 = vmatpush1.msra.mxu0 %v586_v24  ;;  %v271_v4 = vsel %vm4092_vm2, %v269_v51, %v270_v44  ;;  %v742_v5 = vsel %vm4207_vm8, %v3398_v46, %v741_v38  ;;  %v746_v6 = vrot.slane %v744_v56, 4  ;;  %v745_v8 = vsel %vm4207_vm8, %v743_v55, %v744_v56  ;;  %v941_v56 = vld [vmem:[#allocation5 + $0x130] sm:$0xff] }
  0x98   :  { %988 = vmatprep.subr.mxu0 %v942_v35  ;;  %844 = vmatpush1.msra.mxu1 %v784_v45  ;;  %v749_v10 = vrot.slane %v747_v57, 4  ;;  %v750_v11 = vrot.slane %v4088_v22, 7  ;;  %v753_v12 = vrot.slane %v4103_v26, 7  ;;  %v544_v23 = vsel %vm4220_vm9, %v3389_v58, %v543_v41 }
  0x99   :  { %3386 = vmatmul.mubr.msk.f32.gmra.mxu1 %vm288_vm3, %v414_v21  ;;  %1168 = vmatprep.subr.mxu1 %v3918_v0  ;;  %v547_v13 = vsel %vm4220_vm9, %v545_v59, %v546_v60  ;;  %v548_v14 = vrot.slane %v546_v60, 4  ;;  %v551_v15 = vrot.slane %v549_v3, 4  ;;  %v552_v16 = vrot.slane %v4088_v22, 6 }
  0x9a   :  { %3378 = vmatmul.mubr.msk.f32.gmra.mxu0 %vm288_vm3, %v284_v36  ;;  %525 = vmatprep.mubr.f32.mxu1 %v3918_v0  ;;  %v555_v18 = vrot.slane %v4103_v26, 6  ;;  %v287_v21 = vcombine.low %v268_v17, %v271_v4  ;;  %v792_v24 = vcombine.low %v742_v5, %v745_v8  ;;  %v752_v28 = vrot.slane %v750_v11, 4  ;;  %v939_v5 = vld [vmem:[#allocation5 + $0x120] sm:$0xff] }
  0x9b   :  { %391 = vmatprep.mubr.f32.mxu0 %v3918_v0  ;;  %v748_v30 = vsel %vm4207_vm8, %v746_v6, %v747_v57  ;;  %v751_v31 = vsel %vm4207_vm8, %v749_v10, %v750_v11  ;;  %v755_v32 = vrot.slane %v753_v12, 4  ;;  %v756_v34 = vrot.slane %v4108_v29, 7 }
  0x9c   :  { %v594_v35 = vcombine.low %v544_v23, %v547_v13  ;;  %v554_v36 = vrot.slane %v552_v16, 4  ;;  %v550_v37 = vsel %vm4220_vm9, %v548_v14, %v549_v3  ;;  %v553_v38 = vsel %vm4220_vm9, %v551_v15, %v552_v16  ;;  %v938_v23 = vld [vmem:[#allocation5 + $0x118] sm:$0xff]  ;;  %v937_v16 = vld [vmem:[#allocation5 + $0x110] sm:$0xff] }
  0x9d   :  { %3387 = vmatmul.mubr.msk.f32.gmra.mxu1 %vm288_vm3, %v415_v42  ;;  %v557_v39 = vrot.slane %v555_v18, 4  ;;  %v558_v40 = vrot.slane %v4108_v29, 6  ;;  %v793_v41 = vcombine.low %v748_v30, %v751_v31  ;;  %v754_v42 = vsel %vm4207_vm8, %v752_v28, %v753_v12  ;;  %v936_v30 = vld [vmem:[#allocation5 + $0x108] sm:$0xff] }
  0x9e   :  { %3379 = vmatmul.mubr.msk.f32.gmra.mxu0 %vm288_vm3, %v285_v53  ;;  %531 = vmatprep.mubr.f32.mxu1 %v3918_v0  ;;  %v758_v44 = vrot.slane %v756_v34, 4  ;;  %v759_v45 = vrot.slane %v4124_v43, 7  ;;  %v757_v46 = vsel %vm4207_vm8, %v755_v32, %v756_v34  ;;  %v3399_v47 = vrot.slane %v4112_v33, 11 }
  0x9f   :  { %397 = vmatprep.mubr.f32.mxu0 %v3918_v0  ;;  %v763_v49 = vrot.slane %v4132_v48, 7  ;;  %v766_v50 = vrot.slane %v4136_v52, 7  ;;  %v595_v51 = vcombine.low %v550_v37, %v553_v38  ;;  %v556_v53 = vsel %vm4220_vm9, %v554_v36, %v555_v18  ;;  %v935_v38 = vld [vmem:[#allocation5 + $0x100] sm:$0xff] }
  0xa0   :  { %v560_v55 = vrot.slane %v558_v40, 4  ;;  %v559_v57 = vsel %vm4220_vm9, %v557_v39, %v558_v40  ;;  %v561_v58 = vrot.slane %v4124_v43, 6  ;;  %v3390_v59 = vrot.slane %v4112_v33, 10 }
  0xa1   :  { %3388 = vmatmul.mubr.msk.f32.gmra.mxu1 %vm288_vm3, %v416_v63  ;;  %v565_v60 = vrot.slane %v4132_v48, 6  ;;  %v794_v63 = vcombine.low %v754_v42, %v757_v46  ;;  %v760_v3 = vsel %vm4207_vm8, %v758_v44, %v759_v45  ;;  %v568_v17 = vrot.slane %v4136_v52, 6 }
  0xa2   :  { %3380 = vmatmul.mubr.msk.f32.gmra.mxu0 %vm288_vm3, %v286_v61  ;;  %877 = vmatprep.mubr.f32.mxu1 %v3918_v0  ;;  %v940_v61 = vld [vmem:[#allocation5 + $0x128] sm:$0xff]  ;;  %v765_v4 = vrot.slane %v763_v49, 4  ;;  %v764_v43 = vsel %vm4207_vm8, %v3399_v47, %v763_v49  ;;  %v768_v6 = vrot.slane %v766_v50, 4  ;;  %v769_v48 = vrot.slane %v4155_v2, 7 }
  0xa3   :  { %403 = vmatprep.mubr.f32.mxu0 %v3918_v0  ;;  %v772_v8 = vrot.slane %v4147_v62, 7  ;;  %v596_v10 = vcombine.low %v556_v53, %v559_v57  ;;  %v562_v11 = vsel %vm4220_vm9, %v560_v55, %v561_v58  ;;  %v566_v12 = vsel %vm4220_vm9, %v3390_v59, %v565_v60 }
  0xa4   :  { %v567_v13 = vrot.slane %v565_v60, 4  ;;  %v571_v14 = vrot.slane %v4155_v2, 6  ;;  %v795_v15 = vcombine.low %v760_v3, %v764_v43  ;;  %v570_v18 = vrot.slane %v568_v17, 4 }
  0xa5   :  { %3400 = vmatmul.mubr.msk.f32.vlgmr.msra.gmra.mxu1 %vm288_vm3, %v792_v24  ;;  %v771_v24 = vrot.slane %v769_v48, 4  ;;  %v770_v28 = vsel %vm4207_vm8, %v768_v6, %v769_v48  ;;  %v774_v31 = vrot.slane %v772_v8, 4  ;;  %v775_v32 = vrot.slane %v4163_v7, 7  ;;  %v1279_v48 = vld [vmem:[#allocation8 + $0x58] sm:$0xff] }
  0xa6   :  { %3381 = vmatmul.mubr.msk.f32.gmra.mxu0 %vm288_vm3, %v287_v21  ;;  %883 = vmatprep.mubr.f32.mxu1 %v3918_v0  ;;  %v767_v21 = vsel %vm4207_vm8, %v765_v4, %v766_v50  ;;  %v778_v34 = vrot.slane %v4166_v9, 7  ;;  %v597_v36 = vcombine.low %v562_v11, %v566_v12  ;;  %v569_v37 = vsel %vm4220_vm9, %v567_v13, %v568_v17  ;;  %v1134_v11 = vld [vmem:[#allocation7 + $0x48] sm:$0xff]  ;;  %v1277_v12 = vld [vmem:[#allocation8 + $0x48] sm:$0xff] }
  0xa7   :  { %679 = vmatprep.mubr.f32.mxu0 %v3918_v0  ;;  %v572_v39 = vsel %vm4220_vm9, %v570_v18, %v571_v14  ;;  %v796_v40 = vcombine.low %v767_v21, %v770_v28  ;;  %v773_v42 = vsel %vm4207_vm8, %v771_v24, %v772_v8  ;;  %v776_v44 = vsel %vm4207_vm8, %v774_v31, %v775_v32  ;;  %v1135_v8 = vld [vmem:[#allocation7 + $0x50] sm:$0xff]  ;;  %v1276_v13 = vld [vmem:[#allocation8 + $0x40] sm:$0xff]  ;;  %v1274_v18 = vld [vmem:[#allocation8 + $0x30] sm:$0xff] }
  0xa8   :  { %v777_v45 = vrot.slane %v775_v32, 4  ;;  %v780_v46 = vrot.slane %v778_v34, 4  ;;  %v781_v47 = vrot.slane %v4180_v27, 7  ;;  %v577_v50 = vrot.slane %v4163_v7, 6  ;;  %v1130_v21 = vld [vmem:[#allocation7 + $0x28] sm:$0xff]  ;;  %v1273_v24 = vld [vmem:[#allocation8 + $0x28] sm:$0xff] }
  0xa9   :  { %3401 = vmatmul.mubr.msk.f32.gmra.mxu1 %vm288_vm3, %v793_v41  ;;  %v573_v41 = vrot.slane %v571_v14, 4  ;;  %v598_v53 = vcombine.low %v569_v37, %v572_v39  ;;  %v797_v55 = vcombine.low %v773_v42, %v776_v44  ;;  %v943_v43 = vcombine.low %v4085_v20, %v4081_v19  ;;  %v1132_v14 = vld [vmem:[#allocation7 + $0x38] sm:$0xff]  ;;  %v1129_v28 = vld [vmem:[#allocation7 + $0x20] sm:$0xff]  ;;  %v1269_v37 = vld [vmem:[#allocation8 + $0x8] sm:$0xff] }
  0xaa   :  { %3391 = vmatmul.mubr.msk.f32.vlgmr.msra.gmra.mxu0 %vm288_vm3, %v594_v35  ;;  %889 = vmatprep.mubr.f32.mxu1 %v3918_v0  ;;  %v574_v35 = vrot.slane %v4147_v62, 6  ;;  %v779_v57 = vsel %vm4207_vm8, %v777_v45, %v778_v34  ;;  %v782_v58 = vsel %vm4207_vm8, %v780_v46, %v781_v47  ;;  %v579_v60 = vrot.slane %v577_v50, 4  ;;  %v1128_v31 = vld [vmem:[#allocation7 + $0x18] sm:$0xff]  ;;  %v1271_v32 = vld [vmem:[#allocation8 + $0x18] sm:$0xff]  ;;  %v1127_v34 = vld [vmem:[#allocation7 + $0x10] sm:$0xff] }
  0xab   :  { %989 = vmatpush1.msra.mxu0 %v941_v56  ;;  %685 = vmatprep.mubr.f32.mxu0 %v3918_v0  ;;  %v798_v3 = vcombine.low %v779_v57, %v782_v58  ;;  %v944_v1 = vcombine.low %v4099_v25, %v4088_v22  ;;  %v945_v6 = vcombine.low %v4103_v26, %v4108_v29  ;;  %v1140_v26 = vld [vmem:[#allocation7 + $0x78] sm:$0xff]  ;;  %v1268_v39 = vld [vmem:[#allocation8] sm:$0xff]  ;;  %v1287_v44 = vld [vmem:[#allocation8 + $0x98] sm:$0xff]  ;;  %vm1819_vm0 = vcmask 1045509  }
  0xac   :  { %990 = vmatprep.subr.mxu0 %v940_v61  ;;  %v576_v49 = vrot.slane %v574_v35, 4  ;;  %v575_v56 = vsel %vm4220_vm9, %v573_v41, %v574_v35  ;;  %v3407_v19 = vcombine.high %v4108_v29, %v4112_v33  ;;  %v947_v20 = vcombine.low %v4136_v52, %v4155_v2  ;;  %v1283_v29 = vld [vmem:[#allocation8 + $0x78] sm:$0xff]  ;;  %1169 = vmatpush1.msra.mxu1 %v1140_v26  ;;  %v1139_v33 = vld [vmem:[#allocation7 + $0x70] sm:$0xff]  ;;  %v1282_v52 = vld [vmem:[#allocation8 + $0x70] sm:$0xff] }
  0xad   :  { %991 = vmatpush1.msra.mxu0 %v939_v5  ;;  %3402 = vmatmul.mubr.msk.f32.gmra.mxu1 %vm288_vm3, %v794_v63  ;;  %v583_v63 = vrot.slane %v4180_v27, 6  ;;  %v948_v22 = vcombine.low %v4147_v62, %v4163_v7  ;;  %v949_v25 = vcombine.low %v4166_v9, %v4180_v27  ;;  %v1138_v62 = vld [vmem:[#allocation7 + $0x68] sm:$0xff]  ;;  %v1281_v2 = vld [vmem:[#allocation8 + $0x68] sm:$0xff]  ;;  %v1137_v7 = vld [vmem:[#allocation7 + $0x60] sm:$0xff]  ;;  %vm1821_vm1 = vcmask 1046534  }
  0xae   :  { %3392 = vmatmul.mubr.msk.f32.gmra.mxu0 %vm288_vm3, %v595_v51  ;;  %895 = vmatprep.mubr.f32.mxu1 %v3918_v0  ;;  %v580_v51 = vrot.slane %v4166_v9, 6  ;;  %v578_v59 = vsel %vm4220_vm9, %v576_v49, %v577_v50  ;;  %v1280_v9 = vld [vmem:[#allocation8 + $0x60] sm:$0xff]  ;;  %v1136_v27 = vld [vmem:[#allocation7 + $0x58] sm:$0xff]  ;;  %v1143_v45 = vld [vmem:[#allocation7 + $0x90] sm:$0xff]  ;;  %vm1823_vm2 = vcmask 1047559   ;;  %vm1835_vm4 = vcmask 687104  }
  0xaf   :  { %691 = vmatprep.mubr.f32.mxu0 %v3918_v0  ;;  %992 = vmatprep.subr.mxu0 %v938_v23  ;;  %v599_v17 = vcombine.low %v575_v56, %v578_v59  ;;  %v1133_v23 = vld [vmem:[#allocation7 + $0x40] sm:$0xff]  ;;  %v1270_v35 = vld [vmem:[#allocation8 + $0x10] sm:$0xff]  ;;  %v1288_v41 = vld [vmem:[#allocation8 + $0xa0] sm:$0xff]  ;;  %vm2766_vm5 = vcmask 648192   ;;  %vm2979_vm7 = vcmask 130048   ;;  %vm2918_vm8 = vcmask 916480  }
  0xb0   :  { %993 = vmatpush1.msra.mxu0 %v937_v16  ;;  %v582_v61 = vrot.slane %v580_v51, 4  ;;  %v581_v54 = vsel %vm4220_vm9, %v579_v60, %v580_v51  ;;  %1170 = vmatprep.subr.mxu1 %v3918_v0  ;;  %v1131_v16 = vld [vmem:[#allocation7 + $0x30] sm:$0xff]  ;;  %v1144_v42 = vld [vmem:[#allocation7 + $0x98] sm:$0xff]  ;;  %v1142_v47 = vld [vmem:[#allocation7 + $0x88] sm:$0xff] }
  0xb1   :  { %3403 = vmatmul.mubr.msk.f32.gmra.mxu1 %vm288_vm3, %v795_v15  ;;  %994 = vmatprep.subr.mxu0 %v936_v30  ;;  %v1275_v15 = vld [vmem:[#allocation8 + $0x38] sm:$0xff]  ;;  %v1272_v30 = vld [vmem:[#allocation8 + $0x20] sm:$0xff]  ;;  %v1286_v46 = vld [vmem:[#allocation8 + $0x90] sm:$0xff] }
  0xb2   :  { %3393 = vmatmul.mubr.msk.f32.gmra.mxu0 %vm288_vm3, %v596_v10  ;;  %901 = vmatprep.mubr.f32.mxu1 %v3918_v0  ;;  %v584_v4 = vsel %vm4220_vm9, %v582_v61, %v583_v63  ;;  %v1278_v10 = vld [vmem:[#allocation8 + $0x50] sm:$0xff]  ;;  %v1285_v49 = vld [vmem:[#allocation8 + $0x88] sm:$0xff]  ;;  %v1141_v50 = vld [vmem:[#allocation7 + $0x80] sm:$0xff]  ;;  %vm2915_vm9 = vcmask 654336  }
  0xb3   :  { %697 = vmatprep.mubr.f32.mxu0 %v3918_v0  ;;  %995 = vmatpush1.msra.mxu0 %v935_v38  ;;  %v600_v5 = vcombine.low %v581_v54, %v584_v4  ;;  %v1125_v38 = vld [vmem:[#allocation7] sm:$0xff]  ;;  %v1284_v51 = vld [vmem:[#allocation8 + $0x80] sm:$0xff] }
  0xb4   :  { %1289 = vmatprep.subr.mxu0 %v3918_v0  ;;  %1171 = vmatpush1.msra.mxu1 %v1139_v33 }
  0xb5   :  { %3404 = vmatmul.mubr.msk.f32.gmra.mxu1 %vm288_vm3, %v796_v40  ;;  %1172 = vmatprep.subr.mxu1 %v3918_v0  ;;  %v1145_v40 = vld [vmem:[#allocation7 + $0xa0] sm:$0xff] }
  0xb6   :  { %3394 = vmatmul.mubr.msk.f32.gmra.mxu0 %vm288_vm3, %v597_v36  ;;  %907 = vmatprep.mubr.f32.mxu1 %v3918_v0  ;;  %v1126_v36 = vld [vmem:[#allocation7 + $0x8] sm:$0xff] }
  0xb7   :  { %703 = vmatprep.mubr.f32.mxu0 %v3918_v0  ;;  %1173 = vmatpush1.msra.mxu1 %v1138_v62 }
  0xb8   :  { %1174 = vmatprep.subr.mxu1 %v3918_v0 }
  0xb9   :  { %3405 = vmatmul.mubr.msk.f32.gmra.mxu1 %vm288_vm3, %v797_v55 }
  0xba   :  { %3395 = vmatmul.mubr.msk.f32.gmra.mxu0 %vm288_vm3, %v598_v53  ;;  %913 = vmatprep.mubr.f32.mxu1 %v3918_v0  ;;  %v1791_v53 = vld [vmem:[#allocation10 + $0x158] sm:$0xf] }
  0xbb   :  { %709 = vmatprep.mubr.f32.mxu0 %v3918_v0  ;;  %1175 = vmatpush1.msra.mxu1 %v1137_v7 }
  0xbc   :  { %1176 = vmatprep.subr.mxu1 %v3918_v0 }
  0xbd   :  { %3406 = vmatmul.mubr.msk.f32.gmra.mxu1 %vm288_vm3, %v798_v3 }
  0xbe   :  { %3396 = vmatmul.mubr.msk.f32.gmra.mxu0 %vm288_vm3, %v599_v17  ;;  %1177 = vmatpush1.msra.mxu1 %v1136_v27 }
  0xbf   :  { %715 = vmatprep.mubr.f32.mxu0 %v3918_v0  ;;  %1178 = vmatprep.subr.mxu1 %v3918_v0 }
  0xc0   :  { %1179 = vmatpush1.msra.mxu1 %v1135_v8 }
  0xc1   :  { %1180 = vmatprep.subr.mxu1 %v3918_v0 }
  0xc2   :  { %3397 = vmatmul.mubr.msk.f32.gmra.mxu0 %vm288_vm3, %v600_v5  ;;  %1181 = vmatpush1.msra.mxu1 %v1134_v11 }
  0xc3   :  { %1028 = vmatprep.mubr.f32.mxu0 %v3918_v0  ;;  %1182 = vmatprep.subr.mxu1 %v3918_v0 }
  0xc4   :  { %1183 = vmatpush1.msra.mxu1 %v1133_v23 }
  0xc5   :  { %1184 = vmatprep.subr.mxu1 %v3918_v0 }
  0xc6   :  { %3408 = vmatmul.mubr.msk.f32.vlgmr.msra.gmra.mxu0 %vm288_vm3, %v943_v43  ;;  %1185 = vmatpush1.msra.mxu1 %v1132_v14 }
  0xc7   :  { %1034 = vmatprep.mubr.f32.mxu0 %v3918_v0  ;;  %1290 = vmatpush1.msra.mxu0 %v1283_v29 }
  0xc8   :  { %1291 = vmatprep.subr.mxu0 %v3918_v0  ;;  %1186 = vmatprep.subr.mxu1 %v3918_v0 }
  0xc9   :  { %1292 = vmatpush1.msra.mxu0 %v1282_v52  ;;  %1187 = vmatpush1.msra.mxu1 %v1131_v16 }
  0xca   :  { %3409 = vmatmul.mubr.msk.f32.gmra.mxu0 %vm288_vm3, %v944_v1  ;;  %1293 = vmatprep.subr.mxu0 %v3918_v0 }
  0xcb   :  { %1040 = vmatprep.mubr.f32.mxu0 %v3918_v0  ;;  %1294 = vmatpush1.msra.mxu0 %v1281_v2 }
  0xcc   :  { %1295 = vmatprep.subr.mxu0 %v3918_v0  ;;  %1188 = vmatprep.subr.mxu1 %v3918_v0 }
  0xcd   :  { %1296 = vmatpush1.msra.mxu0 %v1280_v9  ;;  %1189 = vmatpush1.msra.mxu1 %v1130_v21 }
  0xce   :  { %3410 = vmatmul.mubr.msk.f32.gmra.mxu0 %vm288_vm3, %v945_v6  ;;  %1297 = vmatprep.subr.mxu0 %v3918_v0 }
  0xcf   :  { %1046 = vmatprep.mubr.f32.mxu0 %v3918_v0  ;;  %1298 = vmatpush1.msra.mxu0 %v1279_v48 }
  0xd0   :  { %1299 = vmatprep.subr.mxu0 %v3918_v0  ;;  %1190 = vmatprep.subr.mxu1 %v3918_v0 }
  0xd1   :  { %1300 = vmatpush1.msra.mxu0 %v1278_v10  ;;  %1191 = vmatpush1.msra.mxu1 %v1129_v28  ;;  %v1087_v28 = vlaneseq }
  0xd2   :  { %3411 = vmatmul.mubr.msk.f32.gmra.mxu0 %vm288_vm3, %v3407_v19  ;;  %1301 = vmatprep.subr.mxu0 %v3918_v0 }
  0xd3   :  { %1052 = vmatprep.mubr.f32.mxu0 %v3918_v0  ;;  %1302 = vmatpush1.msra.mxu0 %v1277_v12 }
  0xd4   :  { %1303 = vmatprep.subr.mxu0 %v3918_v0  ;;  %1192 = vmatprep.subr.mxu1 %v3918_v0 }
  0xd5   :  { %1304 = vmatpush1.msra.mxu0 %v1276_v13  ;;  %1193 = vmatpush1.msra.mxu1 %v1128_v31 }
  0xd6   :  { %3412 = vmatmul.mubr.msk.f32.gmra.mxu0 %vm288_vm3, %v947_v20  ;;  %1305 = vmatprep.subr.mxu0 %v3918_v0 }
  0xd7   :  { %1058 = vmatprep.mubr.f32.mxu0 %v3918_v0  ;;  %1306 = vmatpush1.msra.mxu0 %v1275_v15 }
  0xd8   :  { %1307 = vmatprep.subr.mxu0 %v3918_v0  ;;  %1194 = vmatprep.subr.mxu1 %v3918_v0 }
  0xd9   :  { %1308 = vmatpush1.msra.mxu0 %v1274_v18  ;;  %1195 = vmatpush1.msra.mxu1 %v1127_v34  ;;  %v4452_v34 = vshrl.u32 %v1087_v28, 7 }
  0xda   :  { %3413 = vmatmul.mubr.msk.f32.gmra.mxu0 %vm288_vm3, %v948_v22  ;;  %1309 = vmatprep.subr.mxu0 %v3918_v0 }
  0xdb   :  { %1064 = vmatprep.mubr.f32.mxu0 %v3918_v0  ;;  %1310 = vmatpush1.msra.mxu0 %v1273_v24 }
  0xdc   :  { %1311 = vmatprep.subr.mxu0 %v3918_v0  ;;  %1196 = vmatprep.subr.mxu1 %v3918_v0 }
  0xdd   :  { %1312 = vmatpush1.msra.mxu0 %v1272_v30  ;;  %1197 = vmatpush1.msra.mxu1 %v1126_v36 }
  0xde   :  { %3414 = vmatmul.mubr.msk.f32.gmra.mxu0 %vm288_vm3, %v949_v25  ;;  %1313 = vmatprep.subr.mxu0 %v3918_v0 }
  0xdf   :  { %1314 = vmatpush1.msra.mxu0 %v1271_v32  ;;  %1198 = vmatprep.subr.mxu1 %v3918_v0 }
  0xe0   :  { %1315 = vmatprep.subr.mxu0 %v3918_v0  ;;  %1199 = vmatpush1.msra.mxu1 %v1125_v38 }
  0xe1   :  { %1316 = vmatpush1.msra.mxu0 %v1270_v35  ;;  %1222 = vmatprep.subr.mxu1 %v3918_v0 }
  0xe2   :  { %1317 = vmatprep.subr.mxu0 %v3918_v0  ;;  %1223 = vmatpush2.msra.mxu1 %v1145_v40 }
  0xe3   :  { %1318 = vmatpush1.msra.mxu0 %v1269_v37  ;;  %1224 = vmatprep.subr.mxu1 %v3918_v0 }
  0xe4   :  { %1319 = vmatprep.subr.mxu0 %v3918_v0  ;;  %1225 = vmatpush2.msra.mxu1 %v1144_v42  ;;  %v1093_v42 = vsub.s32 1, %v4452_v34 }
  0xe5   :  { %1320 = vmatpush1.msra.mxu0 %v1268_v39  ;;  %1226 = vmatprep.subr.mxu1 %v3918_v0 }
  0xe6   :  { %1343 = vmatprep.subr.mxu0 %v3918_v0  ;;  %1227 = vmatpush2.msra.mxu1 %v1143_v45 }
  0xe7   :  { %1344 = vmatpush2.msra.mxu0 %v1288_v41  ;;  %1228 = vmatprep.subr.mxu1 %v3918_v0  ;;  %v5041_v41 = vsub.s32 0, %v4452_v34 }
  0xe8   :  { %1345 = vmatprep.subr.mxu0 %v3918_v0  ;;  %1229 = vmatpush2.msra.mxu1 %v1142_v47 }
  0xe9   :  { %1346 = vmatpush2.msra.mxu0 %v1287_v44  ;;  %1230 = vmatprep.subr.mxu1 %v3918_v0 }
  0xea   :  { %1347 = vmatprep.subr.mxu0 %v3918_v0  ;;  %1231 = vmatpush2.msra.mxu1 %v1141_v50 }
  0xeb   :  { %1348 = vmatpush2.msra.mxu0 %v1286_v46  ;;  %3429 = vmatprep.subr.msk.mxu1 %vm1842_vm10, %v1791_v53  ;;  %v1085_v46 = vld [vmem:[%s5025_s2] sm:$0x3] }
  0xec   :  { %1349 = vmatprep.subr.mxu0 %v3918_v0 }
  0xed   :  { %1350 = vmatpush2.msra.mxu0 %v1285_v49 }
  0xee   :  { %1351 = vmatprep.subr.mxu0 %v3918_v0 }
  0xef   :  { %1352 = vmatpush2.msra.mxu0 %v1284_v51 }
 0x149   :  { %v497_v55 = vpop.f32.mrf.mxu1 }
 0x14b   :  { %v499_v56 = vpop.f32.mrf.mxu1 }
 0x14d   :  { %v503_v57 = vpop.f32.mrf.mxu1 }
 0x14e   :  { %v369_v58 = vpop.f32.mrf.mxu0 }
 0x14f   :  { %v505_v59 = vpop.f32.mrf.mxu1  ;;  %v498_v35 = vadd.f32 %v497_v55, %v369_v58  ;;  %v4471_v58 = vrot.slane %v1085_v46, %v1093_v42 }
 0x150   :  { %v371_v60 = vpop.f32.mrf.mxu0 }
 0x151   :  { %v509_v61 = vpop.f32.mrf.mxu1  ;;  %v500_v38 = vadd.f32 %v499_v56, %v371_v60  ;;  %v4467_v56 = vrot.slane %v1085_v46, %v5041_v41 }
 0x152   :  { %v375_v63 = vpop.f32.mrf.mxu0 }
 0x153   :  { %v4416_v3 = vpop.f32.mrf.mxu1  ;;  %v504_v44 = vadd.f32 %v503_v57, %v375_v63 }
 0x154   :  { %v377_v17 = vpop.f32.mrf.mxu0 }
 0x155   :  { %v4418_v54 = vpop.f32.mrf.mxu1  ;;  %v506_v50 = vadd.f32 %v505_v59, %v377_v17 }
 0x156   :  { %v381_v4 = vpop.f32.mrf.mxu0 }
 0x157   :  { %v4420_v5 = vpop.f32.mrf.mxu1  ;;  %v510_v57 = vadd.f32 %v509_v61, %v381_v4 }
 0x158   :  { %v383_v43 = vpop.f32.mrf.mxu0 }
 0x159   :  { %v4422_v1 = vpop.f32.mrf.mxu1 }
 0x15a   :  { %v387_v6 = vpop.f32.mrf.mxu0 }
 0x15b   :  { %v4424_v19 = vpop.f32.mrf.mxu1 }
 0x15c   :  { %v4426_v20 = vpop.f32.mrf.mxu0 }
 0x15d   :  { %v4428_v22 = vpop.f32.mrf.mxu1  ;;  %v518_v4 = vadd.f32 %v4420_v5, %v4426_v20 }
 0x15e   :  { %v4430_v25 = vpop.f32.mrf.mxu0 }
 0x15f   :  { %v4432_v26 = vpop.f32.mrf.mxu1 }
 0x160   :  { %v4434_v29 = vpop.f32.mrf.mxu0 }
 0x161   :  { %v4438_v52 = vpop.f32.mrf.mxu1  ;;  %v524_v5 = vadd.f32 %v4424_v19, %v4434_v29 }
 0x162   :  { %v4436_v33 = vpop.f32.mrf.mxu0 }
 0x163   :  { %v4444_v7 = vpop.f32.mrf.mxu1 }
 0x164   :  { %v4440_v62 = vpop.f32.mrf.mxu0 }
 0x165   :  { %v879_v27 = vpop.f32.mrf.mxu1  ;;  %v530_v19 = vadd.f32 %v4432_v26, %v4440_v62 }
 0x166   :  { %v4442_v2 = vpop.f32.mrf.mxu0 }
 0x167   :  { %v881_v10 = vpop.f32.mrf.mxu1 }
 0x168   :  { %v4446_v9 = vpop.f32.mrf.mxu0 }
 0x169   :  { %v885_v23 = vpop.f32.mrf.mxu1  ;;  %v536_v62 = vadd.f32 %v4444_v7, %v4446_v9 }
 0x16a   :  { %v681_v48 = vpop.f32.mrf.mxu0 }
 0x16b   :  { %v887_v14 = vpop.f32.mrf.mxu1  ;;  %v722_v39 = vadd.f32 %v681_v48, %v498_v35  ;;  %v512_v35 = vadd.f32 %v4416_v3, %v383_v43 }
 0x16c   :  { %v683_v8 = vpop.f32.mrf.mxu0 }
 0x16d   :  { %v891_v18 = vpop.f32.mrf.mxu1  ;;  %v723_v45 = vadd.f32 %v683_v8, %v500_v38  ;;  %v920_v51 = vadd.f32 %v879_v27, %v722_v39 }
 0x16e   :  { %v687_v11 = vpop.f32.mrf.mxu0 }
 0x16f   :  { %v893_v30 = vpop.f32.mrf.mxu1  ;;  %v724_v53 = vadd.f32 %v687_v11, %v504_v44  ;;  %v921_v60 = vadd.f32 %v881_v10, %v723_v45  ;;  %v516_v11 = vadd.f32 %v4418_v54, %v387_v6  ;;  %v522_v54 = vadd.f32 %v4422_v1, %v4430_v25 }
 0x170   :  { %v689_v12 = vpop.f32.mrf.mxu0  ;;  %v528_v1 = vadd.f32 %v4428_v22, %v4436_v33 }
 0x171   :  { %v897_v36 = vpop.f32.mrf.mxu1  ;;  %v725_v63 = vadd.f32 %v689_v12, %v506_v50  ;;  %v922_v59 = vadd.f32 %v885_v23, %v724_v53 }
 0x172   :  { %v693_v13 = vpop.f32.mrf.mxu0 }
 0x173   :  { %v899_v47 = vpop.f32.mrf.mxu1  ;;  %v726_v17 = vadd.f32 %v693_v13, %v510_v57  ;;  %v923_v44 = vadd.f32 %v887_v14, %v725_v63 }
 0x174   :  { %v695_v15 = vpop.f32.mrf.mxu0 }
 0x175   :  { %v903_v8 = vpop.f32.mrf.mxu1  ;;  %v727_v41 = vadd.f32 %v695_v15, %v512_v35  ;;  %v924_v45 = vadd.f32 %v891_v18, %v726_v17 }
 0x176   :  { %v699_v16 = vpop.f32.mrf.mxu0 }
 0x177   :  { %v905_v10 = vpop.f32.mrf.mxu1  ;;  %v728_v3 = vadd.f32 %v699_v16, %v516_v11  ;;  %v925_v13 = vadd.f32 %v893_v30, %v727_v41 }
 0x178   :  { %v701_v21 = vpop.f32.mrf.mxu0 }
 0x179   :  { %v729_v14 = vadd.f32 %v701_v21, %v518_v4  ;;  %v909_v20 = vpop.f32.mrf.mxu1  ;;  %v926_v16 = vadd.f32 %v897_v36, %v728_v3 }
 0x17a   :  { %v705_v24 = vpop.f32.mrf.mxu0 }
 0x17b   :  { %v927_v21 = vadd.f32 %v899_v47, %v729_v14  ;;  %v911_v29 = vpop.f32.mrf.mxu1 }
 0x17c   :  { %v4448_v31 = vpop.f32.mrf.mxu0 }
 0x17d   :  { %v731_v41 = vadd.f32 %v4448_v31, %v524_v5  ;;  %v534_v31 = vadd.f32 %v4438_v52, %v4442_v2 }
 0x17e   :  { %v4450_v32 = vpop.f32.mrf.mxu0 }
 0x180   :  { %v4454_v37 = vpop.f32.mrf.mxu0 }
 0x181   :  { %v733_v33 = vadd.f32 %v4454_v37, %v530_v19  ;;  %v2065_v19 = vld [vmem:[#allocation10 + $0x1f0] sm:$0xff] }
 0x182   :  { %v4456_v40 = vpop.f32.mrf.mxu0 }
 0x183   :  { %v734_v37 = vadd.f32 %v4456_v40, %v534_v31  ;;  %v1781_v31 = vld [vmem:[#allocation10 + $0x108] sm:$0xff] }
 0x184   :  { %v4463_v49 = vpop.f32.mrf.mxu0 }
 0x186   :  { %v1030_v55 = vpop.f32.mrf.mxu0 }
 0x187   :  { %v1071_v48 = vadd.f32 %v1030_v55, %v920_v51  ;;  %v730_v51 = vadd.f32 %v705_v24, %v522_v54 }
 0x188   :  { %v1032_v28 = vpop.f32.mrf.mxu0 }
 0x189   :  { %v1072_v27 = vadd.f32 %v1032_v28, %v921_v60  ;;  %v1097_v38 = vadd.f32 %v4467_v56, %v1071_v48  ;;  %v928_v36 = vadd.f32 %v903_v8, %v730_v51  ;;  %v732_v60 = vadd.f32 %v4450_v32, %v528_v1  ;;  %v915_v8 = vpop.f32.mrf.mxu1  ;;  %v1790_v51 = vld [vmem:[#allocation10 + $0x150] sm:$0xf]  ;;  %v1788_v1 = vld [vmem:[#allocation10 + $0x140] sm:$0xff] }
 0x18a   :  { %v1036_v39 = vpop.f32.mrf.mxu0  ;;  %v929_v48 = vadd.f32 %v905_v10, %v731_v41  ;;  %v1786_v41 = vld [vmem:[#allocation10 + $0x130] sm:$0xff] }
 0x18b   :  { %v1098_v46 = vadd.f32 %v4471_v58, %v1072_v27  ;;  %v1073_v61 = vadd.f32 %v1036_v39, %v922_v59  ;;  %v930_v35 = vadd.f32 %v909_v20, %v732_v60  ;;  %v931_v27 = vadd.f32 %v911_v29, %v733_v33  ;;  %v917_v9 = vpop.f32.mrf.mxu1  ;;  %v2064_v29 = vld [vmem:[#allocation10 + $0x1e8] sm:$0xff]  ;;  %v1783_v60 = vld [vmem:[#allocation10 + $0x118] sm:$0xff] }
 0x18c   :  { %v1038_v12 = vpop.f32.mrf.mxu0  ;;  %v2062_v33 = vld [vmem:[#allocation10 + $0x1d8] sm:$0xff] }
 0x18d   :  { %3624 = vtanh.f32 %v1098_v46  ;;  %v1074_v43 = vadd.f32 %v1038_v12, %v923_v44  ;;  %v1099_v6 = vadd.f32 %v4467_v56, %v1073_v61  ;;  %v932_v44 = vadd.f32 %v915_v8, %v734_v37  ;;  %v2057_v8 = vld [vmem:[#allocation10 + $0x1b0] sm:$0xff]  ;;  %v1777_v37 = vld [vmem:[#allocation10 + $0xe8] sm:$0xff] }
 0x18e   :  { %3626 = vtanh.f32 %v1097_v38  ;;  %v1042_v23 = vpop.f32.mrf.mxu0  ;;  %v735_v38 = vadd.f32 %v4463_v49, %v536_v62  ;;  %v2058_v62 = vld [vmem:[#allocation10 + $0x1b8] sm:$0xff] }
 0x18f   :  { %v1100_v15 = vadd.f32 %v4471_v58, %v1074_v43  ;;  %v1075_v50 = vadd.f32 %v1042_v23, %v924_v45 }
 0x190   :  { %v1044_v18 = vpop.f32.mrf.mxu0  ;;  %v933_v12 = vadd.f32 %v917_v9, %v735_v38  ;;  %v2052_v38 = vld [vmem:[#allocation10 + $0x188] sm:$0xff]  ;;  %v1772_v9 = vld [vmem:[#allocation10 + $0xc0] sm:$0xff] }
 0x191   :  { %3628 = vtanh.f32 %v1100_v15  ;;  %v1076_v53 = vadd.f32 %v1044_v18, %v925_v13  ;;  %v1101_v25 = vadd.f32 %v4467_v56, %v1075_v50 }
 0x192   :  { %3630 = vtanh.f32 %v1099_v6  ;;  %v1048_v30 = vpop.f32.mrf.mxu0 }
 0x193   :  { %v1102_v55 = vadd.f32 %v4471_v58, %v1076_v53  ;;  %v1077_v57 = vadd.f32 %v1048_v30, %v926_v16  ;;  %v1789_v53 = vld [vmem:[#allocation10 + $0x148] sm:$0xff]  ;;  %v2067_v30 = vld [vmem:[#allocation10 + $0x200] sm:$0xf] }
 0x194   :  { %v1050_v24 = vpop.f32.mrf.mxu0 }
 0x195   :  { %3632 = vtanh.f32 %v1102_v55  ;;  %v1078_v22 = vadd.f32 %v1050_v24, %v927_v21  ;;  %v1103_v47 = vadd.f32 %v4467_v56, %v1077_v57  ;;  %v1787_v21 = vld [vmem:[#allocation10 + $0x138] sm:$0xff]  ;;  %v1785_v55 = vld [vmem:[#allocation10 + $0x128] sm:$0xff]  ;;  %v2063_v24 = vld [vmem:[#allocation10 + $0x1e0] sm:$0xff] }
 0x196   :  { %3634 = vtanh.f32 %v1101_v25  ;;  %v1054_v63 = vpop.f32.mrf.mxu0  ;;  %v2068_v25 = vld [vmem:[#allocation10 + $0x208] sm:$0xf]  ;;  %v2066_v57 = vld [vmem:[#allocation10 + $0x1f8] sm:$0xff] }
 0x197   :  { %v1104_v28 = vadd.f32 %v4471_v58, %v1078_v22  ;;  %v1079_v26 = vadd.f32 %v1054_v63, %v928_v36  ;;  %3439 = vmatprep.subr.msk.mxu0 %vm1842_vm10, %v2068_v25  ;;  %v1784_v36 = vld [vmem:[#allocation10 + $0x120] sm:$0xff]  ;;  %v1782_v22 = vld [vmem:[#allocation10 + $0x110] sm:$0xff]  ;;  %v2060_v63 = vld [vmem:[#allocation10 + $0x1c8] sm:$0xff] }
 0x198   :  { %v1056_v32 = vpop.f32.mrf.mxu0 }
 0x199   :  { %3636 = vtanh.f32 %v1104_v28  ;;  %v1080_v59 = vadd.f32 %v1056_v32, %v929_v48  ;;  %v1105_v52 = vadd.f32 %v4467_v56, %v1079_v26  ;;  %v2059_v48 = vld [vmem:[#allocation10 + $0x1c0] sm:$0xff]  ;;  %v1779_v26 = vld [vmem:[#allocation10 + $0xf8] sm:$0xff]  ;;  %v1778_v32 = vld [vmem:[#allocation10 + $0xf0] sm:$0xff] }
 0x19a   :  { %v3625_v17 = vpop.eup %3624  ;;  %3638 = vtanh.f32 %v1103_v47  ;;  %v1060_v2 = vpop.f32.mrf.mxu0  ;;  %v2061_v47 = vld [vmem:[#allocation10 + $0x1d0] sm:$0xff]  ;;  %v1780_v28 = vld [vmem:[#allocation10 + $0x100] sm:$0xff] }
 0x19b   :  { %v3627_v11 = vpop.eup %3626  ;;  %v1106_v39 = vadd.f32 %v4471_v58, %v1080_v59  ;;  %v1081_v7 = vadd.f32 %v1060_v2, %v930_v35  ;;  %3415 = vmatprep.mubr.msk.f32.mxu1 %vm1146_vm11, %v3625_v17  ;;  %3422 = vmatprep.mubr.msk.f32.mxu0 %vm1146_vm11, %v3625_v17  ;;  %v2056_v35 = vld [vmem:[#allocation10 + $0x1a8] sm:$0xff]  ;;  %v2055_v59 = vld [vmem:[#allocation10 + $0x1a0] sm:$0xff]  ;;  %v2053_v2 = vld [vmem:[#allocation10 + $0x190] sm:$0xff] }
 0x19c   :  { %v1062_v40 = vpop.f32.mrf.mxu0  ;;  %1233 = vmatmul.mubr.f32.vlgmr.msra.gmra.mxu1 %v3627_v11  ;;  %1354 = vmatmul.mubr.f32.vlgmr.msra.gmra.mxu0 %v3627_v11  ;;  %v1776_v17 = vld [vmem:[#allocation10 + $0xe0] sm:$0xff]  ;;  %v1774_v11 = vld [vmem:[#allocation10 + $0xd0] sm:$0xff] }
 0x19d   :  { %3640 = vtanh.f32 %v1106_v39  ;;  %v1082_v46 = vadd.f32 %v1062_v40, %v931_v27  ;;  %v1107_v4 = vadd.f32 %v4467_v56, %v1081_v7  ;;  %3430 = vmatpush1.msk.msra.mxu1 %vm1842_vm10, %v1790_v51  ;;  %3440 = vmatpush1.msk.msra.mxu0 %vm1842_vm10, %v2067_v30  ;;  %v2054_v27 = vld [vmem:[#allocation10 + $0x198] sm:$0xff]  ;;  %v1773_v39 = vld [vmem:[#allocation10 + $0xc8] sm:$0xff]  ;;  %v2051_v7 = vld [vmem:[#allocation10 + $0x180] sm:$0xff] }
 0x19e   :  { %v3629_v61 = vpop.eup %3628  ;;  %3642 = vtanh.f32 %v1105_v52  ;;  %v1066_v10 = vpop.f32.mrf.mxu0  ;;  %1861 = vmatprep.subr.mxu1 %v1789_v53  ;;  %2112 = vmatprep.subr.mxu0 %v2066_v57  ;;  %v1775_v52 = vld [vmem:[#allocation10 + $0xd8] sm:$0xff] }
 0x19f   :  { %v3631_v49 = vpop.eup %3630  ;;  %v1108_v45 = vadd.f32 %v4471_v58, %v1082_v46  ;;  %v1083_v3 = vadd.f32 %v1066_v10, %v932_v44  ;;  %3416 = vmatprep.mubr.msk.f32.mxu1 %vm1146_vm11, %v3629_v61  ;;  %3423 = vmatprep.mubr.msk.f32.mxu0 %vm1146_vm11, %v3629_v61  ;;  %v2050_v40 = vld [vmem:[#allocation10 + $0x178] sm:$0xff]  ;;  %v2049_v46 = vld [vmem:[#allocation10 + $0x170] sm:$0xff]  ;;  %v1768_v10 = vld [vmem:[#allocation10 + $0xa8] sm:$0xf] }
 0x1a0   :  { %v1068_v43 = vpop.f32.mrf.mxu0  ;;  %1238 = vmatmul.mubr.f32.gmra.mxu1 %v3631_v49  ;;  %1359 = vmatmul.mubr.f32.gmra.mxu0 %v3631_v49  ;;  %v1771_v44 = vld [vmem:[#allocation10 + $0xb8] sm:$0xff]  ;;  %v1770_v61 = vld [vmem:[#allocation10 + $0xb0] sm:$0xff]  ;;  %v2047_v49 = vld [vmem:[#allocation10 + $0x160] sm:$0xff] }
 0x1a1   :  { %3644 = vtanh.f32 %v1108_v45  ;;  %v1084_v54 = vadd.f32 %v1068_v43, %v933_v12  ;;  %v1109_v23 = vadd.f32 %v4467_v56, %v1083_v3  ;;  %1862 = vmatpush1.msra.mxu1 %v1788_v1  ;;  %2113 = vmatpush1.msra.mxu0 %v2065_v19  ;;  %v2354_v12 = vld [vmem:[#allocation10 + $0x368] sm:$0xf]  ;;  %v3919_v45 = vmov 1983009808  }
 0x1a2   :  { %v3633_v6 = vpop.eup %3632  ;;  %3646 = vtanh.f32 %v1107_v4  ;;  %1863 = vmatprep.subr.mxu1 %v1787_v21  ;;  %2114 = vmatprep.subr.mxu0 %v2064_v29  ;;  %v2048_v4 = vld [vmem:[#allocation10 + $0x168] sm:$0xff]  ;;  %v1405_v3 = vunpack.c.l.s4 %v3919_v45 }
 0x1a3   :  { %v3635_v13 = vpop.eup %3634  ;;  %v1110_v14 = vadd.f32 %v4471_v58, %v1084_v54  ;;  %3417 = vmatprep.mubr.msk.f32.mxu1 %vm1146_vm11, %v3633_v6  ;;  %3424 = vmatprep.mubr.msk.f32.mxu0 %vm1146_vm11, %v3633_v6 }
 0x1a4   :  { %1243 = vmatmul.mubr.f32.gmra.mxu1 %v3635_v13  ;;  %1364 = vmatmul.mubr.f32.gmra.mxu0 %v3635_v13  ;;  %v1406_v43 = vunpack.c.0.s8 %v1405_v3 }
 0x1a5   :  { %3648 = vtanh.f32 %v1110_v14  ;;  %1864 = vmatpush1.msra.mxu1 %v1786_v41  ;;  %2115 = vmatpush1.msra.mxu0 %v2063_v24 }
 0x1a6   :  { %v3637_v15 = vpop.eup %3636  ;;  %3650 = vtanh.f32 %v1109_v23  ;;  %1865 = vmatprep.subr.mxu1 %v1785_v55  ;;  %2116 = vmatprep.subr.mxu0 %v2062_v33  ;;  %v4530_v54 = vsub.s32 %v1406_v43, %v4452_v34 }
 0x1a7   :  { %v3639_v50 = vpop.eup %3638  ;;  %3418 = vmatprep.mubr.msk.f32.mxu1 %vm1146_vm11, %v3637_v15  ;;  %3425 = vmatprep.mubr.msk.f32.mxu0 %vm1146_vm11, %v3637_v15 }
 0x1a8   :  { %1248 = vmatmul.mubr.f32.gmra.mxu1 %v3639_v50  ;;  %1369 = vmatmul.mubr.f32.gmra.mxu0 %v3639_v50 }
 0x1a9   :  { %1866 = vmatpush1.msra.mxu1 %v1784_v36  ;;  %2117 = vmatpush1.msra.mxu0 %v2061_v47 }
 0x1aa   :  { %v3641_v56 = vpop.eup %3640  ;;  %1867 = vmatprep.subr.mxu1 %v1783_v60  ;;  %2118 = vmatprep.subr.mxu0 %v2060_v63 }
 0x1ab   :  { %v3643_v5 = vpop.eup %3642  ;;  %3419 = vmatprep.mubr.msk.f32.mxu1 %vm1146_vm11, %v3641_v56  ;;  %3426 = vmatprep.mubr.msk.f32.mxu0 %vm1146_vm11, %v3641_v56 }
 0x1ac   :  { %1253 = vmatmul.mubr.f32.gmra.mxu1 %v3643_v5  ;;  %1374 = vmatmul.mubr.f32.gmra.mxu0 %v3643_v5 }
 0x1ad   :  { %1868 = vmatpush1.msra.mxu1 %v1782_v22  ;;  %2119 = vmatpush1.msra.mxu0 %v2059_v48 }
 0x1ae   :  { %v3645_v58 = vpop.eup %3644  ;;  %1869 = vmatprep.subr.mxu1 %v1781_v31  ;;  %2120 = vmatprep.subr.mxu0 %v2058_v62 }
 0x1af   :  { %v3647_v20 = vpop.eup %3646  ;;  %3420 = vmatprep.mubr.msk.f32.mxu1 %vm1146_vm11, %v3645_v58  ;;  %3427 = vmatprep.mubr.msk.f32.mxu0 %vm1146_vm11, %v3645_v58 }
 0x1b0   :  { %1258 = vmatmul.mubr.f32.gmra.mxu1 %v3647_v20  ;;  %1379 = vmatmul.mubr.f32.gmra.mxu0 %v3647_v20 }
 0x1b1   :  { %1870 = vmatpush1.msra.mxu1 %v1780_v28  ;;  %2121 = vmatpush1.msra.mxu0 %v2057_v8 }
 0x1b2   :  { %v3649_v18 = vpop.eup %3648  ;;  %1871 = vmatprep.subr.mxu1 %v1779_v26  ;;  %2122 = vmatprep.subr.mxu0 %v2056_v35 }
 0x1b3   :  { %v3651_v16 = vpop.eup %3650  ;;  %3421 = vmatprep.mubr.msk.f32.mxu1 %vm1146_vm11, %v3649_v18  ;;  %3428 = vmatprep.mubr.msk.f32.mxu0 %vm1146_vm11, %v3649_v18  ;;  %vm3145_vm11 = vcmask 982016  }
 0x1b4   :  { %1263 = vmatmul.mubr.f32.gmra.mxu1 %v3651_v16  ;;  %1384 = vmatmul.mubr.f32.gmra.mxu0 %v3651_v16 }
 0x1b5   :  { %1913 = vmatprep.mubr.f32.mxu1 %v3918_v0  ;;  %2164 = vmatprep.mubr.f32.mxu0 %v3918_v0 }
 0x1b6   :  { %1872 = vmatpush1.msra.mxu1 %v1778_v32  ;;  %2123 = vmatpush1.msra.mxu0 %v2055_v59 }
 0x1b7   :  { %1873 = vmatprep.subr.mxu1 %v1777_v37  ;;  %2124 = vmatprep.subr.mxu0 %v2054_v27 }
 0x1b8   :  { %1874 = vmatpush1.msra.mxu1 %v1776_v17  ;;  %2125 = vmatpush1.msra.mxu0 %v2053_v2 }
 0x1b9   :  { %1875 = vmatprep.subr.mxu1 %v1775_v52  ;;  %2126 = vmatprep.subr.mxu0 %v2052_v38 }
 0x1ba   :  { %1876 = vmatpush1.msra.mxu1 %v1774_v11  ;;  %2127 = vmatpush1.msra.mxu0 %v2051_v7 }
 0x1bb   :  { %1877 = vmatprep.subr.mxu1 %v1773_v39  ;;  %2128 = vmatprep.subr.mxu0 %v2050_v40 }
 0x1bc   :  { %1878 = vmatpush1.msra.mxu1 %v1772_v9  ;;  %2129 = vmatpush1.msra.mxu0 %v2049_v46 }
 0x1bd   :  { %1879 = vmatprep.subr.mxu1 %v1771_v44  ;;  %2130 = vmatprep.subr.mxu0 %v2048_v4 }
 0x1be   :  { %1880 = vmatpush1.msra.mxu1 %v1770_v61  ;;  %2131 = vmatpush1.msra.mxu0 %v2047_v49 }
 0x1bf   :  { %3434 = vmatprep.subr.msk.mxu1 %vm1842_vm10, %v1768_v10  ;;  %3449 = vmatprep.subr.msk.mxu0 %vm1842_vm10, %v2354_v12 }
 0x25c   :  { %v1234_v6 = vpop.f32.mrf.mxu1  ;;  %v1355_v23 = vpop.f32.mrf.mxu0 }
 0x25d   :  { %v1389_v13 = vmax.f32 %v1234_v6, %v1355_v23 }
 0x25e   :  { %v1236_v14 = vpop.f32.mrf.mxu1  ;;  %v1357_v15 = vpop.f32.mrf.mxu0 }
 0x25f   :  { %v1403_v50 = vcombine.high %v1389_v13, %v1389_v13  ;;  %v1410_v56 = vrot.slane %v1389_v13, %v4530_v54 }
 0x260   :  { %v1239_v5 = vpop.f32.mrf.mxu1  ;;  %v1360_v58 = vpop.f32.mrf.mxu0 }
 0x261   :  { %v1417_v20 = vrot.slane %v1403_v50, %v4530_v54  ;;  %v1418_v18 = vcombine.high %v1410_v56, %v1410_v56  ;;  %v1390_v16 = vmax.f32 %v1239_v5, %v1360_v58  ;;  %v1551_v60 = vsel %vm1550_vm12, %v1410_v56, -inf }
 0x262   :  { %v1241_v51 = vpop.f32.mrf.mxu1  ;;  %v1362_v53 = vpop.f32.mrf.mxu0  ;;  %v1552_v8 = vrot.slane %v1551_v60, 4 }
 0x263   :  { %v1419_v1 = vcombine.high %v1417_v20, %v1417_v20  ;;  %v1558_v25 = vsel %vm1550_vm12, %v1418_v18, -inf  ;;  %v1565_v30 = vsel %vm1550_vm12, %v1417_v20, -inf  ;;  %v1420_v21 = vcombine.high %v1390_v16, %v1390_v16 }
 0x264   :  { %v1559_v41 = vrot.slane %v1558_v25, 4  ;;  %v1566_v55 = vrot.slane %v1565_v30, 4  ;;  %v1427_v57 = vrot.slane %v1390_v16, %v4530_v54  ;;  %v1244_v19 = vpop.f32.mrf.mxu1  ;;  %v1365_v29 = vpop.f32.mrf.mxu0  ;;  %v1553_v40 = vmax.f32 %v1551_v60, %v1552_v8 }
 0x265   :  { %v1572_v24 = vsel %vm1550_vm12, %v1419_v1, -inf  ;;  %v1434_v36 = vrot.slane %v1420_v21, %v4530_v54  ;;  %v1391_v17 = vmax.f32 %v1244_v19, %v1365_v29 }
 0x266   :  { %v1560_v22 = vmax.f32 %v1558_v25, %v1559_v41  ;;  %v1567_v33 = vmax.f32 %v1565_v30, %v1566_v55  ;;  %v1246_v47 = vpop.f32.mrf.mxu1  ;;  %v1367_v63 = vpop.f32.mrf.mxu0  ;;  %v1573_v31 = vrot.slane %v1572_v24, 4  ;;  %v1435_v48 = vcombine.high %v1427_v57, %v1427_v57 }
 0x267   :  { %v1579_v28 = vsel %vm1550_vm12, %v1427_v57, -inf  ;;  %v1593_v32 = vsel %vm1550_vm12, %v1434_v36, -inf  ;;  %v1436_v59 = vcombine.high %v1434_v36, %v1434_v36  ;;  %v1437_v4 = vcombine.high %v1391_v17, %v1391_v17 }
 0x268   :  { %v1249_v26 = vpop.f32.mrf.mxu1  ;;  %v1370_v62 = vpop.f32.mrf.mxu0  ;;  %v1561_v35 = vrot.slane %v1560_v22, 2  ;;  %v1568_v37 = vrot.slane %v1567_v33, 2  ;;  %v1574_v2 = vmax.f32 %v1572_v24, %v1573_v31  ;;  %v1580_v11 = vrot.slane %v1579_v28, 4 }
 0x269   :  { %v1586_v38 = vsel %vm1550_vm12, %v1435_v48, -inf  ;;  %v1594_v39 = vrot.slane %v1593_v32, 4  ;;  %v1600_v61 = vsel %vm1550_vm12, %v1436_v59, -inf  ;;  %v1444_v6 = vrot.slane %v1391_v17, %v4530_v54 }
 0x26a   :  { %v1251_v27 = vpop.f32.mrf.mxu1  ;;  %v1372_v52 = vpop.f32.mrf.mxu0  ;;  %v1562_v44 = vmax.f32 %v1560_v22, %v1561_v35  ;;  %v1569_v46 = vmax.f32 %v1567_v33, %v1568_v37  ;;  %v1575_v12 = vrot.slane %v1574_v2, 2  ;;  %v1581_v45 = vmax.f32 %v1579_v28, %v1580_v11 }
 0x26b   :  { %v1587_v3 = vrot.slane %v1586_v38, 4  ;;  %v1595_v43 = vmax.f32 %v1593_v32, %v1594_v39  ;;  %v1554_v14 = vrot.slane %v1553_v40, 2  ;;  %v1601_v15 = vrot.slane %v1600_v61, 4 }
 0x26c   :  { %v1254_v7 = vpop.f32.mrf.mxu1  ;;  %v1375_v9 = vpop.f32.mrf.mxu0  ;;  %v1563_v50 = vrot.slane %v1562_v44, 1  ;;  %v1570_v56 = vrot.slane %v1569_v46, 1  ;;  %v1451_v5 = vrot.slane %v1437_v4, %v4530_v54  ;;  %v1576_v18 = vmax.f32 %v1574_v2, %v1575_v12 }
 0x26d   :  { %v1582_v16 = vrot.slane %v1581_v45, 2  ;;  %v1588_v51 = vmax.f32 %v1586_v38, %v1587_v3  ;;  %v1452_v53 = vcombine.high %v1444_v6, %v1444_v6  ;;  %v1596_v1 = vrot.slane %v1595_v43, 2 }
 0x26e   :  { %v1256_v10 = vpop.f32.mrf.mxu1  ;;  %v1377_v49 = vpop.f32.mrf.mxu0  ;;  %v1453_v25 = vcombine.high %v1451_v5, %v1451_v5  ;;  %v1607_v30 = vsel %vm1550_vm12, %v1444_v6, -inf  ;;  %v1555_v55 = vmax.f32 %v1553_v40, %v1554_v14  ;;  %v1602_v57 = vmax.f32 %v1600_v61, %v1601_v15 }
 0x26f   :  { %v1621_v19 = vsel %vm1550_vm12, %v1451_v5, -inf  ;;  %v4556_v29 = vmax.f32 %v1562_v44, %v1563_v50  ;;  %v4558_v24 = vmax.f32 %v1569_v46, %v1570_v56  ;;  %v1608_v36 = vrot.slane %v1607_v30, 4 }
 0x270   :  { %v4545_v23 = vpop.f32.mrf.mxu1  ;;  %v4547_v13 = vpop.f32.mrf.mxu0  ;;  %v1392_v60 = vmax.f32 %v1249_v26, %v1370_v62  ;;  %v1577_v47 = vrot.slane %v1576_v18, 1  ;;  %v1583_v63 = vmax.f32 %v1581_v45, %v1582_v16  ;;  %v1589_v31 = vrot.slane %v1588_v51, 2 }
 0x271   :  { %v1614_v48 = vsel %vm1550_vm12, %v1452_v53, -inf  ;;  %v1597_v28 = vmax.f32 %v1595_v43, %v1596_v1  ;;  %v1622_v8 = vrot.slane %v1621_v19, 4  ;;  %v1628_v32 = vsel %vm1550_vm12, %v1453_v25, -inf }
 0x272   :  { %v1261_v58 = vpop.f32.mrf.mxu1  ;;  %v1382_v20 = vpop.f32.mrf.mxu0  ;;  %v1454_v35 = vcombine.high %v1392_v60, %v1392_v60  ;;  %v1603_v37 = vrot.slane %v1602_v57, 2  ;;  %v1393_v59 = vmax.f32 %v1254_v7, %v1375_v9  ;;  %v1556_v17 = vrot.slane %v1555_v55, 1 }
 0x273   :  { %v1609_v27 = vmax.f32 %v1607_v30, %v1608_v36  ;;  %v1615_v52 = vrot.slane %v1614_v48, 4  ;;  %v4563_v62 = vmax.f32 %v1576_v18, %v1577_v47  ;;  %v1813_v2 = vsel %vm1812_vm13, %v4558_v24, %v4556_v29 }
 0x274   :  { %v4551_v21 = vpop.f32.mrf.mxu1  ;;  %v4553_v41 = vpop.f32.mrf.mxu0  ;;  %v1468_v26 = vrot.slane %v1454_v35, %v4530_v54  ;;  %v1584_v11 = vrot.slane %v1583_v63, 1  ;;  %v1629_v38 = vrot.slane %v1628_v32, 4  ;;  %v1590_v39 = vmax.f32 %v1588_v51, %v1589_v31 }
 0x275   :  { %v1598_v40 = vrot.slane %v1597_v28, 1  ;;  %v1623_v44 = vmax.f32 %v1621_v19, %v1622_v8  ;;  %v1461_v46 = vrot.slane %v1392_v60, %v4530_v54  ;;  %v1604_v61 = vmax.f32 %v1602_v57, %v1603_v37 }
 0x276   :  { %v1266_v22 = vpop.f32.mrf.mxu1  ;;  %v1387_v33 = vpop.f32.mrf.mxu0  ;;  %v1471_v7 = vcombine.high %v1393_v59, %v1393_v59  ;;  %v4569_v9 = vmax.f32 %v1555_v55, %v1556_v17  ;;  %v1610_v4 = vrot.slane %v1609_v27, 2  ;;  %v1616_v10 = vmax.f32 %v1614_v48, %v1615_v52 }
 0x277   :  { %v1470_v49 = vcombine.high %v1468_v26, %v1468_v26  ;;  %v4573_v12 = vsel %vm1814_vm14, %v4563_v62, %v1813_v2  ;;  %v4578_v45 = vsel %vm1812_vm13, %v4563_v62, %v4558_v24  ;;  %v4580_v3 = vmax.f32 %v1583_v63, %v1584_v11 }
 0x278   :  { %v1630_v43 = vmax.f32 %v1628_v32, %v1629_v38  ;;  %v1591_v6 = vrot.slane %v1590_v39, 1  ;;  %v4582_v14 = vmax.f32 %v1597_v28, %v1598_v40  ;;  %v1624_v15 = vrot.slane %v1623_v44, 2 }
 0x279   :  { %v1469_v50 = vcombine.high %v1461_v46, %v1461_v46  ;;  %v1605_v56 = vrot.slane %v1604_v61, 1  ;;  %v1635_v5 = vsel %vm1550_vm12, %v1461_v46, -inf  ;;  %v1478_v58 = vrot.slane %v1393_v59, %v4530_v54 }
 0x27a   :  { %v1485_v20 = vrot.slane %v1471_v7, %v4530_v54  ;;  %v1611_v18 = vmax.f32 %v1609_v27, %v1610_v4  ;;  %v1617_v16 = vrot.slane %v1616_v10, 2  ;;  %v1656_v51 = vsel %vm1550_vm12, %v1470_v49, -inf }
 0x27b   :  { %v1394_v53 = vmax.f32 %v4545_v23, %v4547_v13  ;;  %v1631_v1 = vrot.slane %v1630_v43, 2  ;;  %v1486_v25 = vcombine.high %v1478_v58, %v1478_v58  ;;  %v1663_v55 = vsel %vm1550_vm12, %v1478_v58, -inf }
 0x27c   :  { %v1487_v30 = vcombine.high %v1485_v20, %v1485_v20  ;;  %v1625_v57 = vmax.f32 %v1623_v44, %v1624_v15  ;;  %v1636_v19 = vrot.slane %v1635_v5, 4  ;;  %v1642_v36 = vsel %vm1550_vm12, %v1469_v50, -inf }
 0x27d   :  { %v1664_v60 = vrot.slane %v1663_v55, 4  ;;  %v1649_v22 = vsel %vm1550_vm12, %v1468_v26, -inf  ;;  %v1657_v33 = vrot.slane %v1656_v51, 4  ;;  %v1670_v47 = vsel %vm1550_vm12, %v1486_v25, -inf }
 0x27e   :  { %v1677_v63 = vsel %vm1550_vm12, %v1485_v20, -inf  ;;  %v1612_v31 = vrot.slane %v1611_v18, 1  ;;  %v1618_v48 = vmax.f32 %v1616_v10, %v1617_v16  ;;  %v1684_v13 = vsel %vm1550_vm12, %v1487_v30, -inf }
 0x27f   :  { %v1665_v23 = vmax.f32 %v1663_v55, %v1664_v60  ;;  %v1632_v28 = vmax.f32 %v1630_v43, %v1631_v1  ;;  %v1643_v8 = vrot.slane %v1642_v36, 4  ;;  %v1671_v32 = vrot.slane %v1670_v47, 4 }
 0x280   :  { %v1488_v35 = vcombine.high %v1394_v53, %v1394_v53  ;;  %v4596_v37 = vmax.f32 %v1590_v39, %v1591_v6  ;;  %v4598_v59 = vmax.f32 %v1604_v61, %v1605_v56  ;;  %v1650_v17 = vrot.slane %v1649_v22, 4 }
 0x281   :  { %v1678_v27 = vrot.slane %v1677_v63, 4  ;;  %v1626_v52 = vrot.slane %v1625_v57, 1  ;;  %v1658_v26 = vmax.f32 %v1656_v51, %v1657_v33  ;;  %v1666_v2 = vrot.slane %v1665_v23, 2 }
 0x282   :  { %v1685_v11 = vrot.slane %v1684_v13, 4  ;;  %v1619_v38 = vrot.slane %v1618_v48, 1  ;;  %v1637_v40 = vmax.f32 %v1635_v5, %v1636_v19  ;;  %v1672_v44 = vmax.f32 %v1670_v47, %v1671_v32 }
 0x283   :  { %v1495_v46 = vrot.slane %v1394_v53, %v4530_v54  ;;  %v4601_v7 = vmax.f32 %v1611_v18, %v1612_v31  ;;  %v1633_v4 = vrot.slane %v1632_v28, 1  ;;  %v1644_v10 = vmax.f32 %v1642_v36, %v1643_v8 }
 0x284   :  { %v1502_v39 = vrot.slane %v1488_v35, %v4530_v54  ;;  %v1651_v61 = vmax.f32 %v1649_v22, %v1650_v17  ;;  %v1679_v49 = vmax.f32 %v1677_v63, %v1678_v27  ;;  %v1659_v15 = vrot.slane %v1658_v26, 2 }
 0x285   :  { %v1503_v43 = vcombine.high %v1495_v46, %v1495_v46  ;;  %v1691_v6 = vsel %vm1550_vm12, %v1495_v46, -inf  ;;  %v1667_v50 = vmax.f32 %v1665_v23, %v1666_v2  ;;  %v1686_v56 = vmax.f32 %v1684_v13, %v1685_v11 }
 0x286   :  { %v1504_v58 = vcombine.high %v1502_v39, %v1502_v39  ;;  %v1673_v5 = vrot.slane %v1672_v44, 2  ;;  %v1692_v20 = vrot.slane %v1691_v6, 4  ;;  %v1705_v18 = vsel %vm1550_vm12, %v1502_v39, -inf }
 0x287   :  { %v1698_v16 = vsel %vm1550_vm12, %v1503_v43, -inf  ;;  %v1638_v51 = vrot.slane %v1637_v40, 2  ;;  %v1645_v53 = vrot.slane %v1644_v10, 2  ;;  %v1395_v25 = vmax.f32 %v4551_v21, %v4553_v41 }
 0x288   :  { %v1699_v1 = vrot.slane %v1698_v16, 4  ;;  %v1652_v30 = vrot.slane %v1651_v61, 2  ;;  %v1680_v55 = vrot.slane %v1679_v49, 2  ;;  %v1706_v19 = vrot.slane %v1705_v18, 4 }
 0x289   :  { %v1712_v36 = vsel %vm1550_vm12, %v1504_v58, -inf  ;;  %v4610_v60 = vmax.f32 %v1618_v48, %v1619_v38  ;;  %v4612_v22 = vmax.f32 %v1625_v57, %v1626_v52  ;;  %v4614_v33 = vmax.f32 %v1632_v28, %v1633_v4 }
 0x28a   :  { %v1660_v47 = vmax.f32 %v1658_v26, %v1659_v15  ;;  %v1668_v63 = vrot.slane %v1667_v50, 1  ;;  %v1674_v31 = vmax.f32 %v1672_v44, %v1673_v5  ;;  %v1687_v23 = vrot.slane %v1686_v56, 2 }
 0x28b   :  { %v1693_v13 = vmax.f32 %v1691_v6, %v1692_v20  ;;  %v4616_v21 = vmax.f32 %v1637_v40, %v1638_v51  ;;  %v1700_v41 = vmax.f32 %v1698_v16, %v1699_v1  ;;  %v1713_v8 = vrot.slane %v1712_v36, 4 }
 0x28c   :  { %v1512_v32 = vrot.slane %v1395_v25, %v4530_v54  ;;  %v4619_v48 = vmax.f32 %v1644_v10, %v1645_v53  ;;  %v4621_v57 = vmax.f32 %v1651_v61, %v1652_v30  ;;  %v1681_v28 = vmax.f32 %v1679_v49, %v1680_v55  ;;  %v1767_v55 = vld [vmem:[#allocation10 + $0xa0] sm:$0xf] }
 0x28d   :  { %v1707_v35 = vmax.f32 %v1705_v18, %v1706_v19  ;;  %v1661_v17 = vrot.slane %v1660_v47, 1  ;;  %v1817_v26 = vsel %vm1816_vm15, %v4580_v3, %v4573_v12  ;;  %v4627_v2 = vmax.f32 %v1667_v50, %v1668_v63  ;;  %v1766_v63 = vld [vmem:[#allocation10 + $0x98] sm:$0xff] }
 0x28e   :  { %v1520_v27 = vcombine.high %v1512_v32, %v1512_v32  ;;  %v1719_v52 = vsel %vm1550_vm12, %v1512_v32, -inf  ;;  %v1675_v11 = vrot.slane %v1674_v31, 1  ;;  %v1688_v38 = vmax.f32 %v1686_v56, %v1687_v23 }
 0x28f   :  { %v1694_v40 = vrot.slane %v1693_v13, 2  ;;  %v1701_v44 = vrot.slane %v1700_v41, 2  ;;  %v1714_v46 = vmax.f32 %v1712_v36, %v1713_v8  ;;  %v1720_v4 = vrot.slane %v1719_v52, 4  ;;  %v1765_v8 = vld [vmem:[#allocation10 + $0x90] sm:$0xff] }
 0x290   :  { %v1726_v10 = vsel %vm1550_vm12, %v1520_v27, -inf  ;;  %v1682_v39 = vrot.slane %v1681_v28, 1  ;;  %v1708_v61 = vrot.slane %v1707_v35, 2  ;;  %v1818_v49 = vsel %vm737_vm6, %v4596_v37, %v1817_v26  ;;  %v2353_v27 = vld [vmem:[#allocation10 + $0x360] sm:$0xf] }
 0x291   :  { %v2072_v43 = vsel %vm1814_vm14, %v4580_v3, %v4578_v45  ;;  %v4635_v12 = vmax.f32 %v1660_v47, %v1661_v17  ;;  %v2078_v6 = vsel %vm1812_vm13, %v4614_v33, %v4612_v22  ;;  %v1505_v15 = vcombine.high %v1395_v25, %v1395_v25 }
 0x292   :  { %v1727_v50 = vrot.slane %v1726_v10, 4  ;;  %v1689_v56 = vrot.slane %v1688_v38, 1  ;;  %v2079_v58 = vsel %vm1814_vm14, %v4627_v2, %v2078_v6  ;;  %v1695_v5 = vmax.f32 %v1693_v13, %v1694_v40  ;;  %v1762_v6 = vld [vmem:[#allocation10 + $0x78] sm:$0xff] }
 0x293   :  { %v1721_v20 = vmax.f32 %v1719_v52, %v1720_v4  ;;  %v1702_v16 = vmax.f32 %v1700_v41, %v1701_v44  ;;  %v1715_v18 = vrot.slane %v1714_v46, 2  ;;  %v1820_v51 = vsel %vm1819_vm0, %v4582_v14, %v1818_v49  ;;  %v1764_v52 = vld [vmem:[#allocation10 + $0x88] sm:$0xff]  ;;  %v2352_v44 = vld [vmem:[#allocation10 + $0x358] sm:$0xff]  ;;  %v1763_v4 = vld [vmem:[#allocation10 + $0x80] sm:$0xff] }
 0x294   :  { %v2073_v45 = vsel %vm1816_vm15, %v4596_v37, %v2072_v43  ;;  %v4646_v53 = vmax.f32 %v1674_v31, %v1675_v11  ;;  %v4648_v1 = vmax.f32 %v1681_v28, %v1682_v39  ;;  %v1709_v25 = vmax.f32 %v1707_v35, %v1708_v61  ;;  %v2351_v43 = vld [vmem:[#allocation10 + $0x350] sm:$0xff] }
 0x295   :  { %v1822_v30 = vsel %vm1821_vm1, %v4598_v59, %v1820_v51  ;;  %v4653_v19 = vrot.slane %v1505_v15, %v4530_v54  ;;  %v1728_v36 = vmax.f32 %v1726_v10, %v1727_v50  ;;  %v2074_v23 = vsel %vm737_vm6, %v4582_v14, %v2073_v45 }
 0x296   :  { %v1824_v47 = vsel %vm1823_vm2, %v4601_v7, %v1822_v30  ;;  %v1696_v31 = vrot.slane %v1695_v5, 1  ;;  %v1722_v13 = vrot.slane %v1721_v20, 2  ;;  %v2075_v41 = vsel %vm1819_vm0, %v4598_v59, %v2074_v23 }
 0x297   :  { %3431 = vmatmul.mubr.msk.f32.vlgmr.msra.gmra.mxu1 %vm1835_vm4, %v1824_v47  ;;  %v1825_v32 = vsel %vm1812_vm13, %v4612_v22, %v4610_v60  ;;  %v1703_v28 = vrot.slane %v1702_v16, 1  ;;  %v1716_v35 = vmax.f32 %v1714_v46, %v1715_v18  ;;  %v2076_v17 = vsel %vm1821_vm1, %v4601_v7, %v2075_v41  ;;  %v2350_v18 = vld [vmem:[#allocation10 + $0x348] sm:$0xff]  ;;  %v2348_v41 = vld [vmem:[#allocation10 + $0x338] sm:$0xff] }
 0x298   :  { %3435 = vmatpush1.msk.msra.mxu1 %vm1842_vm10, %v1767_v55  ;;  %1919 = vmatprep.mubr.f32.mxu1 %v3918_v0  ;;  %v1826_v26 = vsel %vm1814_vm14, %v4635_v12, %v1825_v32  ;;  %v1710_v11 = vrot.slane %v1709_v25, 1  ;;  %v2077_v40 = vsel %vm1823_vm2, %v4610_v60, %v2076_v17  ;;  %v2080_v10 = vsel %vm1816_vm15, %v4646_v53, %v2079_v58  ;;  %v1761_v58 = vld [vmem:[#allocation10 + $0x70] sm:$0xff]  ;;  %v2349_v55 = vld [vmem:[#allocation10 + $0x340] sm:$0xff]  ;;  %v1760_v47 = vld [vmem:[#allocation10 + $0x68] sm:$0xff] }
 0x299   :  { %1975 = vmatprep.subr.mxu1 %v1766_v63  ;;  %v1827_v46 = vsel %vm1816_vm15, %v4627_v2, %v1826_v26  ;;  %v4677_v39 = vmax.f32 %v1688_v38, %v1689_v56  ;;  %v1521_v61 = vcombine.high %v4653_v19, %v4653_v19  ;;  %v1729_v49 = vrot.slane %v1728_v36, 2  ;;  %3441 = vmatmul.mubr.msk.f32.vlgmr.msra.gmra.mxu0 %vm1835_vm4, %v2077_v40  ;;  %v1758_v32 = vld [vmem:[#allocation10 + $0x58] sm:$0xff]  ;;  %v2345_v40 = vld [vmem:[#allocation10 + $0x320] sm:$0xff] }
 0x29a   :  { %1976 = vmatpush1.msra.mxu1 %v1765_v8  ;;  %v1828_v15 = vsel %vm737_vm6, %v4646_v53, %v1827_v46  ;;  %v1723_v50 = vmax.f32 %v1721_v20, %v1722_v13  ;;  %3450 = vmatpush1.msk.msra.mxu0 %vm1842_vm10, %v2353_v27  ;;  %v2081_v56 = vsel %vm737_vm6, %v4648_v1, %v2080_v10  ;;  %v1647_v45 = vrot.slane %v4619_v48, 1  ;;  %v2346_v27 = vld [vmem:[#allocation10 + $0x328] sm:$0xff] }
 0x29b   :  { %1977 = vmatprep.subr.mxu1 %v1764_v52  ;;  %v1829_v38 = vsel %vm1819_vm0, %v4648_v1, %v1828_v15  ;;  %v1934_v51 = vsel %vm1812_vm13, %v4556_v29, %v4569_v9  ;;  %v1717_v30 = vrot.slane %v1716_v35, 1  ;;  %v1733_v20 = vsel %vm1550_vm12, %v4653_v19, -inf  ;;  %2398 = vmatprep.subr.mxu0 %v2352_v44  ;;  %v1759_v29 = vld [vmem:[#allocation10 + $0x60] sm:$0xff]  ;;  %v2347_v19 = vld [vmem:[#allocation10 + $0x330] sm:$0xff]  ;;  %v1756_v44 = vld [vmem:[#allocation10 + $0x48] sm:$0xff] }
 0x29c   :  { %1978 = vmatpush1.msra.mxu1 %v1763_v4  ;;  %v4695_v63 = vmax.f32 %v1695_v5, %v1696_v31  ;;  %v4697_v23 = vmax.f32 %v1702_v16, %v1703_v28  ;;  %v4699_v13 = vmax.f32 %v1709_v25, %v1710_v11  ;;  %2399 = vmatpush1.msra.mxu0 %v2351_v43  ;;  %v1640_v9 = vrot.slane %v4616_v21, 1  ;;  %v2344_v4 = vld [vmem:[#allocation10 + $0x318] sm:$0xff] }
 0x29d   :  { %1979 = vmatprep.subr.mxu1 %v1762_v6  ;;  %v1730_v8 = vmax.f32 %v1728_v36, %v1729_v49  ;;  %2400 = vmatprep.subr.mxu0 %v2350_v18  ;;  %v1830_v17 = vsel %vm1821_vm1, %v4677_v39, %v1829_v38  ;;  %v2082_v5 = vsel %vm1819_vm0, %v4677_v39, %v2081_v56  ;;  %v1654_v16 = vrot.slane %v4621_v57, 1  ;;  %v1757_v36 = vld [vmem:[#allocation10 + $0x50] sm:$0xff]  ;;  %v1755_v49 = vld [vmem:[#allocation10 + $0x40] sm:$0xff]  ;;  %v2342_v38 = vld [vmem:[#allocation10 + $0x308] sm:$0xff] }
 0x29e   :  { %1980 = vmatpush1.msra.mxu1 %v1761_v58  ;;  %v1724_v25 = vrot.slane %v1723_v50, 1  ;;  %v1734_v31 = vrot.slane %v1733_v20, 4  ;;  %v1740_v28 = vsel %vm1550_vm12, %v1521_v61, -inf  ;;  %2401 = vmatpush1.msra.mxu0 %v2349_v55  ;;  %v1935_v52 = vsel %vm1814_vm14, %v4558_v24, %v1934_v51  ;;  %v2343_v61 = vld [vmem:[#allocation10 + $0x310] sm:$0xff] }
 0x29f   :  { %1981 = vmatprep.subr.mxu1 %v1760_v47  ;;  %v1648_v26 = vmax.f32 %v4619_v48, %v1647_v45  ;;  %v4711_v11 = vmax.f32 %v1716_v35, %v1717_v30  ;;  %2402 = vmatprep.subr.mxu0 %v2348_v41  ;;  %v1831_v46 = vsel %vm1823_vm2, %v4695_v63, %v1830_v17  ;;  %v1741_v35 = vrot.slane %v1740_v28, 4  ;;  %v2341_v45 = vld [vmem:[#allocation10 + $0x300] sm:$0xff]  ;;  %v1753_v30 = vld [vmem:[#allocation10 + $0x30] sm:$0xff]  ;;  %v2340_v41 = vld [vmem:[#allocation10 + $0x2f8] sm:$0xff] }
 0x2a0   :  { %1982 = vmatpush1.msra.mxu1 %v1759_v29  ;;  %2403 = vmatpush1.msra.mxu0 %v2347_v19  ;;  %v2083_v10 = vsel %vm1821_vm1, %v4695_v63, %v2082_v5  ;;  %v2357_v24 = vsel %vm1812_vm13, %v4596_v37, %v4580_v3  ;;  %v4721_v48 = vmax.f32 %v4616_v21, %v1640_v9  ;;  %v1731_v6 = vrot.slane %v1730_v8, 1  ;;  %v1754_v21 = vld [vmem:[#allocation10 + $0x38] sm:$0xff]  ;;  %v1752_v19 = vld [vmem:[#allocation10 + $0x28] sm:$0xff] }
 0x2a1   :  { %1983 = vmatprep.subr.mxu1 %v1758_v32  ;;  %2404 = vmatprep.subr.mxu0 %v2346_v27  ;;  %v1832_v43 = vsel %vm1812_vm13, %v4699_v13, %v4697_v23  ;;  %v1655_v15 = vmax.f32 %v4621_v57, %v1654_v16  ;;  %v4727_v18 = vmax.f32 %v1723_v50, %v1724_v25  ;;  %v2339_v32 = vld [vmem:[#allocation10 + $0x2f0] sm:$0xff]  ;;  %v1751_v27 = vld [vmem:[#allocation10 + $0x20] sm:$0xff] }
 0x2a2   :  { %1984 = vmatpush1.msra.mxu1 %v1757_v36  ;;  %v1735_v58 = vmax.f32 %v1733_v20, %v1734_v31  ;;  %2405 = vmatpush1.msra.mxu0 %v2345_v40  ;;  %v2084_v56 = vsel %vm1823_vm2, %v4697_v23, %v2083_v10  ;;  %v2085_v51 = vsel %vm1812_vm13, %v4711_v11, %v4699_v13  ;;  %v2338_v36 = vld [vmem:[#allocation10 + $0x2e8] sm:$0xff]  ;;  %v1749_v10 = vld [vmem:[#allocation10 + $0x10] sm:$0xff] }
 0x2a3   :  { %1985 = vmatprep.subr.mxu1 %v1756_v44  ;;  %2406 = vmatprep.subr.mxu0 %v2344_v4  ;;  %v2358_v57 = vsel %vm1814_vm14, %v4582_v14, %v2357_v24  ;;  %v2364_v50 = vsel %vm1812_vm13, %v1648_v26, %v4721_v48  ;;  %v1833_v20 = vsel %vm1814_vm14, %v4711_v11, %v1832_v43  ;;  %v1748_v43 = vld [vmem:[#allocation10 + $0x8] sm:$0xff] }
 0x2a4   :  { %3432 = vmatmul.mubr.msk.f32.gmra.mxu1 %vm1835_vm4, %v1831_v46  ;;  %2407 = vmatpush1.msra.mxu0 %v2343_v61  ;;  %v1936_v55 = vsel %vm1816_vm15, %v4563_v62, %v1935_v52  ;;  %v1742_v47 = vmax.f32 %v1740_v28, %v1741_v35  ;;  %v4744_v29 = vmax.f32 %v1730_v8, %v1731_v6  ;;  %v1736_v25 = vrot.slane %v1735_v58, 2  ;;  %v1750_v52 = vld [vmem:[#allocation10 + $0x18] sm:$0xff]  ;;  %v2337_v46 = vld [vmem:[#allocation10 + $0x2e0] sm:$0xff] }
 0x2a5   :  { %1986 = vmatpush1.msra.mxu1 %v1755_v49  ;;  %2170 = vmatprep.mubr.f32.mxu0 %v3918_v0  ;;  %v1941_v9 = vsel %vm1812_vm13, %v4610_v60, %v4601_v7  ;;  %v2086_v17 = vsel %vm1814_vm14, %v4727_v18, %v2085_v51  ;;  %v2359_v5 = vsel %vm1816_vm15, %v4598_v59, %v2358_v57  ;;  %v2336_v49 = vld [vmem:[#allocation10 + $0x2d8] sm:$0xff]  ;;  %v1747_v6 = vld [vmem:[#allocation10] sm:$0xff] }
 0x2a6   :  { %2408 = vmatprep.subr.mxu0 %v2342_v38  ;;  %1987 = vmatprep.subr.mxu1 %v1754_v21  ;;  %v1942_v16 = vsel %vm1814_vm14, %v1655_v15, %v1941_v9  ;;  %v1834_v8 = vsel %vm1816_vm15, %v4727_v18, %v1833_v20  ;;  %v1937_v31 = vsel %vm737_vm6, %v4580_v3, %v1936_v55  ;;  %v1743_v4 = vrot.slane %v1742_v47, 2  ;;  %v2334_v21 = vld [vmem:[#allocation10 + $0x2c8] sm:$0xff]  ;;  %v2211_v51 = vld [vmem:[#allocation10 + $0x2b8] sm:$0xf]  ;;  %v2210_v55 = vld [vmem:[#allocation10 + $0x2b0] sm:$0xf] }
 0x2a7   :  { %3442 = vmatmul.mubr.msk.f32.gmra.mxu0 %vm1835_vm4, %v2084_v56  ;;  %1988 = vmatpush1.msra.mxu1 %v1753_v30  ;;  %v2365_v28 = vsel %vm1814_vm14, %v4648_v1, %v2364_v50  ;;  %v2087_v26 = vsel %vm1816_vm15, %v4744_v29, %v2086_v17  ;;  %v2360_v40 = vsel %vm737_vm6, %v4601_v7, %v2359_v5  ;;  %v2207_v5 = vld [vmem:[#allocation10 + $0x298] sm:$0xff] }
 0x2a8   :  { %2409 = vmatpush1.msra.mxu0 %v2341_v45  ;;  %1925 = vmatprep.mubr.f32.mxu1 %v3918_v0  ;;  %v1943_v44 = vsel %vm1816_vm15, %v4635_v12, %v1942_v16  ;;  %v1938_v24 = vsel %vm1819_vm0, %v4596_v37, %v1937_v31  ;;  %v2366_v35 = vsel %vm1816_vm15, %v4677_v39, %v2365_v28  ;;  %v2335_v12 = vld [vmem:[#allocation10 + $0x2d0] sm:$0xff]  ;;  %v2333_v45 = vld [vmem:[#allocation10 + $0x2c0] sm:$0xff] }
 0x2a9   :  { %2410 = vmatprep.subr.mxu0 %v2340_v41  ;;  %1989 = vmatprep.subr.mxu1 %v1752_v19  ;;  %v1737_v61 = vmax.f32 %v1735_v58, %v1736_v25  ;;  %v2361_v15 = vsel %vm1819_vm0, %v4610_v60, %v2360_v40  ;;  %v1944_v38 = vsel %vm737_vm6, %v4627_v2, %v1943_v44  ;;  %v2209_v41 = vld [vmem:[#allocation10 + $0x2a8] sm:$0xff]  ;;  %v2208_v19 = vld [vmem:[#allocation10 + $0x2a0] sm:$0xff]  ;;  %v2206_v31 = vld [vmem:[#allocation10 + $0x290] sm:$0xff] }
 0x2aa   :  { %2411 = vmatpush1.msra.mxu0 %v2339_v32  ;;  %3433 = vmatmul.mubr.msk.f32.gmra.mxu1 %vm1835_vm4, %v1834_v8  ;;  %v1939_v58 = vsel %vm1821_vm1, %v4582_v14, %v1938_v24  ;;  %v2367_v56 = vsel %vm737_vm6, %v4695_v63, %v2366_v35  ;;  %v1744_v57 = vmax.f32 %v1742_v47, %v1743_v4  ;;  %v2204_v40 = vld [vmem:[#allocation10 + $0x280] sm:$0xff]  ;;  %v2201_v35 = vld [vmem:[#allocation10 + $0x268] sm:$0xff] }
 0x2ab   :  { %2176 = vmatprep.mubr.f32.mxu0 %v3918_v0  ;;  %1990 = vmatpush1.msra.mxu1 %v1751_v27  ;;  %v1738_v50 = vrot.slane %v1737_v61, 1  ;;  %v2362_v2 = vsel %vm1821_vm1, %v4612_v22, %v2361_v15  ;;  %v1945_v30 = vsel %vm1819_vm0, %v4646_v53, %v1944_v38  ;;  %v1940_v20 = vsel %vm1823_vm2, %v4598_v59, %v1939_v58  ;;  %v2197_v38 = vld [vmem:[#allocation10 + $0x248] sm:$0xff]  ;;  %v2194_v58 = vld [vmem:[#allocation10 + $0x230] sm:$0xff] }
 0x2ac   :  { %2412 = vmatprep.subr.mxu0 %v2338_v36  ;;  %1991 = vmatprep.subr.mxu1 %v1750_v52  ;;  %v2368_v47 = vsel %vm1819_vm0, %v4697_v23, %v2367_v56  ;;  %v2363_v9 = vsel %vm1823_vm2, %v4614_v33, %v2362_v2  ;;  %v1946_v32 = vsel %vm1821_vm1, %v4648_v1, %v1945_v30  ;;  %v1745_v17 = vrot.slane %v1744_v57, 1  ;;  %v2205_v36 = vld [vmem:[#allocation10 + $0x288] sm:$0xff] }
 0x2ad   :  { %3443 = vmatmul.mubr.msk.f32.gmra.mxu0 %vm1835_vm4, %v2087_v26  ;;  %1992 = vmatpush1.msra.mxu1 %v1749_v10  ;;  %v2369_v16 = vsel %vm1821_vm1, %v4699_v13, %v2368_v47  ;;  %v1948_v25 = vsel %vm1812_vm13, %v4697_v23, %v4695_v63  ;;  %v4806_v8 = vmax.f32 %v1737_v61, %v1738_v50  ;;  %v2193_v56 = vld [vmem:[#allocation10 + $0x228] sm:$0xff]  ;;  %v2191_v50 = vld [vmem:[#allocation10 + $0x218] sm:$0xff] }
 0x2ae   :  { %2413 = vmatpush1.msra.mxu0 %v2337_v46  ;;  %1993 = vmatprep.subr.mxu1 %v1748_v43  ;;  %v2371_v28 = vsel %vm1812_vm13, %v4744_v29, %v4727_v18  ;;  %v1947_v27 = vsel %vm1823_vm2, %v4677_v39, %v1946_v32  ;;  %v2214_v52 = vsel %vm1812_vm13, %v4580_v3, %v4563_v62  ;;  %v2203_v46 = vld [vmem:[#allocation10 + $0x278] sm:$0xff]  ;;  %v2202_v62 = vld [vmem:[#allocation10 + $0x270] sm:$0xff]  ;;  %v2514_v2 = vld [vmem:[#allocation11 + $0x78] sm:$0xff] }
 0x2af   :  { %2414 = vmatprep.subr.mxu0 %v2336_v49  ;;  %1994 = vmatpush1.msra.mxu1 %v1747_v6  ;;  %v2370_v26 = vsel %vm1823_vm2, %v4711_v11, %v2369_v16  ;;  %v1949_v44 = vsel %vm1814_vm14, %v4699_v13, %v1948_v25  ;;  %v1746_v4 = vmax.f32 %v1744_v57, %v1745_v17  ;;  %v2200_v49 = vld [vmem:[#allocation10 + $0x260] sm:$0xff]  ;;  %v2198_v6 = vld [vmem:[#allocation10 + $0x250] sm:$0xff]  ;;  %v2623_v30 = vld [vmem:[#allocation13 + $0x78] sm:$0xff] }
 0x2b0   :  { %2415 = vmatpush1.msra.mxu0 %v2335_v12  ;;  %2027 = vmatprep.mubr.f32.mxu1 %v3918_v0  ;;  %v2372_v10 = vsel %vm1814_vm14, %v4806_v8, %v2371_v28  ;;  %v2215_v3 = vsel %vm1814_vm14, %v4596_v37, %v2214_v52  ;;  %v1950_v24 = vsel %vm1816_vm15, %v4711_v11, %v1949_v44  ;;  %v2199_v37 = vld [vmem:[#allocation10 + $0x258] sm:$0xff]  ;;  %v2510_v47 = vld [vmem:[#allocation11 + $0x58] sm:$0xff]  ;;  %v2616_v16 = vld [vmem:[#allocation13 + $0x40] sm:$0xff] }
 0x2b1   :  { %2416 = vmatprep.subr.mxu0 %v2334_v21  ;;  %3436 = vmatmul.mubr.msk.f32.vlgmr.msra.gmra.mxu1 %vm1835_vm4, %v1940_v20  ;;  %v2373_v61 = vsel %vm1816_vm15, %v1746_v4, %v2372_v10  ;;  %v2221_v43 = vsel %vm1812_vm13, %v4721_v48, %v4614_v33  ;;  %v2216_v12 = vsel %vm1816_vm15, %v4582_v14, %v2215_v3  ;;  %v2196_v33 = vld [vmem:[#allocation10 + $0x240] sm:$0xff]  ;;  %v2195_v21 = vld [vmem:[#allocation10 + $0x238] sm:$0xff]  ;;  %v2511_v20 = vld [vmem:[#allocation11 + $0x60] sm:$0xff] }
 0x2b2   :  { %3444 = vmatprep.subr.msk.mxu1 %vm1842_vm10, %v2211_v51  ;;  %2417 = vmatpush1.msra.mxu0 %v2333_v45  ;;  %v2222_v15 = vsel %vm1814_vm14, %v4646_v53, %v2221_v43  ;;  %v2217_v48 = vsel %vm737_vm6, %v4598_v59, %v2216_v12  ;;  %v2192_v51 = vld [vmem:[#allocation10 + $0x220] sm:$0xff]  ;;  %v2190_v59 = vld [vmem:[#allocation10 + $0x210] sm:$0xff]  ;;  %v2508_v32 = vld [vmem:[#allocation11 + $0x48] sm:$0xff] }
 0x2b3   :  { %2450 = vmatprep.mubr.f32.mxu0 %v3918_v0  ;;  %3445 = vmatpush1.msk.msra.mxu1 %vm1842_vm10, %v2210_v55  ;;  %v2223_v14 = vsel %vm1816_vm15, %v4648_v1, %v2222_v15  ;;  %v2218_v53 = vsel %vm1819_vm0, %v4601_v7, %v2217_v48  ;;  %v2620_v55 = vld [vmem:[#allocation13 + $0x60] sm:$0xff]  ;;  %v2617_v17 = vld [vmem:[#allocation13 + $0x48] sm:$0xff]  ;;  %v2506_v25 = vld [vmem:[#allocation11 + $0x38] sm:$0xff] }
 0x2b4   :  { %3451 = vmatmul.mubr.msk.f32.vlgmr.msra.gmra.mxu0 %vm1835_vm4, %v2363_v9  ;;  %2255 = vmatprep.subr.mxu1 %v2209_v41  ;;  %v2224_v57 = vsel %vm737_vm6, %v4677_v39, %v2223_v14  ;;  %v2219_v45 = vsel %vm1821_vm1, %v4610_v60, %v2218_v53  ;;  %v2228_v60 = vsel %vm1812_vm13, %v4727_v18, %v4711_v11  ;;  %v2622_v11 = vld [vmem:[#allocation13 + $0x70] sm:$0xff]  ;;  %v2512_v18 = vld [vmem:[#allocation11 + $0x68] sm:$0xff]  ;;  %v2619_v41 = vld [vmem:[#allocation13 + $0x58] sm:$0xff] }
 0x2b5   :  { %2033 = vmatprep.mubr.f32.mxu1 %v3918_v0  ;;  %2256 = vmatpush1.msra.mxu1 %v2208_v19  ;;  %v2225_v1 = vsel %vm1819_vm0, %v4695_v63, %v2224_v57  ;;  %v2220_v7 = vsel %vm1823_vm2, %v4612_v22, %v2219_v45  ;;  %v2229_v22 = vsel %vm1814_vm14, %v4744_v29, %v2228_v60  ;;  %v2621_v29 = vld [vmem:[#allocation13 + $0x68] sm:$0xff]  ;;  %v2509_v9 = vld [vmem:[#allocation11 + $0x50] sm:$0xff]  ;;  %v2503_v52 = vld [vmem:[#allocation11 + $0x20] sm:$0xff] }
 0x2b6   :  { %2456 = vmatprep.mubr.f32.mxu0 %v3918_v0  ;;  %3437 = vmatmul.mubr.msk.f32.gmra.mxu1 %vm1835_vm4, %v1947_v27  ;;  %v2226_v39 = vsel %vm1821_vm1, %v4697_v23, %v2225_v1  ;;  %v2230_v23 = vsel %vm1816_vm15, %v4806_v8, %v2229_v22  ;;  %v2618_v19 = vld [vmem:[#allocation13 + $0x50] sm:$0xff]  ;;  %v2615_v8 = vld [vmem:[#allocation13 + $0x38] sm:$0xff]  ;;  %v2504_v27 = vld [vmem:[#allocation11 + $0x28] sm:$0xff] }
 0x2b7   :  { %2257 = vmatprep.subr.mxu1 %v2207_v5  ;;  %2039 = vmatprep.mubr.f32.mxu1 %v3918_v0  ;;  %v2227_v63 = vsel %vm1823_vm2, %v4699_v13, %v2226_v39  ;;  %v2513_v13 = vld [vmem:[#allocation11 + $0x70] sm:$0xff]  ;;  %v2507_v5 = vld [vmem:[#allocation11 + $0x40] sm:$0xff]  ;;  %v2611_v44 = vld [vmem:[#allocation13 + $0x18] sm:$0xff] }
 0x2b8   :  { %2258 = vmatpush1.msra.mxu1 %v2206_v31  ;;  %3452 = vmatmul.mubr.msk.f32.gmra.mxu0 %vm1835_vm4, %v2370_v26  ;;  %v2505_v31 = vld [vmem:[#allocation11 + $0x30] sm:$0xff]  ;;  %v2612_v26 = vld [vmem:[#allocation13 + $0x20] sm:$0xff]  ;;  %v2500_v10 = vld [vmem:[#allocation11 + $0x8] sm:$0xff] }
 0x2b9   :  { %2259 = vmatprep.subr.mxu1 %v2205_v36  ;;  %2462 = vmatprep.mubr.f32.mxu0 %v3918_v0  ;;  %v2614_v28 = vld [vmem:[#allocation13 + $0x30] sm:$0xff]  ;;  %v2613_v36 = vld [vmem:[#allocation13 + $0x28] sm:$0xff]  ;;  %v2499_v3 = vld [vmem:[#allocation11] sm:$0xff] }
 0x2ba   :  { %2260 = vmatpush1.msra.mxu1 %v2204_v40  ;;  %2628 = vmatprep.subr.mxu0 %v3918_v0  ;;  %v2502_v40 = vld [vmem:[#allocation11 + $0x18] sm:$0xff]  ;;  %v2501_v4 = vld [vmem:[#allocation11 + $0x10] sm:$0xff]  ;;  %v2625_v12 = vld [vmem:[#allocation13 + $0x88] sm:$0xff] }
 0x2bb   :  { %3438 = vmatmul.mubr.msk.f32.gmra.mxu1 %vm1835_vm4, %v1950_v24  ;;  %2261 = vmatprep.subr.mxu1 %v2203_v46  ;;  %v2610_v46 = vld [vmem:[#allocation13 + $0x10] sm:$0xff]  ;;  %v2608_v24 = vld [vmem:[#allocation13] sm:$0xff] }
 0x2bc   :  { %2262 = vmatpush1.msra.mxu1 %v2202_v62  ;;  %3453 = vmatmul.mubr.msk.f32.gmra.mxu0 %vm1835_vm4, %v2373_v61  ;;  %v2609_v62 = vld [vmem:[#allocation13 + $0x8] sm:$0xff]  ;;  %v2627_v61 = vld [vmem:[#allocation13 + $0x98] sm:$0xff]  ;;  %v2626_v43 = vld [vmem:[#allocation13 + $0x90] sm:$0xff] }
 0x2bd   :  { %2263 = vmatprep.subr.mxu1 %v2201_v35  ;;  %2307 = vmatprep.mubr.f32.mxu1 %v3918_v0  ;;  %v2518_v35 = vld [vmem:[#allocation11 + $0x98] sm:$0xff]  ;;  %v2624_v15 = vld [vmem:[#allocation13 + $0x80] sm:$0xff] }
 0x2be   :  { %2264 = vmatpush1.msra.mxu1 %v2200_v49  ;;  %2629 = vmatpush1.msra.mxu0 %v2623_v30  ;;  %v2517_v49 = vld [vmem:[#allocation11 + $0x90] sm:$0xff] }
 0x2bf   :  { %2265 = vmatprep.subr.mxu1 %v2199_v37  ;;  %2630 = vmatprep.subr.mxu0 %v3918_v0  ;;  %v2516_v37 = vld [vmem:[#allocation11 + $0x88] sm:$0xff] }
 0x2c0   :  { %2266 = vmatpush1.msra.mxu1 %v2198_v6  ;;  %2631 = vmatpush1.msra.mxu0 %v2622_v11  ;;  %v2515_v6 = vld [vmem:[#allocation11 + $0x80] sm:$0xff] }
 0x2c1   :  { %2267 = vmatprep.subr.mxu1 %v2197_v38  ;;  %2632 = vmatprep.subr.mxu0 %v3918_v0 }
 0x2c2   :  { %2268 = vmatpush1.msra.mxu1 %v2196_v33  ;;  %2633 = vmatpush1.msra.mxu0 %v2621_v29 }
 0x2c3   :  { %2269 = vmatprep.subr.mxu1 %v2195_v21  ;;  %2634 = vmatprep.subr.mxu0 %v3918_v0 }
 0x2c4   :  { %2270 = vmatpush1.msra.mxu1 %v2194_v58  ;;  %2635 = vmatpush1.msra.mxu0 %v2620_v55 }
 0x2c5   :  { %2271 = vmatprep.subr.mxu1 %v2193_v56  ;;  %2636 = vmatprep.subr.mxu0 %v3918_v0 }
 0x2c6   :  { %2272 = vmatpush1.msra.mxu1 %v2192_v51  ;;  %2637 = vmatpush1.msra.mxu0 %v2619_v41 }
 0x2c7   :  { %2273 = vmatprep.subr.mxu1 %v2191_v50  ;;  %2638 = vmatprep.subr.mxu0 %v3918_v0 }
 0x2c8   :  { %2274 = vmatpush1.msra.mxu1 %v2190_v59  ;;  %2639 = vmatpush1.msra.mxu0 %v2618_v19 }
 0x2c9   :  { %3446 = vmatmul.mubr.msk.f32.vlgmr.msra.gmra.mxu1 %vm1835_vm4, %v2220_v7  ;;  %2528 = vmatprep.subr.mxu1 %v3918_v0 }
 0x2ca   :  { %2313 = vmatprep.mubr.f32.mxu1 %v3918_v0  ;;  %2529 = vmatpush1.msra.mxu1 %v2514_v2 }
 0x2cb   :  { %2530 = vmatprep.subr.mxu1 %v3918_v0  ;;  %2640 = vmatprep.subr.mxu0 %v3918_v0 }
 0x2cc   :  { %2531 = vmatpush1.msra.mxu1 %v2513_v13  ;;  %2641 = vmatpush1.msra.mxu0 %v2617_v17 }
 0x2cd   :  { %3447 = vmatmul.mubr.msk.f32.gmra.mxu1 %vm1835_vm4, %v2227_v63  ;;  %2532 = vmatprep.subr.mxu1 %v3918_v0 }
 0x2ce   :  { %2319 = vmatprep.mubr.f32.mxu1 %v3918_v0  ;;  %2533 = vmatpush1.msra.mxu1 %v2512_v18  ;;  %v2475_v18 = vld [vmem:[%s5029_s6] sm:$0x3]  ;;  %s3921_s6 = smov 112  }
 0x2cf   :  { %2534 = vmatprep.subr.mxu1 %v3918_v0  ;;  %2642 = vmatprep.subr.mxu0 %v3918_v0  ;;  %v2484_v17 = vrot.slane %v2475_v18, %v1093_v42 }
 0x2d0   :  { %2535 = vmatpush1.msra.mxu1 %v2511_v20  ;;  %2643 = vmatpush1.msra.mxu0 %v2616_v16 }
 0x2d1   :  { %3448 = vmatmul.mubr.msk.f32.gmra.mxu1 %vm1835_vm4, %v2230_v23  ;;  %2536 = vmatprep.subr.mxu1 %v3918_v0 }
 0x2d2   :  { %2537 = vmatpush1.msra.mxu1 %v2510_v47  ;;  %2644 = vmatprep.subr.mxu0 %v3918_v0 }
 0x2d3   :  { %2538 = vmatprep.subr.mxu1 %v3918_v0  ;;  %2645 = vmatpush1.msra.mxu0 %v2615_v8 }
 0x2d4   :  { %2539 = vmatpush1.msra.mxu1 %v2509_v9  ;;  %2646 = vmatprep.subr.mxu0 %v3918_v0  ;;  %v5052_v9 = vsub.s32 0, %v4452_v34 }
 0x2d5   :  { %2540 = vmatprep.subr.mxu1 %v3918_v0  ;;  %2647 = vmatpush1.msra.mxu0 %v2614_v28 }
 0x2d6   :  { %2541 = vmatpush1.msra.mxu1 %v2508_v32  ;;  %2648 = vmatprep.subr.mxu0 %v3918_v0  ;;  %v2480_v19 = vrot.slane %v2475_v18, %v5052_v9  ;;  %v2933_v18 = vld [vmem:[#allocation14 + $0x58] sm:$0xff]  ;;  %v2931_v9 = vld [vmem:[#allocation14 + $0x48] sm:$0xff] }
 0x2d7   :  { %2542 = vmatprep.subr.mxu1 %v3918_v0  ;;  %2649 = vmatpush1.msra.mxu0 %v2613_v36 }
 0x2d8   :  { %2543 = vmatpush1.msra.mxu1 %v2507_v5  ;;  %2650 = vmatprep.subr.mxu0 %v3918_v0 }
 0x2d9   :  { %2544 = vmatprep.subr.mxu1 %v3918_v0  ;;  %2651 = vmatpush1.msra.mxu0 %v2612_v26 }
 0x2da   :  { %2545 = vmatpush1.msra.mxu1 %v2506_v25  ;;  %2652 = vmatprep.subr.mxu0 %v3918_v0 }
 0x2db   :  { %2546 = vmatprep.subr.mxu1 %v3918_v0  ;;  %2653 = vmatpush1.msra.mxu0 %v2611_v44 }
 0x2dc   :  { %2547 = vmatpush1.msra.mxu1 %v2505_v31  ;;  %2654 = vmatprep.subr.mxu0 %v3918_v0 }
 0x2dd   :  { %2548 = vmatprep.subr.mxu1 %v3918_v0  ;;  %2655 = vmatpush1.msra.mxu0 %v2610_v46 }
 0x2de   :  { %2549 = vmatpush1.msra.mxu1 %v2504_v27  ;;  %2656 = vmatprep.subr.mxu0 %v3918_v0 }
 0x2df   :  { %2550 = vmatprep.subr.mxu1 %v3918_v0  ;;  %2657 = vmatpush1.msra.mxu0 %v2609_v62 }
 0x2e0   :  { %2551 = vmatpush1.msra.mxu1 %v2503_v52  ;;  %2658 = vmatprep.subr.mxu0 %v3918_v0 }
 0x2e1   :  { %2552 = vmatprep.subr.mxu1 %v3918_v0  ;;  %2659 = vmatpush1.msra.mxu0 %v2608_v24 }
 0x2e2   :  { %2553 = vmatpush1.msra.mxu1 %v2502_v40  ;;  %2684 = vmatprep.subr.mxu0 %v3918_v0 }
 0x2e3   :  { %2554 = vmatprep.subr.mxu1 %v3918_v0  ;;  %2685 = vmatpush2.msra.mxu0 %v2627_v61 }
 0x2e4   :  { %2555 = vmatpush1.msra.mxu1 %v2501_v4  ;;  %2686 = vmatprep.subr.mxu0 %v3918_v0 }
 0x2e5   :  { %2556 = vmatprep.subr.mxu1 %v3918_v0  ;;  %2687 = vmatpush2.msra.mxu0 %v2626_v43 }
 0x2e6   :  { %2557 = vmatpush1.msra.mxu1 %v2500_v10  ;;  %2688 = vmatprep.subr.mxu0 %v3918_v0 }
 0x2e7   :  { %2558 = vmatprep.subr.mxu1 %v3918_v0  ;;  %2689 = vmatpush2.msra.mxu0 %v2625_v12 }
 0x2e8   :  { %2559 = vmatpush1.msra.mxu1 %v2499_v3  ;;  %2690 = vmatprep.subr.mxu0 %v3918_v0 }
 0x2e9   :  { %2584 = vmatprep.subr.mxu1 %v3918_v0  ;;  %2691 = vmatpush2.msra.mxu0 %v2624_v15 }
 0x2ea   :  { %2585 = vmatpush2.msra.mxu1 %v2518_v35  ;;  %3052 = vmatprep.subr.mxu0 %v3918_v0 }
 0x2eb   :  { %2586 = vmatprep.subr.mxu1 %v3918_v0 }
 0x2ec   :  { %2587 = vmatpush2.msra.mxu1 %v2517_v49 }
 0x2ed   :  { %2588 = vmatprep.subr.mxu1 %v3918_v0 }
 0x2ee   :  { %2589 = vmatpush2.msra.mxu1 %v2516_v37 }
 0x2ef   :  { %2590 = vmatprep.subr.mxu1 %v3918_v0 }
 0x2f0   :  { %2591 = vmatpush2.msra.mxu1 %v2515_v6 }
 0x357   :  { %v1915_v38 = vpop.f32.mrf.mxu1 }
 0x359   :  { %v1917_v33 = vpop.f32.mrf.mxu1  ;;  %v2166_v14 = vpop.f32.mrf.mxu0 }
 0x35b   :  { %v2168_v56 = vpop.f32.mrf.mxu0 }
 0x364   :  { %v1921_v48 = vpop.f32.mrf.mxu1 }
 0x366   :  { %v1923_v21 = vpop.f32.mrf.mxu1 }
 0x367   :  { %v2172_v51 = vpop.f32.mrf.mxu0 }
 0x369   :  { %v2174_v50 = vpop.f32.mrf.mxu0 }
 0x36a   :  { %v1927_v58 = vpop.f32.mrf.mxu1 }
 0x36c   :  { %v1929_v53 = vpop.f32.mrf.mxu1 }
 0x36d   :  { %v2178_v45 = vpop.f32.mrf.mxu0 }
 0x36f   :  { %v2180_v7 = vpop.f32.mrf.mxu0 }
 0x371   :  { %v2029_v57 = vpop.f32.mrf.mxu1 }
 0x372   :  { %v2030_v22 = vadd.f32 %v2029_v57, %v1915_v38  ;;  %v2969_v57 = vld [vmem:[#allocation14 + $0x178] sm:$0xff] }
 0x373   :  { %v2031_v59 = vpop.f32.mrf.mxu1 }
 0x374   :  { %v2452_v60 = vpop.f32.mrf.mxu0  ;;  %v2032_v2 = vadd.f32 %v2031_v59, %v1917_v33  ;;  %v2183_v11 = vadd.f32 %v2166_v14, %v2030_v22  ;;  %v2953_v59 = vld [vmem:[#allocation14 + $0xf8] sm:$0xff]  ;;  %v2935_v22 = vld [vmem:[#allocation14 + $0x68] sm:$0xff] }
 0x375   :  { %3470 = vmatprep.subr.mxu1 %v2953_v59 }
 0x376   :  { %v2035_v1 = vpop.f32.mrf.mxu1  ;;  %v2454_v23 = vpop.f32.mrf.mxu0  ;;  %v2184_v41 = vadd.f32 %v2168_v56, %v2032_v2  ;;  %v2965_v2 = vld [vmem:[#allocation14 + $0x158] sm:$0xff] }
 0x377   :  { %v2036_v13 = vadd.f32 %v2035_v1, %v1921_v48  ;;  %v2967_v1 = vld [vmem:[#allocation14 + $0x168] sm:$0xff] }
 0x378   :  { %v2037_v39 = vpop.f32.mrf.mxu1  ;;  %v2458_v29 = vpop.f32.mrf.mxu0 }
 0x379   :  { %v2038_v55 = vadd.f32 %v2037_v39, %v1923_v21  ;;  %v2185_v8 = vadd.f32 %v2172_v51, %v2036_v13  ;;  %v2936_v39 = vld [vmem:[#allocation14 + $0x70] sm:$0xff]  ;;  %v2949_v13 = vld [vmem:[#allocation14 + $0xd8] sm:$0xff] }
 0x37a   :  { %v2460_v31 = vpop.f32.mrf.mxu0 }
 0x37b   :  { %v2041_v63 = vpop.f32.mrf.mxu1  ;;  %v2186_v26 = vadd.f32 %v2174_v50, %v2038_v55  ;;  %v2968_v50 = vld [vmem:[#allocation14 + $0x170] sm:$0xff] }
 0x37c   :  { %v2042_v5 = vadd.f32 %v2041_v63, %v1927_v58  ;;  %v2464_v3 = vpop.f32.mrf.mxu0  ;;  %v2966_v63 = vld [vmem:[#allocation14 + $0x160] sm:$0xff]  ;;  %v2932_v55 = vld [vmem:[#allocation14 + $0x50] sm:$0xff] }
 0x37d   :  { %v2043_v30 = vpop.f32.mrf.mxu1 }
 0x37e   :  { %v2044_v27 = vadd.f32 %v2043_v30, %v1929_v53  ;;  %v2187_v62 = vadd.f32 %v2178_v45, %v2042_v5  ;;  %v2466_v15 = vpop.f32.mrf.mxu0  ;;  %v2937_v45 = vld [vmem:[#allocation14 + $0x78] sm:$0xff]  ;;  %v2934_v30 = vld [vmem:[#allocation14 + $0x60] sm:$0xff] }
 0x37f   :  { %v2945_v5 = vld [vmem:[#allocation14 + $0xb8] sm:$0xff] }
 0x380   :  { %v2188_v61 = vadd.f32 %v2180_v7, %v2044_v27  ;;  %v2952_v7 = vld [vmem:[#allocation14 + $0xf0] sm:$0xff]  ;;  %v2943_v27 = vld [vmem:[#allocation14 + $0xa8] sm:$0xff] }
 0x389   :  { %v2309_v20 = vpop.f32.mrf.mxu1 }
 0x38a   :  { %v2326_v47 = vadd.f32 %v2309_v20, %v2183_v11  ;;  %v2964_v11 = vld [vmem:[#allocation14 + $0x150] sm:$0xff]  ;;  %v2963_v20 = vld [vmem:[#allocation14 + $0x148] sm:$0xff] }
 0x38b   :  { %v2311_v32 = vpop.f32.mrf.mxu1 }
 0x38c   :  { %v2469_v16 = vadd.f32 %v2452_v60, %v2326_v47  ;;  %v2327_v25 = vadd.f32 %v2311_v32, %v2184_v41  ;;  %v2951_v60 = vld [vmem:[#allocation14 + $0xe8] sm:$0xff]  ;;  %v2962_v41 = vld [vmem:[#allocation14 + $0x140] sm:$0xff]  ;;  %v2961_v32 = vld [vmem:[#allocation14 + $0x138] sm:$0xff] }
 0x38d   :  { %v2315_v28 = vpop.f32.mrf.mxu1  ;;  %v2947_v47 = vld [vmem:[#allocation14 + $0xc8] sm:$0xff] }
 0x38e   :  { %v2470_v36 = vadd.f32 %v2454_v23, %v2327_v25  ;;  %v2328_v52 = vadd.f32 %v2315_v28, %v2185_v8  ;;  %v2487_v40 = vadd.f32 %v2480_v19, %v2469_v16  ;;  %v2950_v23 = vld [vmem:[#allocation14 + $0xe0] sm:$0xff]  ;;  %v2960_v16 = vld [vmem:[#allocation14 + $0x130] sm:$0xff]  ;;  %v2929_v25 = vld [vmem:[#allocation14 + $0x38] sm:$0xff] }
 0x38f   :  { %v2317_v44 = vpop.f32.mrf.mxu1  ;;  %v2944_v8 = vld [vmem:[#allocation14 + $0xb0] sm:$0xff] }
 0x390   :  { %v2488_v4 = vadd.f32 %v2484_v17, %v2470_v36  ;;  %v2471_v46 = vadd.f32 %v2458_v29, %v2328_v52  ;;  %v2329_v10 = vadd.f32 %v2317_v44, %v2186_v26  ;;  %v2948_v29 = vld [vmem:[#allocation14 + $0xd0] sm:$0xff]  ;;  %v2958_v36 = vld [vmem:[#allocation14 + $0x120] sm:$0xff]  ;;  %v2927_v52 = vld [vmem:[#allocation14 + $0x28] sm:$0xff] }
 0x391   :  { %v2321_v24 = vpop.f32.mrf.mxu1  ;;  %v2928_v28 = vld [vmem:[#allocation14 + $0x30] sm:$0xff]  ;;  %v2942_v26 = vld [vmem:[#allocation14 + $0xa0] sm:$0xff] }
 0x392   :  { %3652 = vtanh.f32 %v2488_v4  ;;  %v2472_v42 = vadd.f32 %v2460_v31, %v2329_v10  ;;  %v2330_v35 = vadd.f32 %v2321_v24, %v2187_v62  ;;  %v2489_v49 = vadd.f32 %v2480_v19, %v2471_v46  ;;  %v2959_v31 = vld [vmem:[#allocation14 + $0x128] sm:$0xff]  ;;  %v2926_v44 = vld [vmem:[#allocation14 + $0x20] sm:$0xff]  ;;  %v2941_v4 = vld [vmem:[#allocation14 + $0x98] sm:$0xff] }
 0x393   :  { %3654 = vtanh.f32 %v2487_v40  ;;  %v2323_v43 = vpop.f32.mrf.mxu1  ;;  %v2957_v40 = vld [vmem:[#allocation14 + $0x118] sm:$0xff]  ;;  %v2956_v46 = vld [vmem:[#allocation14 + $0x110] sm:$0xff]  ;;  %v2955_v10 = vld [vmem:[#allocation14 + $0x108] sm:$0xff] }
 0x394   :  { %v2490_v37 = vadd.f32 %v2484_v17, %v2472_v42  ;;  %v2473_v12 = vadd.f32 %v2464_v3, %v2330_v35  ;;  %v2331_v6 = vadd.f32 %v2323_v43, %v2188_v61 }
 0x396   :  { %3656 = vtanh.f32 %v2490_v37  ;;  %v2474_v38 = vadd.f32 %v2466_v15, %v2331_v6  ;;  %v2491_v33 = vadd.f32 %v2480_v19, %v2473_v12  ;;  %v2946_v19 = vld [vmem:[#allocation14 + $0xc0] sm:$0xff] }
 0x397   :  { %3658 = vtanh.f32 %v2489_v49 }
 0x398   :  { %v2492_v48 = vadd.f32 %v2484_v17, %v2474_v38  ;;  %v2930_v17 = vld [vmem:[#allocation14 + $0x40] sm:$0xff] }
 0x39a   :  { %3660 = vtanh.f32 %v2492_v48 }
 0x39b   :  { %3662 = vtanh.f32 %v2491_v33 }
 0x39f   :  { %v3653_v21 = vpop.eup %3652 }
 0x3a0   :  { %v3655_v14 = vpop.eup %3654  ;;  %3454 = vmatprep.mubr.msk.f32.mxu1 %vm288_vm3, %v3653_v21  ;;  %3457 = vmatprep.mubr.msk.f32.mxu0 %vm288_vm3, %v3653_v21 }
 0x3a1   :  { %2593 = vmatmul.mubr.f32.vlgmr.msra.gmra.mxu1 %v3655_v14  ;;  %2693 = vmatmul.mubr.f32.vlgmr.msra.gmra.mxu0 %v3655_v14 }
 0x3a2   :  { %3053 = vmatpush1.msra.mxu0 %v2969_v57  ;;  %3471 = vmatpush3.msra.mxu1 %v2937_v45 }
 0x3a3   :  { %v3657_v58 = vpop.eup %3656  ;;  %3054 = vmatprep.subr.mxu0 %v3918_v0  ;;  %3472 = vmatprep.subr.mxu1 %v2952_v7 }
 0x3a4   :  { %v3659_v56 = vpop.eup %3658  ;;  %3455 = vmatprep.mubr.msk.f32.mxu1 %vm288_vm3, %v3657_v58  ;;  %3458 = vmatprep.mubr.msk.f32.mxu0 %vm288_vm3, %v3657_v58 }
 0x3a5   :  { %2598 = vmatmul.mubr.f32.gmra.mxu1 %v3659_v56  ;;  %2698 = vmatmul.mubr.f32.gmra.mxu0 %v3659_v56 }
 0x3a6   :  { %3055 = vmatpush1.msra.mxu0 %v2968_v50  ;;  %3473 = vmatpush3.msra.mxu1 %v2936_v39 }
 0x3a7   :  { %v3661_v53 = vpop.eup %3660  ;;  %3056 = vmatprep.subr.mxu0 %v3918_v0  ;;  %3474 = vmatprep.subr.mxu1 %v2951_v60 }
 0x3a8   :  { %v3663_v51 = vpop.eup %3662  ;;  %3456 = vmatprep.mubr.msk.f32.mxu1 %vm288_vm3, %v3661_v53  ;;  %3459 = vmatprep.mubr.msk.f32.mxu0 %vm288_vm3, %v3661_v53 }
 0x3a9   :  { %2603 = vmatmul.mubr.f32.gmra.mxu1 %v3663_v51  ;;  %2703 = vmatmul.mubr.f32.gmra.mxu0 %v3663_v51 }
 0x3aa   :  { %3057 = vmatpush1.msra.mxu0 %v2967_v1  ;;  %3475 = vmatpush3.msra.mxu1 %v2935_v22 }
 0x3ab   :  { %3058 = vmatprep.subr.mxu0 %v3918_v0  ;;  %3476 = vmatprep.subr.mxu1 %v2950_v23 }
 0x3ac   :  { %3059 = vmatpush1.msra.mxu0 %v2966_v63  ;;  %3477 = vmatpush3.msra.mxu1 %v2934_v30 }
 0x3ad   :  { %3060 = vmatprep.subr.mxu0 %v3918_v0  ;;  %3478 = vmatprep.subr.mxu1 %v2949_v13 }
 0x3ae   :  { %3061 = vmatpush1.msra.mxu0 %v2965_v2  ;;  %3479 = vmatpush3.msra.mxu1 %v2933_v18 }
 0x3af   :  { %3062 = vmatprep.subr.mxu0 %v3918_v0  ;;  %3480 = vmatprep.subr.mxu1 %v2948_v29 }
 0x3b0   :  { %3063 = vmatpush1.msra.mxu0 %v2964_v11  ;;  %3481 = vmatpush3.msra.mxu1 %v2932_v55 }
 0x3b1   :  { %3064 = vmatprep.subr.mxu0 %v3918_v0  ;;  %3482 = vmatprep.subr.mxu1 %v2947_v47 }
 0x3b2   :  { %3065 = vmatpush1.msra.mxu0 %v2963_v20  ;;  %3483 = vmatpush3.msra.mxu1 %v2931_v9 }
 0x3b3   :  { %3066 = vmatprep.subr.mxu0 %v3918_v0  ;;  %3484 = vmatprep.subr.mxu1 %v2946_v19 }
 0x3b4   :  { %3067 = vmatpush1.msra.mxu0 %v2962_v41  ;;  %3485 = vmatpush3.msra.mxu1 %v2930_v17 }
 0x3b5   :  { %3068 = vmatprep.subr.mxu0 %v3918_v0  ;;  %3486 = vmatprep.subr.mxu1 %v2945_v5 }
 0x3b6   :  { %3069 = vmatpush1.msra.mxu0 %v2961_v32  ;;  %3487 = vmatpush3.msra.mxu1 %v2929_v25 }
 0x3b7   :  { %3070 = vmatprep.subr.mxu0 %v3918_v0  ;;  %3488 = vmatprep.subr.mxu1 %v2944_v8 }
 0x3b8   :  { %3071 = vmatpush1.msra.mxu0 %v2960_v16  ;;  %3489 = vmatpush3.msra.mxu1 %v2928_v28 }
 0x3b9   :  { %3072 = vmatprep.subr.mxu0 %v3918_v0  ;;  %3490 = vmatprep.subr.mxu1 %v2943_v27 }
 0x3ba   :  { %3073 = vmatpush1.msra.mxu0 %v2959_v31  ;;  %3491 = vmatpush3.msra.mxu1 %v2927_v52 }
 0x3bb   :  { %3074 = vmatprep.subr.mxu0 %v3918_v0  ;;  %3492 = vmatprep.subr.mxu1 %v2942_v26 }
 0x3bc   :  { %3075 = vmatpush1.msra.mxu0 %v2958_v36  ;;  %3493 = vmatpush3.msra.mxu1 %v2926_v44 }
 0x3bd   :  { %3076 = vmatprep.subr.mxu0 %v3918_v0  ;;  %3494 = vmatprep.subr.mxu1 %v2941_v4 }
 0x3be   :  { %3077 = vmatpush1.msra.mxu0 %v2957_v40 }
 0x3bf   :  { %3078 = vmatprep.subr.mxu0 %v3918_v0 }
 0x3c0   :  { %3079 = vmatpush1.msra.mxu0 %v2956_v46 }
 0x3c1   :  { %3080 = vmatprep.subr.mxu0 %v3918_v0 }
 0x3c2   :  { %3081 = vmatpush1.msra.mxu0 %v2955_v10 }
 0x3c3   :  { %3082 = vmatprep.subr.mxu0 %v3918_v0 }
 0x461   :  { %v2594_v62 = vpop.f32.mrf.mxu1  ;;  %v2694_v3 = vpop.f32.mrf.mxu0 }
 0x462   :  { %v2708_v24 = vmax.f32 %v2594_v62, %v2694_v3 }
 0x463   :  { %v2596_v42 = vpop.f32.mrf.mxu1  ;;  %v2696_v35 = vpop.f32.mrf.mxu0 }
 0x464   :  { %v2714_v61 = vcombine.high %v2708_v24, %v2708_v24  ;;  %v2721_v49 = vrot.slane %v2708_v24, %v4530_v54 }
 0x465   :  { %v2599_v43 = vpop.f32.mrf.mxu1  ;;  %v2699_v37 = vpop.f32.mrf.mxu0 }
 0x466   :  { %v2728_v12 = vrot.slane %v2714_v61, %v4530_v54  ;;  %v2729_v6 = vcombine.high %v2721_v49, %v2721_v49  ;;  %v2767_v15 = vsel %vm2766_vm5, %v2721_v49, -inf  ;;  %v2709_v38 = vmax.f32 %v2599_v43, %v2699_v37 }
 0x467   :  { %v2768_v33 = vrot.slane %v2767_v15, 4  ;;  %v2601_v48 = vpop.f32.mrf.mxu1  ;;  %v2701_v21 = vpop.f32.mrf.mxu0 }
 0x468   :  { %v2730_v14 = vcombine.high %v2728_v12, %v2728_v12  ;;  %v2774_v58 = vsel %vm2766_vm5, %v2729_v6, -inf  ;;  %v2781_v56 = vsel %vm2766_vm5, %v2728_v12, -inf  ;;  %v2731_v53 = vcombine.high %v2709_v38, %v2709_v38 }
 0x469   :  { %v2769_v51 = vmax.f32 %v2767_v15, %v2768_v33  ;;  %v2775_v57 = vrot.slane %v2774_v58, 4  ;;  %v2782_v50 = vrot.slane %v2781_v56, 4  ;;  %v2738_v59 = vrot.slane %v2709_v38, %v4530_v54  ;;  %v2604_v45 = vpop.f32.mrf.mxu1  ;;  %v2704_v1 = vpop.f32.mrf.mxu0 }
 0x46a   :  { %v2788_v7 = vsel %vm2766_vm5, %v2730_v14, -inf  ;;  %v2745_v39 = vrot.slane %v2731_v53, %v4530_v54  ;;  %v2710_v25 = vmax.f32 %v2604_v45, %v2704_v1 }
 0x46b   :  { %v2770_v60 = vrot.slane %v2769_v51, 2  ;;  %v2776_v63 = vmax.f32 %v2774_v58, %v2775_v57  ;;  %v2783_v22 = vmax.f32 %v2781_v56, %v2782_v50  ;;  %v2789_v23 = vrot.slane %v2788_v7, 4  ;;  %v2606_v2 = vpop.f32.mrf.mxu1  ;;  %v2706_v30 = vpop.f32.mrf.mxu0 }
 0x46c   :  { %v2746_v13 = vcombine.high %v2738_v59, %v2738_v59  ;;  %v2747_v11 = vcombine.high %v2745_v39, %v2745_v39  ;;  %v2795_v18 = vsel %vm2766_vm5, %v2738_v59, -inf  ;;  %v2809_v29 = vsel %vm2766_vm5, %v2745_v39, -inf }
 0x46d   :  { %v2777_v20 = vrot.slane %v2776_v63, 2  ;;  %v2784_v55 = vrot.slane %v2783_v22, 2  ;;  %v2790_v47 = vmax.f32 %v2788_v7, %v2789_v23  ;;  %v2796_v41 = vrot.slane %v2795_v18, 4 }
 0x46e   :  { %v2802_v9 = vsel %vm2766_vm5, %v2746_v13, -inf  ;;  %v2810_v19 = vrot.slane %v2809_v29, 4  ;;  %v2816_v32 = vsel %vm2766_vm5, %v2747_v11, -inf  ;;  %v2771_v17 = vmax.f32 %v2769_v51, %v2770_v60 }
 0x46f   :  { %v2778_v5 = vmax.f32 %v2776_v63, %v2777_v20  ;;  %v2791_v16 = vrot.slane %v2790_v47, 2  ;;  %v2797_v8 = vmax.f32 %v2795_v18, %v2796_v41  ;;  %v2803_v31 = vrot.slane %v2802_v9, 4 }
 0x470   :  { %v2811_v28 = vmax.f32 %v2809_v29, %v2810_v19  ;;  %v2817_v27 = vrot.slane %v2816_v32, 4  ;;  %v2785_v36 = vmax.f32 %v2783_v22, %v2784_v55  ;;  %v2772_v4 = vrot.slane %v2771_v17, 1  ;;  %v2954_v19 = vld [vmem:[#allocation14 + $0x100] sm:$0xff] }
 0x471   :  { %v2779_v52 = vrot.slane %v2778_v5, 1  ;;  %v2804_v26 = vmax.f32 %v2802_v9, %v2803_v31  ;;  %v2798_v46 = vrot.slane %v2797_v8, 2  ;;  %v2754_v10 = vrot.slane %v2710_v25, %v4530_v54  ;;  %v2925_v9 = vld [vmem:[#allocation14 + $0x18] sm:$0xff]  ;;  %3083 = vmatpush1.msra.mxu0 %v2954_v19  ;;  %v3262_v19 = vld [vmem:[#allocation17 + $0x20] sm:$0xff] }
 0x472   :  { %v2812_v40 = vrot.slane %v2811_v28, 2  ;;  %v2818_v44 = vmax.f32 %v2816_v32, %v2817_v27  ;;  %v2792_v62 = vmax.f32 %v2790_v47, %v2791_v16  ;;  %v2786_v35 = vrot.slane %v2785_v36, 1  ;;  %v2940_v32 = vld [vmem:[#allocation14 + $0x90] sm:$0xff]  ;;  %3495 = vmatpush3.msra.mxu1 %v2925_v9  ;;  %v2939_v16 = vld [vmem:[#allocation14 + $0x88] sm:$0xff]  ;;  %3112 = vmatprep.subr.mxu0 %v3918_v0 }
 0x473   :  { %v2805_v3 = vrot.slane %v2804_v26, 2  ;;  %v2755_v61 = vcombine.high %v2754_v10, %v2754_v10  ;;  %v2823_v49 = vsel %vm2766_vm5, %v2754_v10, -inf  ;;  %v2780_v43 = vmax.f32 %v2778_v5, %v2779_v52  ;;  %v2971_v5 = vld [vmem:[#allocation14 + $0x188] sm:$0xff]  ;;  %3496 = vmatprep.subr.mxu1 %v2940_v32  ;;  %v2970_v52 = vld [vmem:[#allocation14 + $0x180] sm:$0xff]  ;;  %v3263_v9 = vld [vmem:[#allocation17 + $0x28] sm:$0xff] }
 0x474   :  { %v2813_v24 = vmax.f32 %v2811_v28, %v2812_v40  ;;  %v2819_v42 = vrot.slane %v2818_v44, 2  ;;  %v2799_v15 = vmax.f32 %v2797_v8, %v2798_v46  ;;  %v2824_v38 = vrot.slane %v2823_v49, 4  ;;  %3113 = vmatpush2.msra.mxu0 %v2971_v5  ;;  %v3261_v32 = vld [vmem:[#allocation17 + $0x18] sm:$0xff]  ;;  %v3259_v5 = vld [vmem:[#allocation17 + $0x8] sm:$0xff] }
 0x475   :  { %v2806_v37 = vmax.f32 %v2804_v26, %v2805_v3  ;;  %v2830_v33 = vsel %vm2766_vm5, %v2755_v61, -inf  ;;  %v2773_v48 = vmax.f32 %v2771_v17, %v2772_v4  ;;  %v2793_v21 = vrot.slane %v2792_v62, 1  ;;  %v2924_v17 = vld [vmem:[#allocation14 + $0x10] sm:$0xff]  ;;  %3114 = vmatprep.subr.mxu0 %v3918_v0  ;;  %v2938_v26 = vld [vmem:[#allocation14 + $0x80] sm:$0xff] }
 0x476   :  { %v2814_v12 = vrot.slane %v2813_v24, 1  ;;  %v2820_v6 = vmax.f32 %v2818_v44, %v2819_v42  ;;  %v2787_v56 = vmax.f32 %v2785_v36, %v2786_v35  ;;  %v2825_v51 = vmax.f32 %v2823_v49, %v2824_v38  ;;  %3497 = vmatpush3.msra.mxu1 %v2924_v17  ;;  %v2923_v36 = vld [vmem:[#allocation14 + $0x8] sm:$0xff]  ;;  %3115 = vmatpush2.msra.mxu0 %v2970_v52  ;;  %v2922_v4 = vld [vmem:[#allocation14] sm:$0xff]  ;;  %v3260_v17 = vld [vmem:[#allocation17 + $0x10] sm:$0xff] }
 0x477   :  { %v2807_v14 = vrot.slane %v2806_v37, 1  ;;  %v2831_v57 = vrot.slane %v2830_v33, 4  ;;  %v2847_v50 = vsel %vm1812_vm13, %v2780_v43, %v2773_v48  ;;  %v2800_v45 = vrot.slane %v2799_v15, 1  ;;  %3498 = vmatprep.subr.mxu1 %v2939_v16  ;;  %3566 = vmatprep.subr.mxu0 %v3918_v0  ;;  %v3137_v38 = vld [vmem:[#allocation16 + $0x70] sm:$0xff]  ;;  %v3136_v48 = vld [vmem:[#allocation16 + $0x68] sm:$0xff]  ;;  %v3258_v16 = vld [vmem:[#allocation17] sm:$0xff] }
 0x478   :  { %v2821_v58 = vrot.slane %v2820_v6, 1  ;;  %v2815_v53 = vmax.f32 %v2813_v24, %v2814_v12  ;;  %v2826_v1 = vrot.slane %v2825_v51, 2  ;;  %v2794_v39 = vmax.f32 %v2792_v62, %v2793_v21  ;;  %3499 = vmatpush3.msra.mxu1 %v2923_v36  ;;  %v3135_v21 = vld [vmem:[#allocation16 + $0x60] sm:$0xff] }
 0x479   :  { %v2808_v59 = vmax.f32 %v2806_v37, %v2807_v14  ;;  %v2832_v7 = vmax.f32 %v2830_v33, %v2831_v57  ;;  %v2848_v23 = vsel %vm1814_vm14, %v2787_v56, %v2847_v50  ;;  %v2801_v30 = vmax.f32 %v2799_v15, %v2800_v45  ;;  %3500 = vmatprep.subr.mxu1 %v2938_v26  ;;  %v3134_v14 = vld [vmem:[#allocation16 + $0x58] sm:$0xff]  ;;  %v3132_v56 = vld [vmem:[#allocation16 + $0x48] sm:$0xff]  ;;  %v3129_v57 = vld [vmem:[#allocation16 + $0x30] sm:$0xff] }
 0x47a   :  { %v2822_v60 = vmax.f32 %v2820_v6, %v2821_v58  ;;  %v2827_v63 = vmax.f32 %v2825_v51, %v2826_v1  ;;  %v2849_v18 = vsel %vm1816_vm15, %v2794_v39, %v2848_v23  ;;  %v3920_v20 = vmov 1934713408   ;;  %3501 = vmatpush3.msra.mxu1 %v2922_v4  ;;  %v3133_v58 = vld [vmem:[#allocation16 + $0x50] sm:$0xff]  ;;  %v3130_v51 = vld [vmem:[#allocation16 + $0x38] sm:$0xff]  ;;  %v3128_v50 = vld [vmem:[#allocation16 + $0x28] sm:$0xff] }
 0x47b   :  { %v2833_v22 = vrot.slane %v2832_v7, 2  ;;  %v2851_v2 = vsel %vm1812_vm13, %v2815_v53, %v2808_v59  ;;  %v2876_v55 = vunpack.c.l.s4 %v3920_v20  ;;  %v2850_v8 = vsel %vm737_vm6, %v2801_v30, %v2849_v18  ;;  %3533 = vmatprep.subr.mxu1 %v3918_v0  ;;  %v3131_v53 = vld [vmem:[#allocation16 + $0x40] sm:$0xff]  ;;  %v3126_v45 = vld [vmem:[#allocation16 + $0x18] sm:$0xff]  ;;  %v3125_v1 = vld [vmem:[#allocation16 + $0x10] sm:$0xff] }
 0x47c   :  { %v2828_v13 = vrot.slane %v2827_v63, 1  ;;  %v2852_v29 = vsel %vm1814_vm14, %v2822_v60, %v2851_v2  ;;  %v2863_v40 = vrot.slane %v2850_v8, %v4530_v54  ;;  %v3127_v59 = vld [vmem:[#allocation16 + $0x20] sm:$0xff]  ;;  %v3461_v23 = vld [vmem:[%s5033_s10] ss:$0 sm:$0xff] }
 0x47d   :  { %v2834_v11 = vmax.f32 %v2832_v7, %v2833_v22  ;;  %v2877_v28 = vunpack.c.0.s8 %v2876_v55  ;;  %v3124_v7 = vld [vmem:[#allocation16 + $0x8] sm:$0xff]  ;;  %v3123_v39 = vld [vmem:[#allocation16] sm:$0xff]  ;;  %v3266_v55 = vld [vmem:[#allocation17 + $0x40] sm:$0xff] }
 0x47e   :  { %v2829_v47 = vmax.f32 %v2827_v63, %v2828_v13  ;;  %v3267_v20 = vld [vmem:[#allocation17 + $0x48] sm:$0xff] }
 0x47f   :  { %v2835_v41 = vrot.slane %v2834_v11, 1  ;;  %v2880_v10 = vsub.s32 %v2877_v28, %v4452_v34 }
 0x480   :  { %v2853_v31 = vsel %vm1816_vm15, %v2829_v47, %v2852_v29  ;;  %v3268_v29 = vld [vmem:[#allocation17 + $0x50] sm:$0xf]  ;;  %v3265_v47 = vld [vmem:[#allocation17 + $0x38] sm:$0xff] }
 0x481   :  { %v2836_v25 = vmax.f32 %v2834_v11, %v2835_v41  ;;  %v3264_v41 = vld [vmem:[#allocation17 + $0x30] sm:$0xff] }
 0x483   :  { %v2854_v27 = vsel %vm737_vm6, %v2836_v25, %v2853_v31  ;;  %vm2920_vm6 = vcmask 523264   ;;  %v3463_v25 = vld [vmem:[%s5035_s12] ss:$0 sm:$0xff] }
 0x484   :  { %v2871_v44 = vrot.slane %v2854_v27, %v4530_v54  ;;  %v3460_v54 = vcombine.high %v2850_v8, %v2854_v27 }
 0x486   :  { %v2874_v46 = vcombine.high %v2863_v40, %v2871_v44  ;;  %v2873_v62 = vcombine.low %v2863_v40, %v2871_v44  ;;  %v2898_v61 = vrot.slane %v3460_v54, %v2880_v10 }
 0x488   :  { %v2888_v3 = vrot.slane %v2874_v46, %v2880_v10  ;;  %v2881_v24 = vrot.slane %v2873_v62, %v2880_v10 }
 0x48a   :  { %v2891_v42 = vcombine.high %v2888_v3, %v3918_v0  ;;  %v2890_v35 = vcombine.high %v2881_v24, %v3918_v0 }
 0x48c   :  { %2908 = vrot.lane.b32.xlu1 %v2891_v42, %s3921_s6  ;;  %2900 = vrot.lane.b32.xlu0 %v2890_v35, %s3922_s23 }
 0x490   :  { %2912 = vrot.lane.b32.xlu1 %v2898_v61, %s3923_s19  ;;  %2904 = vrot.lane.b32.xlu0 %v2888_v3, %s3924_s4 }
 0x4fe   :  { %v2909_v34 = vpop.permute.xlu1 %2908  ;;  %v2901_v49 = vpop.permute.xlu0 %2900 }
 0x4ff   :  { %v2916_v33 = vsel %vm2915_vm9, %v2881_v24, %v2901_v49 }
 0x502   :  { %v2913_v43 = vpop.permute.xlu1 %2912  ;;  %v2905_v37 = vpop.permute.xlu0 %2904 }
 0x503   :  { %v2921_v12 = vsel %vm2920_vm6, %v2909_v34, %v2913_v43  ;;  %v2917_v6 = vsel %vm288_vm3, %v2901_v49, %v2905_v37  ;;  %3462 = vmatprep.mubr.msk.f32.mxu0 %vm2979_vm7, %v2913_v43  ;;  %vm3925_vm3 = vmmov 0   ;;  %v3465_v37 = vld [vmem:[%s5036_s13] ss:$0 sm:$0xff]  ;;  %s3870_s13 = scalar_lea.vmem %s3360_s5, 32 }
 0x504   :  { %3117 = vmatmul.mubr.f32.vlgmr.msra.gmra.mxu0 %v2921_v12  ;;  %v2919_v15 = vsel %vm2918_vm8, %v2917_v6, %v2909_v34  ;;  %v3466_v6 = vld [vmem:[%s5037_s14] ss:$0 sm:$0xff]  ;;  %p3871_p8 = scmp.ne.s32.totalorder %s3360_s5, %s3870_s13  ;;  %p3876_p10 = scmp.lt.s32.totalorder %s3870_s13, %s3870_s13 }
 0x505   :  { %3046 = vmatprep.mubr.f32.mxu1 %v2919_v15  ;;  %3588 = vmatprep.mubr.msk.f32.mxu0 %vm3925_vm3, %v3918_v0 }
 0x506   :  { %3047 = vmatmul.mubr.f32.vlgmr.msra.gmra.mxu1 %v2916_v33  ;;  %3567 = vmatpush3.msk.msra.mxu0 %vm1842_vm10, %v3268_v29  ;;  %p3877_p11 = por %p3876_p10, %p3875_p9 }
 0x507   :  { %3534 = vmatpush3.msra.mxu1 %v3137_v38  ;;  %3563 = vmatprep.mubr.msk.f32.mxu1 %vm3925_vm3, %v3918_v0 }
 0x508   :  { %3535 = vmatprep.subr.mxu1 %v3918_v0  ;;  %3568 = vmatprep.subr.mxu0 %v3918_v0  ;;  %p3878_p12 = pnand %p3877_p11, %p3871_p8 }
 0x509   :  { %3536 = vmatpush3.msra.mxu1 %v3136_v48  ;;  %3569 = vmatpush3.msra.mxu0 %v3267_v20  ;;  %v3467_v48 = vld [vmem:[%s5039_s16] ss:$0 sm:$0xff] }
 0x50a   :  { %3537 = vmatprep.subr.mxu1 %v3918_v0  ;;  %3570 = vmatprep.subr.mxu0 %v3918_v0 }
 0x50b   :  { %3538 = vmatpush3.msra.mxu1 %v3135_v21  ;;  %3571 = vmatpush3.msra.mxu0 %v3266_v55 }
 0x50c   :  { %3539 = vmatprep.subr.mxu1 %v3918_v0  ;;  %3572 = vmatprep.subr.mxu0 %v3918_v0 }
 0x50d   :  { %3540 = vmatpush3.msra.mxu1 %v3134_v14  ;;  %3573 = vmatpush3.msra.mxu0 %v3265_v47 }
 0x50e   :  { %3541 = vmatprep.subr.mxu1 %v3918_v0  ;;  %3574 = vmatprep.subr.mxu0 %v3918_v0 }
 0x50f   :  { %3542 = vmatpush3.msra.mxu1 %v3133_v58  ;;  %3575 = vmatpush3.msra.mxu0 %v3264_v41 }
 0x510   :  { %3543 = vmatprep.subr.mxu1 %v3918_v0  ;;  %3576 = vmatprep.subr.mxu0 %v3918_v0 }
 0x511   :  { %3544 = vmatpush3.msra.mxu1 %v3132_v56  ;;  %3577 = vmatpush3.msra.mxu0 %v3263_v9 }
 0x512   :  { %3545 = vmatprep.subr.mxu1 %v3918_v0  ;;  %3578 = vmatprep.subr.mxu0 %v3918_v0 }
 0x513   :  { %3546 = vmatpush3.msra.mxu1 %v3131_v53  ;;  %3579 = vmatpush3.msra.mxu0 %v3262_v19 }
 0x514   :  { %3547 = vmatprep.subr.mxu1 %v3918_v0  ;;  %3580 = vmatprep.subr.mxu0 %v3918_v0 }
 0x515   :  { %3548 = vmatpush3.msra.mxu1 %v3130_v51  ;;  %3581 = vmatpush3.msra.mxu0 %v3261_v32 }
 0x516   :  { %3549 = vmatprep.subr.mxu1 %v3918_v0  ;;  %3582 = vmatprep.subr.mxu0 %v3918_v0 }
 0x517   :  { %3550 = vmatpush3.msra.mxu1 %v3129_v57  ;;  %3583 = vmatpush3.msra.mxu0 %v3260_v17 }
 0x518   :  { %3551 = vmatprep.subr.mxu1 %v3918_v0  ;;  %3584 = vmatprep.subr.mxu0 %v3918_v0 }
 0x519   :  { %3552 = vmatpush3.msra.mxu1 %v3128_v50  ;;  %3585 = vmatpush3.msra.mxu0 %v3259_v5 }
 0x51a   :  { %3553 = vmatprep.subr.mxu1 %v3918_v0  ;;  %3586 = vmatprep.subr.mxu0 %v3918_v0 }
 0x51b   :  { %3554 = vmatpush3.msra.mxu1 %v3127_v59  ;;  %3587 = vmatpush3.msra.mxu0 %v3258_v16 }
 0x51c   :  { %3555 = vmatprep.subr.mxu1 %v3918_v0 }
 0x51d   :  { %3556 = vmatpush3.msra.mxu1 %v3126_v45 }
 0x51e   :  { %3557 = vmatprep.subr.mxu1 %v3918_v0 }
 0x51f   :  { %3558 = vmatpush3.msra.mxu1 %v3125_v1 }
 0x520   :  { %3559 = vmatprep.subr.mxu1 %v3918_v0 }
 0x521   :  { %3560 = vmatpush3.msra.mxu1 %v3124_v7 }
 0x522   :  { %3561 = vmatprep.subr.mxu1 %v3918_v0 }
 0x523   :  { %3562 = vmatpush3.msra.mxu1 %v3123_v39 }
 0x5c4   :  { %v3118_v60 = vpop.f32.mrf.mxu0 }
 0x5c6   :  { %v3502_v63 = vpop.f32.mrf.mxu1  ;;  %v3120_v22 = vpop.f32.mrf.mxu0 }
 0x5c8   :  { %v3503_v2 = vpop.f32.mrf.mxu1 }
 0x5c9   :  { %v3504_v30 = vadd.f32 %v3503_v2, %v3502_v63 }
 0x5cb   :  { %v3049_v13 = vadd.f32 %v3504_v30, %v3461_v23 }
 0x5cd   :  { %v3119_v11 = vadd.f32 %v3118_v60, %v3049_v13 }
 0x5cf   :  { %3664 = vtanh.f32 %v3119_v11 }
 0x5dc   :  { %v3665_v18 = vpop.eup %3664 }
 0x5dd   :  { %3564 = vmatmul.mubr.msk.f32.vlgmr.msra.gmra.mxu1 %vm3145_vm11, %v3665_v18 }
 0x69d   :  { %v3215_v8 = vpop.f32.mrf.mxu1 }
 0x69e   :  { %v3216_v31 = vadd.f32 %v3463_v25, %v3215_v8 }
 0x69f   :  { %v3565_v28 = vpop.f32.mrf.mxu1 }
 0x6a0   :  { %v3219_v27 = vsel %vm1550_vm12, %v3216_v31, 0.0 }
 0x6a1   :  { %v3220_v36 = vrot.slane %v3219_v27, 4 }
 0x6a3   :  { %v3221_v52 = vadd.f32 %v3220_v36, %v3219_v27 }
 0x6a5   :  { %v3222_v26 = vrot.slane %v3221_v52, 2 }
 0x6a7   :  { %v3223_v40 = vadd.f32 %v3222_v26, %v3221_v52 }
 0x6a9   :  { %v3224_v44 = vrot.slane %v3223_v40, 1 }
 0x6ab   :  { %v3225_v4 = vadd.f32 %v3224_v44, %v3223_v40 }
 0x6ad   :  { %v3227_v46 = vmul.f32 0.5, %v3225_v4 }
 0x6af   :  { %v3228_v10 = vsub.f32 %v3216_v31, %v3227_v46 }
 0x6b1   :  { %v3229_v62 = vmul.f32 %v3228_v10, %v3228_v10 }
 0x6b3   :  { %v3230_v0 = vsel %vm1550_vm12, %v3229_v62, 0.0 }
 0x6b4   :  { %v3231_v3 = vrot.slane %v3230_v0, 4 }
 0x6b6   :  { %v3232_v24 = vadd.f32 %v3231_v3, %v3230_v0 }
 0x6b8   :  { %v3233_v42 = vrot.slane %v3232_v24, 2 }
 0x6ba   :  { %v3234_v35 = vadd.f32 %v3233_v42, %v3232_v24 }
 0x6bc   :  { %v3235_v54 = vrot.slane %v3234_v35, 1 }
 0x6be   :  { %v3236_v61 = vadd.f32 %v3235_v54, %v3234_v35 }
 0x6c0   :  { %v3237_v34 = vmul.f32 0.5, %v3236_v61 }
 0x6c2   :  { %v3238_v49 = vadd.f32 1e-05, %v3237_v34 }
 0x6c4   :  { %3666 = vrsqrt.f32 %v3238_v49 }
 0x6d1   :  { %v3667_v43 = vpop.eup %3666 }
 0x6d2   :  { %v3240_v12 = vmul.f32 %v3667_v43, %v3228_v10 }
 0x6d4   :  { %v3248_v15 = vmul.f32 %v3465_v37, %v3240_v12 }
 0x6d6   :  { %v3256_v38 = vadd.f32 %v3466_v6, %v3248_v15 }
 0x6d8   :  { %3668 = vtanh.f32 %v3256_v38 }
 0x6e5   :  { %v3669_v33 = vpop.eup %3668 }
 0x6e6   :  { %3589 = vmatmul.mubr.msk.f32.vlgmr.msra.gmra.mxu0 %vm1835_vm4, %v3669_v33 }
 0x7a6   :  { %v3348_v21 = vpop.f32.mrf.mxu0 }
 0x7a7   :  { %v3349_v14 = vadd.f32 %v3467_v48, %v3348_v21 }
 0x7a8   :  { %v3590_v58 = vpop.f32.mrf.mxu0 }
 0x7a9   :  { %3352 = vst [vmem:[#allocation19] sm:$0x3] %v3349_v14 }
 0x7aa   :  { %3881 = shalt.err (!%p3878_p12)
}
 0x7ab   :  { %3362 = dma.vmem_to_hbm [thread:$0]  %s3360_s5, 32, %s5040_s17, [#allocation4]  }
 0x7ac   :  { %3902 = dma.done.wait [#allocation4], 32  }
 0x7ad   :  { %3903 = vsyncadd [#allocation4], 4294967264 }
 0x7ae   :  { %3366 = vsyncpa [#allocation3], 1 }
 0x7af   :  { %3367 = vsyncpa [#allocation6], 1 }
 0x7b0   :  { %3368 = vsyncpa [#allocation9], 1 }
 0x7b1   :  { %3369 = vsyncpa [#allocation12], 1 }
 0x7b2   :  { %3370 = vsyncpa [#allocation15], 1 }
 0x7b3   :  { %3371 = vsyncpa [#allocation18], 1 }
 0x7b4   :  { %3372 = vsyncpa [#allocation4], 1 }

</bundles_post_ra>
